<compile_context>
chip_gen: v7x
topology: tpu7x:2x2x1
jax: 0.10.0
libtpu: 0.0.40
codegen_flags: <defaults>
</compile_context>

<pallas_src>
import functools  # noqa: F401

import jax
import jax.numpy as jnp
from jax.experimental import pallas as pl
from jax.experimental.pallas import tpu as pltpu


# ---------------------------------------------------------------------------
# Pallas kernels
# ---------------------------------------------------------------------------
def _conv_mm_kernel(p_ref, w_ref, b_ref, o_ref):
    """o = relu(p @ w + b).  p/w are bf16; accumulate + bias + relu in f32."""
    y = jnp.dot(p_ref[...], w_ref[...], preferred_element_type=jnp.float32)
    y = jnp.maximum(y + b_ref[...], 0.0)
    o_ref[...] = y.astype(o_ref.dtype)


def _fc_head_kernel(x_ref, w1_ref, b1_ref, w2_ref, b2_ref, wh_ref, bh_ref,
                    o_ref):
    """Fused fc1 -> relu -> fc2 -> relu -> merged heads, all in one kernel."""
    h = jnp.dot(x_ref[...], w1_ref[...], preferred_element_type=jnp.float32)
    h = jnp.maximum(h + b1_ref[...], 0.0).astype(jnp.bfloat16)
    h = jnp.dot(h, w2_ref[...], preferred_element_type=jnp.float32)
    h = jnp.maximum(h + b2_ref[...], 0.0).astype(jnp.bfloat16)
    y = jnp.dot(h, wh_ref[...], preferred_element_type=jnp.float32)
    o_ref[...] = (y + bh_ref[...]).astype(o_ref.dtype)


# ---------------------------------------------------------------------------
# Pallas wrappers
# ---------------------------------------------------------------------------
def conv_matmul(p, w, b, *, m_tiles=1):
    """p: (M, K) bf16, w: (K, N) bf16, b: (1, N) f32 -> relu(p@w+b) (M, N) bf16."""
    M, K = p.shape
    K2, N = w.shape
    assert K == K2 and b.shape == (1, N)
    if m_tiles > 1 and M % (8 * m_tiles) == 0:
        tm, grid = M // m_tiles, (m_tiles,)   # split M so both v7x TCs work
    else:
        tm, grid = M, (1,)
    return pl.pallas_call(
        _conv_mm_kernel,
        out_shape=jax.ShapeDtypeStruct((M, N), jnp.bfloat16),
        grid=grid,
        in_specs=[
            pl.BlockSpec((tm, K), lambda i: (i, 0)),
            pl.BlockSpec((K, N), lambda i: (0, 0)),
            pl.BlockSpec((1, N), lambda i: (0, 0)),
        ],
        out_specs=pl.BlockSpec((tm, N), lambda i: (i, 0)),
        compiler_params=pltpu.CompilerParams(
            dimension_semantics=("parallel",)),
    )(p, w, b)


def fc_heads(x, w1, b1, w2, b2, wh, bh):
    """Fused FC stack.  x: (B, K1) bf16 -> (B, 3) f32 (steer | brake/throttle)."""
    B, K1 = x.shape
    H = w1.shape[1]
    NO = wh.shape[1]
    return pl.pallas_call(
        _fc_head_kernel,
        out_shape=jax.ShapeDtypeStruct((B, NO), jnp.float32),
        grid=(1,),
        in_specs=[
            pl.BlockSpec((B, K1), lambda i: (0, 0)),
            pl.BlockSpec((K1, H), lambda i: (0, 0)),
            pl.BlockSpec((1, H), lambda i: (0, 0)),
            pl.BlockSpec((H, H), lambda i: (0, 0)),
            pl.BlockSpec((1, H), lambda i: (0, 0)),
            pl.BlockSpec((H, NO), lambda i: (0, 0)),
            pl.BlockSpec((1, NO), lambda i: (0, 0)),
        ],
        out_specs=pl.BlockSpec((B, NO), lambda i: (0, 0)),
    )(x, w1, b1, w2, b2, wh, bh)


# ---------------------------------------------------------------------------
# Conv via NHWC im2col (thin XLA glue: strided slices + stack + reshape)
# ---------------------------------------------------------------------------
def _im2col_nhwc(x, k, s):
    """x: (B, H, W, C) -> (B*Ho*Wo, k*k*C) with feature order (kh, kw, C)."""
    B, H, W, C = x.shape
    Ho = (H - k) // s + 1
    Wo = (W - k) // s + 1
    pats = [x[:, i:i + s * Ho:s, j:j + s * Wo:s, :]
            for i in range(k) for j in range(k)]          # each (B, Ho, Wo, C)
    p = jnp.stack(pats, axis=3)                           # (B, Ho, Wo, k*k, C)
    return p.reshape(B * Ho * Wo, k * k * C), Ho, Wo


def conv2d_relu_nhwc(x, w_mm, b, stride, k, *, m_tiles=1):
    """x: (B, H, W, C) bf16, w_mm: (k*k*C, O) bf16, b: (1, O) f32 -> NHWC bf16."""
    B = x.shape[0]
    p, Ho, Wo = _im2col_nhwc(x, k, stride)
    y = conv_matmul(p, w_mm, b, m_tiles=m_tiles)          # (B*Ho*Wo, O)
    return y.reshape(B, Ho, Wo, w_mm.shape[1])


# ---------------------------------------------------------------------------
# Deterministic parameter init (kaiming_normal, mode='fan_out', relu),
# pre-laid-out for the kernels above (no runtime reshapes / transposes).
# ---------------------------------------------------------------------------
def _kaiming_fan_out(key, shape):
    if len(shape) == 4:                      # conv: (O, C, kh, kw)
        fan_out = shape[0] * shape[2] * shape[3]
    else:                                    # linear: (out, in)
        fan_out = shape[0]
    std = (2.0 / fan_out) ** 0.5
    return std * jax.random.normal(key, shape, dtype=jnp.float32)


def _bias_uniform(key, fan_in, n):
    bound = 1.0 / (fan_in ** 0.5)
    return jax.random.uniform(key, (1, n), jnp.float32, -bound, bound)


def _conv_w_to_matmul(w):
    """torch (O, C, kh, kw) -> im2col layout (kh*kw*C, O), bf16."""
    O, C, kh, kw = w.shape
    return w.transpose(2, 3, 1, 0).reshape(kh * kw * C, O).astype(jnp.bfloat16)


def init_params(key, input_shape=(4, 84, 84)):
    c_in, h, w = input_shape
    ks = jax.random.split(key, 14)

    def out_sz(n, k, s):
        return (n - k) // s + 1

    h1, w1 = out_sz(h, 8, 4), out_sz(w, 8, 4)
    h2, w2 = out_sz(h1, 4, 2), out_sz(w1, 4, 2)
    h3, w3 = out_sz(h2, 3, 2), out_sz(w2, 3, 2)
    conv_out = 64 * h3 * w3                  # 1024 for 84x84 input

    # torch-layout weights (kaiming fan_out), then re-laid out once, host-side.
    c1 = _kaiming_fan_out(ks[0], (32, c_in, 8, 8))
    c2 = _kaiming_fan_out(ks[2], (64, 32, 4, 4))
    c3 = _kaiming_fan_out(ks[4], (64, 64, 3, 3))
    f1 = _kaiming_fan_out(ks[6], (512, conv_out))
    f2 = _kaiming_fan_out(ks[8], (512, 512))
    sw = _kaiming_fan_out(ks[10], (1, 512))
    bw = _kaiming_fan_out(ks[12], (2, 512))

    # fc1 consumes the NHWC flatten (h, w, c); permute its torch (c, h, w)
    # input ordering so the math matches torch exactly.
    f1_nhwc = (f1.reshape(512, 64, h3, w3)
                 .transpose(2, 3, 1, 0)
                 .reshape(conv_out, 512))

    return {
        "conv1_w": _conv_w_to_matmul(c1),
        "conv1_b": _bias_uniform(ks[1], c_in * 8 * 8, 32),
        "conv2_w": _conv_w_to_matmul(c2),
        "conv2_b": _bias_uniform(ks[3], 32 * 4 * 4, 64),
        "conv3_w": _conv_w_to_matmul(c3),
        "conv3_b": _bias_uniform(ks[5], 64 * 3 * 3, 64),
        "fc1_w": f1_nhwc.astype(jnp.bfloat16),
        "fc1_b": _bias_uniform(ks[7], conv_out, 512),
        "fc2_w": f2.T.astype(jnp.bfloat16),
        "fc2_b": _bias_uniform(ks[9], 512, 512),
        # Heads merged: column 0 = steering, columns 1:3 = brake_throttle.
        "head_w": jnp.concatenate([sw.T, bw.T], axis=1).astype(jnp.bfloat16),
        "head_b": jnp.concatenate(
            [_bias_uniform(ks[11], 512, 1), _bias_uniform(ks[13], 512, 2)],
            axis=1),
    }


# ---------------------------------------------------------------------------
# Forward pass (mirrors CNN.forward)
# ---------------------------------------------------------------------------
@jax.jit
def cnn_forward(x, params):
    # x: (B, C, H, W) f32 (torch NCHW convention) -> one cast+transpose to NHWC.
    x = x.astype(jnp.bfloat16).transpose(0, 2, 3, 1)
    B = x.shape[0]
    x = conv2d_relu_nhwc(x, params["conv1_w"], params["conv1_b"], 4, 8,
                         m_tiles=2)
    x = conv2d_relu_nhwc(x, params["conv2_w"], params["conv2_b"], 2, 4)
    x = conv2d_relu_nhwc(x, params["conv3_w"], params["conv3_b"], 2, 3)
    flat = x.reshape(B, -1)                  # NHWC flatten (fc1_w is permuted to match)
    out = fc_heads(flat, params["fc1_w"], params["fc1_b"],
                   params["fc2_w"], params["fc2_b"],
                   params["head_w"], params["head_b"])
    steering = out[:, 0:1]
    brake_throttle = out[:, 1:3]
    return steering, brake_throttle


if __name__ == "__main__":
    key = jax.random.PRNGKey(0)
    k_param, k_x = jax.random.split(key)
    params = init_params(k_param, input_shape=(4, 84, 84))
    # batch=2, NCHW input consistent with the module's default (4, 84, 84).
    x = jax.random.normal(k_x, (2, 4, 84, 84), dtype=jnp.float32)

    steering, brake_throttle = cnn_forward(x, params)
    jax.block_until_ready((steering, brake_throttle))

    assert steering.shape == (2, 1) and brake_throttle.shape == (2, 2)
    print("KERNEL_OK")
</pallas_src>

<mosaic_0001>
module attributes {stable_mosaic.version = 11 : i64} {
  func.func @_conv_mm_kernel(%arg0: i32, %arg1: memref<400x256xbf16, #tpu.memory_space<vmem>>, %arg2: memref<256x32xbf16, #tpu.memory_space<vmem>>, %arg3: memref<1x32xf32, #tpu.memory_space<vmem>>, %arg4: memref<400x32xbf16, #tpu.memory_space<vmem>>) attributes {dimension_semantics = [#tpu.dimension_semantics<parallel>], iteration_bounds = array<i64: 2>, scalar_prefetch = 0 : i64, scratch_operands = 0 : i64, tpu.core_type = #tpu.core_type<tc>, window_params = [{transform_indices = @transform_0, window_bounds = array<i64: 400, 256>}, {pipeline_mode = #tpu.pipeline_mode<synchronous>, transform_indices = @transform_1, window_bounds = array<i64: 256, 32>}, {pipeline_mode = #tpu.pipeline_mode<synchronous>, transform_indices = @transform_2, window_bounds = array<i64: 1, 32>}, {transform_indices = @transform_3, window_bounds = array<i64: 400, 32>}]} {
    %c0 = arith.constant 0 : index
    %c0_0 = arith.constant 0 : index
    %0 = vector.load %arg1[%c0, %c0_0] : memref<400x256xbf16, #tpu.memory_space<vmem>>, vector<400x256xbf16>
    %c0_1 = arith.constant 0 : index
    %c0_2 = arith.constant 0 : index
    %1 = vector.load %arg2[%c0_1, %c0_2] : memref<256x32xbf16, #tpu.memory_space<vmem>>, vector<256x32xbf16>
    %cst = arith.constant dense<0.000000e+00> : vector<400x32xf32>
    %2 = tpu.matmul %0, %1, %cst {dimension_numbers = #tpu.dot_dimension_numbers<[1], [0], [0], [1], [0, 0, 1, 1], [], []>} : vector<400x256xbf16>, vector<256x32xbf16>, vector<400x32xf32> -> vector<400x32xf32>
    %c0_3 = arith.constant 0 : index
    %c0_4 = arith.constant 0 : index
    %3 = vector.load %arg3[%c0_3, %c0_4] : memref<1x32xf32, #tpu.memory_space<vmem>>, vector<1x32xf32>
    %4 = vector.broadcast %3 : vector<1x32xf32> to vector<400x32xf32>
    %5 = arith.addf %2, %4 : vector<400x32xf32>
    %cst_5 = arith.constant 0.000000e+00 : f32
    %6 = vector.broadcast %cst_5 : f32 to vector<400x32xf32>
    %7 = arith.maximumf %5, %6 : vector<400x32xf32>
    %8 = arith.truncf %7 : vector<400x32xf32> to vector<400x32xbf16>
    %c0_6 = arith.constant 0 : index
    %c0_7 = arith.constant 0 : index
    %9 = vector.load %arg4[%c0_6, %c0_7] : memref<400x32xbf16, #tpu.memory_space<vmem>>, vector<400x32xbf16>
    tpu.vector_store %arg4[%c0_6, %c0_7], %8 {strides = array<i32>} : memref<400x32xbf16, #tpu.memory_space<vmem>>, vector<400x32xbf16>,
    return
  }
  func.func @transform_0(%arg0: i32) -> (i32, i32) {
    %c0_i32 = arith.constant 0 : i32
    %c0_i32_0 = arith.constant 0 : i32
    return %arg0, %c0_i32 : i32, i32
  }
  func.func @transform_1(%arg0: i32) -> (i32, i32) {
    %c0_i32 = arith.constant 0 : i32
    %c0_i32_0 = arith.constant 0 : i32
    %c0_i32_1 = arith.constant 0 : i32
    return %c0_i32, %c0_i32_0 : i32, i32
  }
  func.func @transform_2(%arg0: i32) -> (i32, i32) {
    %c0_i32 = arith.constant 0 : i32
    %c0_i32_0 = arith.constant 0 : i32
    %c0_i32_1 = arith.constant 0 : i32
    return %c0_i32, %c0_i32_0 : i32, i32
  }
  func.func @transform_3(%arg0: i32) -> (i32, i32) {
    %c0_i32 = arith.constant 0 : i32
    %c0_i32_0 = arith.constant 0 : i32
    return %arg0, %c0_i32 : i32, i32
  }
}

module attributes {stable_mosaic.version = 11 : i64} {
  func.func @_conv_mm_kernel(%arg0: i32, %arg1: memref<162x512xbf16, #tpu.memory_space<vmem>>, %arg2: memref<512x64xbf16, #tpu.memory_space<vmem>>, %arg3: memref<1x64xf32, #tpu.memory_space<vmem>>, %arg4: memref<162x64xbf16, #tpu.memory_space<vmem>>) attributes {dimension_semantics = [#tpu.dimension_semantics<parallel>], iteration_bounds = array<i64: 1>, scalar_prefetch = 0 : i64, scratch_operands = 0 : i64, tpu.core_type = #tpu.core_type<tc>, window_params = [{transform_indices = @transform_0, window_bounds = array<i64: 162, 512>}, {pipeline_mode = #tpu.pipeline_mode<synchronous>, transform_indices = @transform_1, window_bounds = array<i64: 512, 64>}, {pipeline_mode = #tpu.pipeline_mode<synchronous>, transform_indices = @transform_2, window_bounds = array<i64: 1, 64>}, {transform_indices = @transform_3, window_bounds = array<i64: 162, 64>}]} {
    %c0 = arith.constant 0 : index
    %c0_0 = arith.constant 0 : index
    %0 = vector.load %arg1[%c0, %c0_0] : memref<162x512xbf16, #tpu.memory_space<vmem>>, vector<162x512xbf16>
    %c0_1 = arith.constant 0 : index
    %c0_2 = arith.constant 0 : index
    %1 = vector.load %arg2[%c0_1, %c0_2] : memref<512x64xbf16, #tpu.memory_space<vmem>>, vector<512x64xbf16>
    %cst = arith.constant dense<0.000000e+00> : vector<162x64xf32>
    %2 = tpu.matmul %0, %1, %cst {dimension_numbers = #tpu.dot_dimension_numbers<[1], [0], [0], [1], [0, 0, 1, 1], [], []>} : vector<162x512xbf16>, vector<512x64xbf16>, vector<162x64xf32> -> vector<162x64xf32>
    %c0_3 = arith.constant 0 : index
    %c0_4 = arith.constant 0 : index
    %3 = vector.load %arg3[%c0_3, %c0_4] : memref<1x64xf32, #tpu.memory_space<vmem>>, vector<1x64xf32>
    %4 = vector.broadcast %3 : vector<1x64xf32> to vector<162x64xf32>
    %5 = arith.addf %2, %4 : vector<162x64xf32>
    %cst_5 = arith.constant 0.000000e+00 : f32
    %6 = vector.broadcast %cst_5 : f32 to vector<162x64xf32>
    %7 = arith.maximumf %5, %6 : vector<162x64xf32>
    %8 = arith.truncf %7 : vector<162x64xf32> to vector<162x64xbf16>
    %c0_6 = arith.constant 0 : index
    %c0_7 = arith.constant 0 : index
    %9 = vector.load %arg4[%c0_6, %c0_7] : memref<162x64xbf16, #tpu.memory_space<vmem>>, vector<162x64xbf16>
    tpu.vector_store %arg4[%c0_6, %c0_7], %8 {strides = array<i32>} : memref<162x64xbf16, #tpu.memory_space<vmem>>, vector<162x64xbf16>,
    return
  }
  func.func @transform_0(%arg0: i32) -> (i32, i32) {
    %c0_i32 = arith.constant 0 : i32
    %c0_i32_0 = arith.constant 0 : i32
    return %arg0, %c0_i32 : i32, i32
  }
  func.func @transform_1(%arg0: i32) -> (i32, i32) {
    %c0_i32 = arith.constant 0 : i32
    %c0_i32_0 = arith.constant 0 : i32
    %c0_i32_1 = arith.constant 0 : i32
    return %c0_i32, %c0_i32_0 : i32, i32
  }
  func.func @transform_2(%arg0: i32) -> (i32, i32) {
    %c0_i32 = arith.constant 0 : i32
    %c0_i32_0 = arith.constant 0 : i32
    %c0_i32_1 = arith.constant 0 : i32
    return %c0_i32, %c0_i32_0 : i32, i32
  }
  func.func @transform_3(%arg0: i32) -> (i32, i32) {
    %c0_i32 = arith.constant 0 : i32
    %c0_i32_0 = arith.constant 0 : i32
    return %arg0, %c0_i32 : i32, i32
  }
}

module attributes {stable_mosaic.version = 11 : i64} {
  func.func @_conv_mm_kernel(%arg0: i32, %arg1: memref<32x576xbf16, #tpu.memory_space<vmem>>, %arg2: memref<576x64xbf16, #tpu.memory_space<vmem>>, %arg3: memref<1x64xf32, #tpu.memory_space<vmem>>, %arg4: memref<32x64xbf16, #tpu.memory_space<vmem>>) attributes {dimension_semantics = [#tpu.dimension_semantics<parallel>], iteration_bounds = array<i64: 1>, scalar_prefetch = 0 : i64, scratch_operands = 0 : i64, tpu.core_type = #tpu.core_type<tc>, window_params = [{transform_indices = @transform_0, window_bounds = array<i64: 32, 576>}, {pipeline_mode = #tpu.pipeline_mode<synchronous>, transform_indices = @transform_1, window_bounds = array<i64: 576, 64>}, {pipeline_mode = #tpu.pipeline_mode<synchronous>, transform_indices = @transform_2, window_bounds = array<i64: 1, 64>}, {transform_indices = @transform_3, window_bounds = array<i64: 32, 64>}]} {
    %c0 = arith.constant 0 : index
    %c0_0 = arith.constant 0 : index
    %0 = vector.load %arg1[%c0, %c0_0] : memref<32x576xbf16, #tpu.memory_space<vmem>>, vector<32x576xbf16>
    %c0_1 = arith.constant 0 : index
    %c0_2 = arith.constant 0 : index
    %1 = vector.load %arg2[%c0_1, %c0_2] : memref<576x64xbf16, #tpu.memory_space<vmem>>, vector<576x64xbf16>
    %cst = arith.constant dense<0.000000e+00> : vector<32x64xf32>
    %2 = tpu.matmul %0, %1, %cst {dimension_numbers = #tpu.dot_dimension_numbers<[1], [0], [0], [1], [0, 0, 1, 1], [], []>} : vector<32x576xbf16>, vector<576x64xbf16>, vector<32x64xf32> -> vector<32x64xf32>
    %c0_3 = arith.constant 0 : index
    %c0_4 = arith.constant 0 : index
    %3 = vector.load %arg3[%c0_3, %c0_4] : memref<1x64xf32, #tpu.memory_space<vmem>>, vector<1x64xf32>
    %4 = vector.broadcast %3 : vector<1x64xf32> to vector<32x64xf32>
    %5 = arith.addf %2, %4 : vector<32x64xf32>
    %cst_5 = arith.constant 0.000000e+00 : f32
    %6 = vector.broadcast %cst_5 : f32 to vector<32x64xf32>
    %7 = arith.maximumf %5, %6 : vector<32x64xf32>
    %8 = arith.truncf %7 : vector<32x64xf32> to vector<32x64xbf16>
    %c0_6 = arith.constant 0 : index
    %c0_7 = arith.constant 0 : index
    %9 = vector.load %arg4[%c0_6, %c0_7] : memref<32x64xbf16, #tpu.memory_space<vmem>>, vector<32x64xbf16>
    tpu.vector_store %arg4[%c0_6, %c0_7], %8 {strides = array<i32>} : memref<32x64xbf16, #tpu.memory_space<vmem>>, vector<32x64xbf16>,
    return
  }
  func.func @transform_0(%arg0: i32) -> (i32, i32) {
    %c0_i32 = arith.constant 0 : i32
    %c0_i32_0 = arith.constant 0 : i32
    return %arg0, %c0_i32 : i32, i32
  }
  func.func @transform_1(%arg0: i32) -> (i32, i32) {
    %c0_i32 = arith.constant 0 : i32
    %c0_i32_0 = arith.constant 0 : i32
    %c0_i32_1 = arith.constant 0 : i32
    return %c0_i32, %c0_i32_0 : i32, i32
  }
  func.func @transform_2(%arg0: i32) -> (i32, i32) {
    %c0_i32 = arith.constant 0 : i32
    %c0_i32_0 = arith.constant 0 : i32
    %c0_i32_1 = arith.constant 0 : i32
    return %c0_i32, %c0_i32_0 : i32, i32
  }
  func.func @transform_3(%arg0: i32) -> (i32, i32) {
    %c0_i32 = arith.constant 0 : i32
    %c0_i32_0 = arith.constant 0 : i32
    return %arg0, %c0_i32 : i32, i32
  }
}

module attributes {stable_mosaic.version = 11 : i64} {
  func.func @_fc_head_kernel(%arg0: i32, %arg1: memref<2x1024xbf16, #tpu.memory_space<vmem>>, %arg2: memref<1024x512xbf16, #tpu.memory_space<vmem>>, %arg3: memref<1x512xf32, #tpu.memory_space<vmem>>, %arg4: memref<512x512xbf16, #tpu.memory_space<vmem>>, %arg5: memref<1x512xf32, #tpu.memory_space<vmem>>, %arg6: memref<512x3xbf16, #tpu.memory_space<vmem>>, %arg7: memref<1x3xf32, #tpu.memory_space<vmem>>, %arg8: memref<2x3xf32, #tpu.memory_space<vmem>>) attributes {dimension_semantics = [#tpu.dimension_semantics<arbitrary>], iteration_bounds = array<i64: 1>, scalar_prefetch = 0 : i64, scratch_operands = 0 : i64, tpu.core_type = #tpu.core_type<tc>, window_params = [{pipeline_mode = #tpu.pipeline_mode<synchronous>, transform_indices = @transform_0, window_bounds = array<i64: 2, 1024>}, {pipeline_mode = #tpu.pipeline_mode<synchronous>, transform_indices = @transform_1, window_bounds = array<i64: 1024, 512>}, {pipeline_mode = #tpu.pipeline_mode<synchronous>, transform_indices = @transform_2, window_bounds = array<i64: 1, 512>}, {pipeline_mode = #tpu.pipeline_mode<synchronous>, transform_indices = @transform_3, window_bounds = array<i64: 512, 512>}, {pipeline_mode = #tpu.pipeline_mode<synchronous>, transform_indices = @transform_4, window_bounds = array<i64: 1, 512>}, {pipeline_mode = #tpu.pipeline_mode<synchronous>, transform_indices = @transform_5, window_bounds = array<i64: 512, 3>}, {pipeline_mode = #tpu.pipeline_mode<synchronous>, transform_indices = @transform_6, window_bounds = array<i64: 1, 3>}, {pipeline_mode = #tpu.pipeline_mode<synchronous>, transform_indices = @transform_7, window_bounds = array<i64: 2, 3>}]} {
    %c0 = arith.constant 0 : index
    %c0_0 = arith.constant 0 : index
    %0 = vector.load %arg1[%c0, %c0_0] : memref<2x1024xbf16, #tpu.memory_space<vmem>>, vector<2x1024xbf16>
    %c0_1 = arith.constant 0 : index
    %c0_2 = arith.constant 0 : index
    %1 = vector.load %arg2[%c0_1, %c0_2] : memref<1024x512xbf16, #tpu.memory_space<vmem>>, vector<1024x512xbf16>
    %cst = arith.constant dense<0.000000e+00> : vector<2x512xf32>
    %2 = tpu.matmul %0, %1, %cst {dimension_numbers = #tpu.dot_dimension_numbers<[1], [0], [0], [1], [0, 0, 1, 1], [], []>} : vector<2x1024xbf16>, vector<1024x512xbf16>, vector<2x512xf32> -> vector<2x512xf32>
    %c0_3 = arith.constant 0 : index
    %c0_4 = arith.constant 0 : index
    %3 = vector.load %arg3[%c0_3, %c0_4] : memref<1x512xf32, #tpu.memory_space<vmem>>, vector<1x512xf32>
    %4 = vector.broadcast %3 : vector<1x512xf32> to vector<2x512xf32>
    %5 = arith.addf %2, %4 : vector<2x512xf32>
    %cst_5 = arith.constant 0.000000e+00 : f32
    %6 = vector.broadcast %cst_5 : f32 to vector<2x512xf32>
    %7 = arith.maximumf %5, %6 : vector<2x512xf32>
    %8 = arith.truncf %7 : vector<2x512xf32> to vector<2x512xbf16>
    %c0_6 = arith.constant 0 : index
    %c0_7 = arith.constant 0 : index
    %9 = vector.load %arg4[%c0_6, %c0_7] : memref<512x512xbf16, #tpu.memory_space<vmem>>, vector<512x512xbf16>
    %cst_8 = arith.constant dense<0.000000e+00> : vector<2x512xf32>
    %10 = tpu.matmul %8, %9, %cst_8 {dimension_numbers = #tpu.dot_dimension_numbers<[1], [0], [0], [1], [0, 0, 1, 1], [], []>} : vector<2x512xbf16>, vector<512x512xbf16>, vector<2x512xf32> -> vector<2x512xf32>
    %c0_9 = arith.constant 0 : index
    %c0_10 = arith.constant 0 : index
    %11 = vector.load %arg5[%c0_9, %c0_10] : memref<1x512xf32, #tpu.memory_space<vmem>>, vector<1x512xf32>
    %12 = vector.broadcast %11 : vector<1x512xf32> to vector<2x512xf32>
    %13 = arith.addf %10, %12 : vector<2x512xf32>
    %cst_11 = arith.constant 0.000000e+00 : f32
    %14 = vector.broadcast %cst_11 : f32 to vector<2x512xf32>
    %15 = arith.maximumf %13, %14 : vector<2x512xf32>
    %16 = arith.truncf %15 : vector<2x512xf32> to vector<2x512xbf16>
    %c0_12 = arith.constant 0 : index
    %c0_13 = arith.constant 0 : index
    %17 = vector.load %arg6[%c0_12, %c0_13] : memref<512x3xbf16, #tpu.memory_space<vmem>>, vector<512x3xbf16>
    %cst_14 = arith.constant dense<0.000000e+00> : vector<2x3xf32>
    %18 = tpu.matmul %16, %17, %cst_14 {dimension_numbers = #tpu.dot_dimension_numbers<[1], [0], [0], [1], [0, 0, 1, 1], [], []>} : vector<2x512xbf16>, vector<512x3xbf16>, vector<2x3xf32> -> vector<2x3xf32>
    %c0_15 = arith.constant 0 : index
    %c0_16 = arith.constant 0 : index
    %19 = vector.load %arg7[%c0_15, %c0_16] : memref<1x3xf32, #tpu.memory_space<vmem>>, vector<1x3xf32>
    %20 = vector.broadcast %19 : vector<1x3xf32> to vector<2x3xf32>
    %21 = arith.addf %18, %20 : vector<2x3xf32>
    %c0_17 = arith.constant 0 : index
    %c0_18 = arith.constant 0 : index
    %22 = vector.load %arg8[%c0_17, %c0_18] : memref<2x3xf32, #tpu.memory_space<vmem>>, vector<2x3xf32>
    tpu.vector_store %arg8[%c0_17, %c0_18], %21 {strides = array<i32>} : memref<2x3xf32, #tpu.memory_space<vmem>>, vector<2x3xf32>,
    return
  }
  func.func @transform_0(%arg0: i32) -> (i32, i32) {
    %c0_i32 = arith.constant 0 : i32
    %c0_i32_0 = arith.constant 0 : i32
    %c0_i32_1 = arith.constant 0 : i32
    return %c0_i32, %c0_i32_0 : i32, i32
  }
  func.func @transform_1(%arg0: i32) -> (i32, i32) {
    %c0_i32 = arith.constant 0 : i32
    %c0_i32_0 = arith.constant 0 : i32
    %c0_i32_1 = arith.constant 0 : i32
    return %c0_i32, %c0_i32_0 : i32, i32
  }
  func.func @transform_2(%arg0: i32) -> (i32, i32) {
    %c0_i32 = arith.constant 0 : i32
    %c0_i32_0 = arith.constant 0 : i32
    %c0_i32_1 = arith.constant 0 : i32
    return %c0_i32, %c0_i32_0 : i32, i32
  }
  func.func @transform_3(%arg0: i32) -> (i32, i32) {
    %c0_i32 = arith.constant 0 : i32
    %c0_i32_0 = arith.constant 0 : i32
    %c0_i32_1 = arith.constant 0 : i32
    return %c0_i32, %c0_i32_0 : i32, i32
  }
  func.func @transform_4(%arg0: i32) -> (i32, i32) {
    %c0_i32 = arith.constant 0 : i32
    %c0_i32_0 = arith.constant 0 : i32
    %c0_i32_1 = arith.constant 0 : i32
    return %c0_i32, %c0_i32_0 : i32, i32
  }
  func.func @transform_5(%arg0: i32) -> (i32, i32) {
    %c0_i32 = arith.constant 0 : i32
    %c0_i32_0 = arith.constant 0 : i32
    %c0_i32_1 = arith.constant 0 : i32
    return %c0_i32, %c0_i32_0 : i32, i32
  }
  func.func @transform_6(%arg0: i32) -> (i32, i32) {
    %c0_i32 = arith.constant 0 : i32
    %c0_i32_0 = arith.constant 0 : i32
    %c0_i32_1 = arith.constant 0 : i32
    return %c0_i32, %c0_i32_0 : i32, i32
  }
  func.func @transform_7(%arg0: i32) -> (i32, i32) {
    %c0_i32 = arith.constant 0 : i32
    %c0_i32_0 = arith.constant 0 : i32
    %c0_i32_1 = arith.constant 0 : i32
    return %c0_i32, %c0_i32_0 : i32, i32
  }
}

</mosaic_0001>

<bundles_post_ra>
// kernel: cnn_forward.4
= control target key start
LH: loop header
LB: loop body
LE: loop exit
PB: predicated region body
PF: predicated region fallthrough
CT: control target
= control target key end

     0   :  { %s1542_s12 = smov 0   ;;  %s1852_s0 = inlined_call_operand.vmem [shape: bf16[800,256], index: 0, kind: input, shape index: {}]   ;;  %s1853_s1 = inlined_call_operand.vmem [shape: bf16[256,32], index: 1, kind: input, shape index: {}]   ;;  %s1854_s2 = inlined_call_operand.vmem [shape: f32[1,32], index: 2, kind: input, shape index: {}]   ;;  %s1855_s3 = inlined_call_operand.vmem [shape: bf16[800,32], index: 3, kind: output, shape index: {}]  }
   0x1 LB: > { %s1203_s13 = sadd.s32 4294967295, %s1519_s12   ;;  %p1207_p0 = scmp.ge.s32.totalorder %s1519_s12, 1  ;;  %s1519_s12 = sphi %s1542_s12, %s13_s12  }
   0x2   : > { %p139_p1 = scmp.lt.s32.totalorder %s1519_s12, 3 }
   0x4   : > { %p140_p2 = pnand %p1207_p0, %p139_p1 }
   0x5   : > { %v1422_v0 = vld [vmem:[%s1853_s1] sm:$0xff] (!%p140_p2)   ;;  %v1521_v1 = vmov (!%p140_p2), 0   ;;  %s164_s16 = smul.u32 (!%p140_p2), 50, %s1203_s13  ;;  %v1423_v2 = vld [vmem:[%s1853_s1 + $0x8] sm:$0xff] (!%p140_p2)   ;;  %v1424_v3 = vld [vmem:[%s1853_s1 + $0x10] sm:$0xff] (!%p140_p2)   ;;  %vm1096_vm0 = vcmask (!%p140_p2), 257024  }
   0x6   : > { %143 = sbr.rel (%p140_p2) target bundleno = 387 (0x183), region = 32  ;;  %613 = vmatprep.subr.bf16.mxu0 (!%p140_p2), %v1521_v1  ;;  %1381 = vmatprep.subr.bf16.mxu1 (!%p140_p2), %v1521_v1  ;;  %v1425_v4 = vld [vmem:[%s1853_s1 + $0x18] sm:$0xff] (!%p140_p2)   ;;  %v1426_v5 = vld [vmem:[%s1853_s1 + $0x20] sm:$0xff] (!%p140_p2)   ;;  %v1427_v7 = vld [vmem:[%s1853_s1 + $0x28] sm:$0xff] (!%p140_p2)  }
   0x7   : > { %614 = vmatpush1.bf16.msra.mxu0 (!%p140_p2), %v1422_v0  ;;  %1397 = vmatpush1.bf16.msra.mxu1 (!%p140_p2), %v1422_v0  ;;  %p165_p3 = scmp.lt.s32.totalorder (!%p140_p2), %s164_s16, 99  ;;  %v1428_v9 = vld [vmem:[%s1853_s1 + $0x30] sm:$0xff] (!%p140_p2)   ;;  %v1429_v10 = vld [vmem:[%s1853_s1 + $0x38] sm:$0xff] (!%p140_p2)   ;;  %v1430_v11 = vld [vmem:[%s1853_s1 + $0x40] sm:$0xff] (!%p140_p2)  }
   0x8   : > { %615 = vmatprep.subr.bf16.mxu0 (!%p140_p2), %v1521_v1  ;;  %1382 = vmatprep.subr.bf16.mxu1 (!%p140_p2), %v1521_v1  ;;  %v1431_v12 = vld [vmem:[%s1853_s1 + $0x48] sm:$0xff] (!%p140_p2)   ;;  %v1432_v13 = vld [vmem:[%s1853_s1 + $0x50] sm:$0xff] (!%p140_p2)   ;;  %v1433_v14 = vld [vmem:[%s1853_s1 + $0x58] sm:$0xff] (!%p140_p2)  }
   0x9   : > { %v1434_v15 = vld [vmem:[%s1853_s1 + $0x60] sm:$0xff] (!%p140_p2)   ;;  %v1435_v16 = vld [vmem:[%s1853_s1 + $0x68] sm:$0xff] (!%p140_p2)   ;;  %v1436_v17 = vld [vmem:[%s1853_s1 + $0x70] sm:$0xff] (!%p140_p2)  }
   0xa   : > { %v1437_v18 = vld [vmem:[%s1853_s1 + $0x78] sm:$0xff] (!%p140_p2)  }
   0xb   : > { %616 = vmatpush1.bf16.msra.mxu0 (!%p140_p2), %v1423_v2  ;;  %1398 = vmatpush1.bf16.msra.mxu1 (!%p140_p2), %v1423_v2 }
   0xc   : > { %617 = vmatprep.subr.bf16.mxu0 (!%p140_p2), %v1521_v1  ;;  %1383 = vmatprep.subr.bf16.mxu1 (!%p140_p2), %v1521_v1 }
   0xd   : > { %s1857_s16 = smov (!%p165_p3, %s164_s16), 99 }
   0xe   : > { %s1330_s23 = sshll.u32 %s1857_s16, 3  ;;  %s1210_s29 = sshll.u32 %s1857_s16, 2 }
   0xf   : > { %618 = vmatpush1.bf16.msra.mxu0 %v1424_v3  ;;  %1399 = vmatpush1.bf16.msra.mxu1 %v1424_v3  ;;  %s1579_s28 = scalar_lea.vmem %s1852_s0, %s1330_s23  ;;  %v1691_v3 = vld [vmem:[%s1854_s2] ss:$0 sm:$0xff]  ;;  %s1701_s16 = scalar_lea.vmem %s1855_s3, %s1210_s29 }
  0x10   : > { %619 = vmatprep.subr.bf16.mxu0 %v1521_v1  ;;  %1384 = vmatprep.subr.bf16.mxu1 %v1521_v1  ;;  %v1440_v6 = vld [vmem:[%s1579_s28 + $0x4] ss:$8 sps:$4 sm:$0xff]   ;;  %v1443_v8 = vld [vmem:[%s1579_s28 + $0xd4] ss:$8 sps:$4 sm:$0xff]   ;;  %v1438_v19 = vld [vmem:[%s1579_s28] ss:$8 sps:$4 sm:$0xff]  }
  0x11   : > { %645 = vmatprep.mubr.bf16.mxu0 %v1440_v6  ;;  %749 = vmatprep.mubr.bf16.mxu1 %v1443_v8  ;;  %v1441_v20 = vld [vmem:[%s1579_s28 + $0xd0] ss:$8 sps:$4 sm:$0xff]   ;;  %v1444_v21 = vld [vmem:[%s1579_s28 + $0x14] ss:$8 sps:$4 sm:$0xff]   ;;  %v1447_v22 = vld [vmem:[%s1579_s28 + $0xe4] ss:$8 sps:$4 sm:$0xff]  }
  0x12   : > { %v1446_v23 = vld [vmem:[%s1579_s28 + $0x10] ss:$8 sps:$4 sm:$0xff]   ;;  %v1449_v24 = vld [vmem:[%s1579_s28 + $0xe0] ss:$8 sps:$4 sm:$0xff]   ;;  %v1450_v25 = vld [vmem:[%s1579_s28 + $0x24] ss:$8 sps:$4 sm:$0xff]  }
  0x13   : > { %620 = vmatpush1.bf16.msra.mxu0 %v1425_v4  ;;  %1400 = vmatpush1.bf16.msra.mxu1 %v1425_v4  ;;  %v1453_v26 = vld [vmem:[%s1579_s28 + $0xf4] ss:$8 sps:$4 sm:$0xff]   ;;  %v1452_v27 = vld [vmem:[%s1579_s28 + $0x20] ss:$8 sps:$4 sm:$0xff]   ;;  %v1455_v28 = vld [vmem:[%s1579_s28 + $0xf0] ss:$8 sps:$4 sm:$0xff]  }
  0x14   : > { %621 = vmatprep.subr.bf16.mxu0 %v1521_v1  ;;  %1385 = vmatprep.subr.bf16.mxu1 %v1521_v1  ;;  %v1456_v29 = vld [vmem:[%s1579_s28 + $0x34] ss:$8 sps:$4 sm:$0xff]   ;;  %v1459_v30 = vld [vmem:[%s1579_s28 + $0x104] ss:$8 sps:$4 sm:$0xff]   ;;  %v1458_v31 = vld [vmem:[%s1579_s28 + $0x30] ss:$8 sps:$4 sm:$0xff]  }
  0x15   : > { %v1461_v32 = vld [vmem:[%s1579_s28 + $0x100] ss:$8 sps:$4 sm:$0xff]   ;;  %v1462_v33 = vld [vmem:[%s1579_s28 + $0x44] ss:$8 sps:$4 sm:$0xff]   ;;  %v1465_v34 = vld [vmem:[%s1579_s28 + $0x114] ss:$8 sps:$4 sm:$0xff]  }
  0x16   : > { %v1464_v35 = vld [vmem:[%s1579_s28 + $0x40] ss:$8 sps:$4 sm:$0xff]   ;;  %v1467_v36 = vld [vmem:[%s1579_s28 + $0x110] ss:$8 sps:$4 sm:$0xff]   ;;  %v1468_v37 = vld [vmem:[%s1579_s28 + $0x54] ss:$8 sps:$4 sm:$0xff]  }
  0x17   : > { %622 = vmatpush1.bf16.msra.mxu0 %v1426_v5  ;;  %1401 = vmatpush1.bf16.msra.mxu1 %v1426_v5  ;;  %v1471_v38 = vld [vmem:[%s1579_s28 + $0x124] ss:$8 sps:$4 sm:$0xff]   ;;  %v1470_v39 = vld [vmem:[%s1579_s28 + $0x50] ss:$8 sps:$4 sm:$0xff]   ;;  %v1473_v40 = vld [vmem:[%s1579_s28 + $0x120] ss:$8 sps:$4 sm:$0xff]  }
  0x18   : > { %623 = vmatprep.subr.bf16.mxu0 %v1521_v1  ;;  %1386 = vmatprep.subr.bf16.mxu1 %v1521_v1  ;;  %v1474_v41 = vld [vmem:[%s1579_s28 + $0x64] ss:$8 sps:$4 sm:$0xff]   ;;  %v1477_v42 = vld [vmem:[%s1579_s28 + $0x134] ss:$8 sps:$4 sm:$0xff]   ;;  %v1476_v43 = vld [vmem:[%s1579_s28 + $0x60] ss:$8 sps:$4 sm:$0xff]  }
  0x19   : > { %v1479_v44 = vld [vmem:[%s1579_s28 + $0x130] ss:$8 sps:$4 sm:$0xff]   ;;  %v1480_v45 = vld [vmem:[%s1579_s28 + $0x74] ss:$8 sps:$4 sm:$0xff]   ;;  %v1483_v46 = vld [vmem:[%s1579_s28 + $0x144] ss:$8 sps:$4 sm:$0xff]  }
  0x1a   : > { %v1482_v47 = vld [vmem:[%s1579_s28 + $0x70] ss:$8 sps:$4 sm:$0xff]   ;;  %v1485_v48 = vld [vmem:[%s1579_s28 + $0x140] ss:$8 sps:$4 sm:$0xff]   ;;  %v1486_v49 = vld [vmem:[%s1579_s28 + $0x84] ss:$8 sps:$4 sm:$0xff]  }
  0x1b   : > { %624 = vmatpush1.bf16.msra.mxu0 %v1427_v7  ;;  %1402 = vmatpush1.bf16.msra.mxu1 %v1427_v7  ;;  %v1489_v50 = vld [vmem:[%s1579_s28 + $0x154] ss:$8 sps:$4 sm:$0xff]   ;;  %v1488_v51 = vld [vmem:[%s1579_s28 + $0x80] ss:$8 sps:$4 sm:$0xff]   ;;  %v1491_v52 = vld [vmem:[%s1579_s28 + $0x150] ss:$8 sps:$4 sm:$0xff]  }
  0x1c   : > { %625 = vmatprep.subr.bf16.mxu0 %v1521_v1  ;;  %1387 = vmatprep.subr.bf16.mxu1 %v1521_v1  ;;  %v1492_v53 = vld [vmem:[%s1579_s28 + $0x94] ss:$8 sps:$4 sm:$0xff]   ;;  %v1495_v54 = vld [vmem:[%s1579_s28 + $0x164] ss:$8 sps:$4 sm:$0xff]   ;;  %v1494_v55 = vld [vmem:[%s1579_s28 + $0x90] ss:$8 sps:$4 sm:$0xff]  }
  0x1d   : > { %v1497_v56 = vld [vmem:[%s1579_s28 + $0x160] ss:$8 sps:$4 sm:$0xff]   ;;  %v1498_v57 = vld [vmem:[%s1579_s28 + $0xa4] ss:$8 sps:$4 sm:$0xff]   ;;  %v1501_v58 = vld [vmem:[%s1579_s28 + $0x174] ss:$8 sps:$4 sm:$0xff]  }
  0x1e   : > { %v1500_v59 = vld [vmem:[%s1579_s28 + $0xa0] ss:$8 sps:$4 sm:$0xff]   ;;  %v1503_v60 = vld [vmem:[%s1579_s28 + $0x170] ss:$8 sps:$4 sm:$0xff]   ;;  %v1504_v61 = vld [vmem:[%s1579_s28 + $0xb4] ss:$8 sps:$4 sm:$0xff]  }
  0x1f   : > { %626 = vmatpush1.bf16.msra.mxu0 %v1428_v9  ;;  %1403 = vmatpush1.bf16.msra.mxu1 %v1428_v9  ;;  %v1507_v62 = vld [vmem:[%s1579_s28 + $0x184] ss:$8 sps:$4 sm:$0xff]   ;;  %v1506_v63 = vld [vmem:[%s1579_s28 + $0xb0] ss:$8 sps:$4 sm:$0xff]   ;;  %v1509_v0 = vld [vmem:[%s1579_s28 + $0x180] ss:$8 sps:$4 sm:$0xff]  }
  0x20   : > { %627 = vmatprep.subr.bf16.mxu0 %v1521_v1  ;;  %1388 = vmatprep.subr.bf16.mxu1 %v1521_v1  ;;  %v1512_v2 = vld [vmem:[%s1579_s28 + $0xc0] ss:$8 sps:$4 sm:$0xff]  }
  0x23   : > { %628 = vmatpush1.bf16.msra.mxu0 %v1429_v10  ;;  %1404 = vmatpush1.bf16.msra.mxu1 %v1429_v10 }
  0x24   : > { %629 = vmatprep.subr.bf16.mxu0 %v1521_v1  ;;  %1389 = vmatprep.subr.bf16.mxu1 %v1521_v1 }
  0x27   : > { %630 = vmatpush1.bf16.msra.mxu0 %v1430_v11  ;;  %1405 = vmatpush1.bf16.msra.mxu1 %v1430_v11 }
  0x28   : > { %631 = vmatprep.subr.bf16.mxu0 %v1521_v1  ;;  %1390 = vmatprep.subr.bf16.mxu1 %v1521_v1 }
  0x2b   : > { %632 = vmatpush1.bf16.msra.mxu0 %v1431_v12  ;;  %1406 = vmatpush1.bf16.msra.mxu1 %v1431_v12 }
  0x2c   : > { %633 = vmatprep.subr.bf16.mxu0 %v1521_v1  ;;  %1391 = vmatprep.subr.bf16.mxu1 %v1521_v1 }
  0x2f   : > { %634 = vmatpush1.bf16.msra.mxu0 %v1432_v13  ;;  %1407 = vmatpush1.bf16.msra.mxu1 %v1432_v13 }
  0x30   : > { %635 = vmatprep.subr.bf16.mxu0 %v1521_v1  ;;  %1392 = vmatprep.subr.bf16.mxu1 %v1521_v1 }
  0x33   : > { %636 = vmatpush1.bf16.msra.mxu0 %v1433_v14  ;;  %1408 = vmatpush1.bf16.msra.mxu1 %v1433_v14 }
  0x34   : > { %637 = vmatprep.subr.bf16.mxu0 %v1521_v1  ;;  %1393 = vmatprep.subr.bf16.mxu1 %v1521_v1 }
  0x37   : > { %638 = vmatpush1.bf16.msra.mxu0 %v1434_v15  ;;  %1409 = vmatpush1.bf16.msra.mxu1 %v1434_v15 }
  0x38   : > { %639 = vmatprep.subr.bf16.mxu0 %v1521_v1  ;;  %1394 = vmatprep.subr.bf16.mxu1 %v1521_v1 }
  0x3b   : > { %640 = vmatpush1.bf16.msra.mxu0 %v1435_v16  ;;  %1410 = vmatpush1.bf16.msra.mxu1 %v1435_v16 }
  0x3c   : > { %641 = vmatprep.subr.bf16.mxu0 %v1521_v1  ;;  %1395 = vmatprep.subr.bf16.mxu1 %v1521_v1 }
  0x3f   : > { %642 = vmatpush1.bf16.msra.mxu0 %v1436_v17  ;;  %1411 = vmatpush1.bf16.msra.mxu1 %v1436_v17 }
  0x40   : > { %643 = vmatprep.subr.bf16.mxu0 %v1521_v1  ;;  %1396 = vmatprep.subr.bf16.mxu1 %v1521_v1  ;;  %v1510_v1 = vld [vmem:[%s1579_s28 + $0xc4] ss:$8 sps:$4 sm:$0xff]  }
  0x43   : > { %644 = vmatpush1.bf16.msra.mxu0 %v1437_v18  ;;  %1412 = vmatpush1.bf16.msra.mxu1 %v1437_v18 }
  0x46   : > { %646 = vmatmul.mubr.bf16.vlgmr.msra.gmra.mrb[0].mxu0 %v1438_v19  ;;  %750 = vmatmul.mubr.bf16.vlgmr.msra.gmra.mrb[0].mxu1 %v1441_v20 }
  0x47   : > { %653 = vmatprep.mubr.bf16.mxu0 %v1444_v21  ;;  %757 = vmatprep.mubr.bf16.mxu1 %v1447_v22 }
  0x4e   : > { %654 = vmatmul.mubr.bf16.gmra.mrb[4].mxu0 %v1446_v23  ;;  %758 = vmatmul.mubr.bf16.gmra.mrb[4].mxu1 %v1449_v24 }
  0x4f   : > { %661 = vmatprep.mubr.bf16.mxu0 %v1450_v25  ;;  %765 = vmatprep.mubr.bf16.mxu1 %v1453_v26 }
  0x56   : > { %662 = vmatmul.mubr.bf16.gmra.mrb[8].mxu0 %v1452_v27  ;;  %766 = vmatmul.mubr.bf16.gmra.mrb[8].mxu1 %v1455_v28 }
  0x57   : > { %669 = vmatprep.mubr.bf16.mxu0 %v1456_v29  ;;  %773 = vmatprep.mubr.bf16.mxu1 %v1459_v30 }
  0x5e   : > { %670 = vmatmul.mubr.bf16.gmra.mrb[12].mxu0 %v1458_v31  ;;  %774 = vmatmul.mubr.bf16.gmra.mrb[12].mxu1 %v1461_v32 }
  0x5f   : > { %677 = vmatprep.mubr.bf16.mxu0 %v1462_v33  ;;  %781 = vmatprep.mubr.bf16.mxu1 %v1465_v34 }
  0x66   : > { %678 = vmatmul.mubr.bf16.gmra.mrb[16].mxu0 %v1464_v35  ;;  %782 = vmatmul.mubr.bf16.gmra.mrb[16].mxu1 %v1467_v36 }
  0x67   : > { %685 = vmatprep.mubr.bf16.mxu0 %v1468_v37  ;;  %789 = vmatprep.mubr.bf16.mxu1 %v1471_v38 }
  0x6e   : > { %686 = vmatmul.mubr.bf16.gmra.mrb[20].mxu0 %v1470_v39  ;;  %790 = vmatmul.mubr.bf16.gmra.mrb[20].mxu1 %v1473_v40 }
  0x6f   : > { %693 = vmatprep.mubr.bf16.mxu0 %v1474_v41  ;;  %797 = vmatprep.mubr.bf16.mxu1 %v1477_v42 }
  0x76   : > { %694 = vmatmul.mubr.bf16.gmra.mrb[24].mxu0 %v1476_v43  ;;  %798 = vmatmul.mubr.bf16.gmra.mrb[24].mxu1 %v1479_v44 }
  0x77   : > { %701 = vmatprep.mubr.bf16.mxu0 %v1480_v45  ;;  %805 = vmatprep.mubr.bf16.mxu1 %v1483_v46 }
  0x7e   : > { %702 = vmatmul.mubr.bf16.gmra.mrb[28].mxu0 %v1482_v47  ;;  %806 = vmatmul.mubr.bf16.gmra.mrb[28].mxu1 %v1485_v48 }
  0x7f   : > { %709 = vmatprep.mubr.bf16.mxu0 %v1486_v49  ;;  %813 = vmatprep.mubr.bf16.mxu1 %v1489_v50 }
  0x86   : > { %710 = vmatmul.mubr.bf16.gmra.mrb[32].mxu0 %v1488_v51  ;;  %814 = vmatmul.mubr.bf16.gmra.mrb[32].mxu1 %v1491_v52 }
  0x87   : > { %717 = vmatprep.mubr.bf16.mxu0 %v1492_v53  ;;  %821 = vmatprep.mubr.bf16.mxu1 %v1495_v54 }
  0x8e   : > { %718 = vmatmul.mubr.bf16.gmra.mrb[36].mxu0 %v1494_v55  ;;  %822 = vmatmul.mubr.bf16.gmra.mrb[36].mxu1 %v1497_v56 }
  0x8f   : > { %725 = vmatprep.mubr.bf16.mxu0 %v1498_v57  ;;  %829 = vmatprep.mubr.bf16.mxu1 %v1501_v58 }
  0x96   : > { %726 = vmatmul.mubr.bf16.gmra.mrb[40].mxu0 %v1500_v59  ;;  %830 = vmatmul.mubr.bf16.gmra.mrb[40].mxu1 %v1503_v60 }
  0x97   : > { %733 = vmatprep.mubr.bf16.mxu0 %v1504_v61  ;;  %837 = vmatprep.mubr.bf16.mxu1 %v1507_v62 }
  0x9e   : > { %734 = vmatmul.mubr.bf16.gmra.mrb[44].mxu0 %v1506_v63  ;;  %838 = vmatmul.mubr.bf16.gmra.mrb[44].mxu1 %v1509_v0 }
  0x9f   : > { %741 = vmatprep.mubr.bf16.mxu0 %v1510_v1 }
  0xa6   : > { %742 = vmatmul.mubr.bf16.gmra.mrb[48].mxu0 %v1512_v2 }
 0x119   : > { %v647_v4 = vpop.f32.mrb[0].mxu0  ;;  %v751_v5 = vpop.f32.mrb[0].mxu1 }
 0x11a   : > { %v648_v6 = vadd.f32 %v1691_v3, %v647_v4  ;;  %v649_v7 = vpop.f32.mrb[1].mxu0  ;;  %v752_v8 = vadd.f32 %v1691_v3, %v751_v5  ;;  %v753_v9 = vpop.f32.mrb[1].mxu1 }
 0x11b   : > { %v650_v10 = vpop.f32.mrb[2].mxu0  ;;  %v754_v11 = vpop.f32.mrb[2].mxu1 }
 0x11c   : > { %v846_v12 = vmax.f32 %v648_v6, 0.0  ;;  %v651_v13 = vadd.f32 %v1691_v3, %v650_v10  ;;  %v652_v14 = vpop.f32.mrb[3].mxu0  ;;  %v872_v15 = vmax.f32 %v752_v8, 0.0  ;;  %v755_v16 = vadd.f32 %v1691_v3, %v754_v11  ;;  %v756_v17 = vpop.f32.mrb[3].mxu1 }
 0x11e   : > { %v1331_v18 = vpack.c.bf16 %v846_v12, %v846_v12  ;;  %v847_v19 = vmax.f32 %v651_v13, 0.0  ;;  %v1357_v20 = vpack.c.bf16 %v872_v15, %v872_v15  ;;  %v873_v21 = vmax.f32 %v755_v16, 0.0 }
 0x120   : > { %1097 = vst.msk [vmem:[%s1701_s16] sm:$0xf] %vm1096_vm0, %v1331_v18  ;;  %v1332_v22 = vpack.c.bf16 %v847_v19, %v847_v19  ;;  %1123 = vst.msk [vmem:[%s1701_s16 + $0x68] sm:$0xf] %vm1096_vm0, %v1357_v20  ;;  %v1358_v23 = vpack.c.bf16 %v873_v21, %v873_v21 }
 0x121   : > { %v655_v24 = vpop.f32.mrb[4].mxu0  ;;  %v759_v25 = vpop.f32.mrb[4].mxu1 }
 0x122   : > { %1098 = vst.msk [vmem:[%s1701_s16 + $0x4] sm:$0xf] %vm1096_vm0, %v1332_v22  ;;  %1124 = vst.msk [vmem:[%s1701_s16 + $0x6c] sm:$0xf] %vm1096_vm0, %v1358_v23  ;;  %v656_v26 = vadd.f32 %v1691_v3, %v655_v24  ;;  %v657_v27 = vpop.f32.mrb[5].mxu0  ;;  %v760_v28 = vadd.f32 %v1691_v3, %v759_v25  ;;  %v761_v29 = vpop.f32.mrb[5].mxu1 }
 0x123   : > { %v658_v30 = vpop.f32.mrb[6].mxu0  ;;  %v762_v31 = vpop.f32.mrb[6].mxu1 }
 0x124   : > { %v848_v32 = vmax.f32 %v656_v26, 0.0  ;;  %v659_v33 = vadd.f32 %v1691_v3, %v658_v30  ;;  %v660_v34 = vpop.f32.mrb[7].mxu0  ;;  %v874_v35 = vmax.f32 %v760_v28, 0.0  ;;  %v763_v36 = vadd.f32 %v1691_v3, %v762_v31  ;;  %v764_v37 = vpop.f32.mrb[7].mxu1 }
 0x126   : > { %v1333_v38 = vpack.c.bf16 %v848_v32, %v848_v32  ;;  %v849_v39 = vmax.f32 %v659_v33, 0.0  ;;  %v1359_v40 = vpack.c.bf16 %v874_v35, %v874_v35  ;;  %v875_v41 = vmax.f32 %v763_v36, 0.0 }
 0x128   : > { %1099 = vst.msk [vmem:[%s1701_s16 + $0x8] sm:$0xf] %vm1096_vm0, %v1333_v38  ;;  %v1334_v42 = vpack.c.bf16 %v849_v39, %v849_v39  ;;  %1125 = vst.msk [vmem:[%s1701_s16 + $0x70] sm:$0xf] %vm1096_vm0, %v1359_v40  ;;  %v1360_v43 = vpack.c.bf16 %v875_v41, %v875_v41 }
 0x129   : > { %v663_v44 = vpop.f32.mrb[8].mxu0  ;;  %v767_v45 = vpop.f32.mrb[8].mxu1 }
 0x12a   : > { %1100 = vst.msk [vmem:[%s1701_s16 + $0xc] sm:$0xf] %vm1096_vm0, %v1334_v42  ;;  %1126 = vst.msk [vmem:[%s1701_s16 + $0x74] sm:$0xf] %vm1096_vm0, %v1360_v43  ;;  %v664_v46 = vadd.f32 %v1691_v3, %v663_v44  ;;  %v665_v47 = vpop.f32.mrb[9].mxu0  ;;  %v768_v48 = vadd.f32 %v1691_v3, %v767_v45  ;;  %v769_v49 = vpop.f32.mrb[9].mxu1 }
 0x12b   : > { %v666_v50 = vpop.f32.mrb[10].mxu0  ;;  %v770_v51 = vpop.f32.mrb[10].mxu1 }
 0x12c   : > { %v850_v52 = vmax.f32 %v664_v46, 0.0  ;;  %v667_v53 = vadd.f32 %v1691_v3, %v666_v50  ;;  %v668_v54 = vpop.f32.mrb[11].mxu0  ;;  %v876_v55 = vmax.f32 %v768_v48, 0.0  ;;  %v771_v56 = vadd.f32 %v1691_v3, %v770_v51  ;;  %v772_v57 = vpop.f32.mrb[11].mxu1 }
 0x12e   : > { %v1335_v58 = vpack.c.bf16 %v850_v52, %v850_v52  ;;  %v851_v59 = vmax.f32 %v667_v53, 0.0  ;;  %v1361_v60 = vpack.c.bf16 %v876_v55, %v876_v55  ;;  %v877_v61 = vmax.f32 %v771_v56, 0.0 }
 0x130   : > { %1101 = vst.msk [vmem:[%s1701_s16 + $0x10] sm:$0xf] %vm1096_vm0, %v1335_v58  ;;  %v1336_v62 = vpack.c.bf16 %v851_v59, %v851_v59  ;;  %1127 = vst.msk [vmem:[%s1701_s16 + $0x78] sm:$0xf] %vm1096_vm0, %v1361_v60  ;;  %v1362_v63 = vpack.c.bf16 %v877_v61, %v877_v61 }
 0x131   : > { %v671_v0 = vpop.f32.mrb[12].mxu0  ;;  %v775_v1 = vpop.f32.mrb[12].mxu1 }
 0x132   : > { %1102 = vst.msk [vmem:[%s1701_s16 + $0x14] sm:$0xf] %vm1096_vm0, %v1336_v62  ;;  %1128 = vst.msk [vmem:[%s1701_s16 + $0x7c] sm:$0xf] %vm1096_vm0, %v1362_v63  ;;  %v672_v2 = vadd.f32 %v1691_v3, %v671_v0  ;;  %v673_v4 = vpop.f32.mrb[13].mxu0  ;;  %v776_v5 = vadd.f32 %v1691_v3, %v775_v1  ;;  %v777_v6 = vpop.f32.mrb[13].mxu1 }
 0x133   : > { %v674_v7 = vpop.f32.mrb[14].mxu0  ;;  %v778_v8 = vpop.f32.mrb[14].mxu1 }
 0x134   : > { %v852_v9 = vmax.f32 %v672_v2, 0.0  ;;  %v675_v10 = vadd.f32 %v1691_v3, %v674_v7  ;;  %v676_v11 = vpop.f32.mrb[15].mxu0  ;;  %v878_v12 = vmax.f32 %v776_v5, 0.0  ;;  %v779_v13 = vadd.f32 %v1691_v3, %v778_v8  ;;  %v780_v14 = vpop.f32.mrb[15].mxu1 }
 0x136   : > { %v1337_v15 = vpack.c.bf16 %v852_v9, %v852_v9  ;;  %v853_v16 = vmax.f32 %v675_v10, 0.0  ;;  %v1363_v17 = vpack.c.bf16 %v878_v12, %v878_v12  ;;  %v879_v18 = vmax.f32 %v779_v13, 0.0 }
 0x138   : > { %1103 = vst.msk [vmem:[%s1701_s16 + $0x18] sm:$0xf] %vm1096_vm0, %v1337_v15  ;;  %v1338_v19 = vpack.c.bf16 %v853_v16, %v853_v16  ;;  %1129 = vst.msk [vmem:[%s1701_s16 + $0x80] sm:$0xf] %vm1096_vm0, %v1363_v17  ;;  %v1364_v20 = vpack.c.bf16 %v879_v18, %v879_v18 }
 0x139   : > { %v679_v21 = vpop.f32.mrb[16].mxu0  ;;  %v783_v22 = vpop.f32.mrb[16].mxu1 }
 0x13a   : > { %1104 = vst.msk [vmem:[%s1701_s16 + $0x1c] sm:$0xf] %vm1096_vm0, %v1338_v19  ;;  %1130 = vst.msk [vmem:[%s1701_s16 + $0x84] sm:$0xf] %vm1096_vm0, %v1364_v20  ;;  %v680_v23 = vadd.f32 %v1691_v3, %v679_v21  ;;  %v681_v24 = vpop.f32.mrb[17].mxu0  ;;  %v784_v25 = vadd.f32 %v1691_v3, %v783_v22  ;;  %v785_v26 = vpop.f32.mrb[17].mxu1 }
 0x13b   : > { %v682_v27 = vpop.f32.mrb[18].mxu0  ;;  %v786_v28 = vpop.f32.mrb[18].mxu1 }
 0x13c   : > { %v854_v29 = vmax.f32 %v680_v23, 0.0  ;;  %v683_v30 = vadd.f32 %v1691_v3, %v682_v27  ;;  %v684_v31 = vpop.f32.mrb[19].mxu0  ;;  %v880_v32 = vmax.f32 %v784_v25, 0.0  ;;  %v787_v33 = vadd.f32 %v1691_v3, %v786_v28  ;;  %v788_v34 = vpop.f32.mrb[19].mxu1 }
 0x13e   : > { %v1339_v35 = vpack.c.bf16 %v854_v29, %v854_v29  ;;  %v855_v36 = vmax.f32 %v683_v30, 0.0  ;;  %v1365_v37 = vpack.c.bf16 %v880_v32, %v880_v32  ;;  %v881_v38 = vmax.f32 %v787_v33, 0.0 }
 0x140   : > { %1105 = vst.msk [vmem:[%s1701_s16 + $0x20] sm:$0xf] %vm1096_vm0, %v1339_v35  ;;  %v1340_v39 = vpack.c.bf16 %v855_v36, %v855_v36  ;;  %1131 = vst.msk [vmem:[%s1701_s16 + $0x88] sm:$0xf] %vm1096_vm0, %v1365_v37  ;;  %v1366_v40 = vpack.c.bf16 %v881_v38, %v881_v38 }
 0x141   : > { %v687_v41 = vpop.f32.mrb[20].mxu0  ;;  %v791_v42 = vpop.f32.mrb[20].mxu1 }
 0x142   : > { %1106 = vst.msk [vmem:[%s1701_s16 + $0x24] sm:$0xf] %vm1096_vm0, %v1340_v39  ;;  %1132 = vst.msk [vmem:[%s1701_s16 + $0x8c] sm:$0xf] %vm1096_vm0, %v1366_v40  ;;  %v688_v43 = vadd.f32 %v1691_v3, %v687_v41  ;;  %v689_v44 = vpop.f32.mrb[21].mxu0  ;;  %v792_v45 = vadd.f32 %v1691_v3, %v791_v42  ;;  %v793_v46 = vpop.f32.mrb[21].mxu1 }
 0x143   : > { %v690_v47 = vpop.f32.mrb[22].mxu0  ;;  %v794_v48 = vpop.f32.mrb[22].mxu1 }
 0x144   : > { %v856_v49 = vmax.f32 %v688_v43, 0.0  ;;  %v691_v50 = vadd.f32 %v1691_v3, %v690_v47  ;;  %v692_v51 = vpop.f32.mrb[23].mxu0  ;;  %v882_v52 = vmax.f32 %v792_v45, 0.0  ;;  %v795_v53 = vadd.f32 %v1691_v3, %v794_v48  ;;  %v796_v54 = vpop.f32.mrb[23].mxu1 }
 0x146   : > { %v1341_v55 = vpack.c.bf16 %v856_v49, %v856_v49  ;;  %v857_v56 = vmax.f32 %v691_v50, 0.0  ;;  %v1367_v57 = vpack.c.bf16 %v882_v52, %v882_v52  ;;  %v883_v58 = vmax.f32 %v795_v53, 0.0 }
 0x148   : > { %1107 = vst.msk [vmem:[%s1701_s16 + $0x28] sm:$0xf] %vm1096_vm0, %v1341_v55  ;;  %v1342_v59 = vpack.c.bf16 %v857_v56, %v857_v56  ;;  %1133 = vst.msk [vmem:[%s1701_s16 + $0x90] sm:$0xf] %vm1096_vm0, %v1367_v57  ;;  %v1368_v60 = vpack.c.bf16 %v883_v58, %v883_v58 }
 0x149   : > { %v695_v61 = vpop.f32.mrb[24].mxu0  ;;  %v799_v62 = vpop.f32.mrb[24].mxu1 }
 0x14a   : > { %1108 = vst.msk [vmem:[%s1701_s16 + $0x2c] sm:$0xf] %vm1096_vm0, %v1342_v59  ;;  %1134 = vst.msk [vmem:[%s1701_s16 + $0x94] sm:$0xf] %vm1096_vm0, %v1368_v60  ;;  %v696_v63 = vadd.f32 %v1691_v3, %v695_v61  ;;  %v697_v0 = vpop.f32.mrb[25].mxu0  ;;  %v800_v1 = vadd.f32 %v1691_v3, %v799_v62  ;;  %v801_v2 = vpop.f32.mrb[25].mxu1 }
 0x14b   : > { %v698_v4 = vpop.f32.mrb[26].mxu0  ;;  %v802_v5 = vpop.f32.mrb[26].mxu1 }
 0x14c   : > { %v858_v6 = vmax.f32 %v696_v63, 0.0  ;;  %v699_v7 = vadd.f32 %v1691_v3, %v698_v4  ;;  %v700_v8 = vpop.f32.mrb[27].mxu0  ;;  %v884_v9 = vmax.f32 %v800_v1, 0.0  ;;  %v803_v10 = vadd.f32 %v1691_v3, %v802_v5  ;;  %v804_v11 = vpop.f32.mrb[27].mxu1 }
 0x14e   : > { %v1343_v12 = vpack.c.bf16 %v858_v6, %v858_v6  ;;  %v859_v13 = vmax.f32 %v699_v7, 0.0  ;;  %v1369_v14 = vpack.c.bf16 %v884_v9, %v884_v9  ;;  %v885_v15 = vmax.f32 %v803_v10, 0.0 }
 0x150   : > { %1109 = vst.msk [vmem:[%s1701_s16 + $0x30] sm:$0xf] %vm1096_vm0, %v1343_v12  ;;  %v1344_v16 = vpack.c.bf16 %v859_v13, %v859_v13  ;;  %1135 = vst.msk [vmem:[%s1701_s16 + $0x98] sm:$0xf] %vm1096_vm0, %v1369_v14  ;;  %v1370_v17 = vpack.c.bf16 %v885_v15, %v885_v15 }
 0x151   : > { %v703_v18 = vpop.f32.mrb[28].mxu0  ;;  %v807_v19 = vpop.f32.mrb[28].mxu1 }
 0x152   : > { %1110 = vst.msk [vmem:[%s1701_s16 + $0x34] sm:$0xf] %vm1096_vm0, %v1344_v16  ;;  %1136 = vst.msk [vmem:[%s1701_s16 + $0x9c] sm:$0xf] %vm1096_vm0, %v1370_v17  ;;  %v704_v20 = vadd.f32 %v1691_v3, %v703_v18  ;;  %v705_v21 = vpop.f32.mrb[29].mxu0  ;;  %v808_v22 = vadd.f32 %v1691_v3, %v807_v19  ;;  %v809_v23 = vpop.f32.mrb[29].mxu1 }
 0x153   : > { %v706_v24 = vpop.f32.mrb[30].mxu0  ;;  %v810_v25 = vpop.f32.mrb[30].mxu1 }
 0x154   : > { %v860_v26 = vmax.f32 %v704_v20, 0.0  ;;  %v707_v27 = vadd.f32 %v1691_v3, %v706_v24  ;;  %v708_v28 = vpop.f32.mrb[31].mxu0  ;;  %v886_v29 = vmax.f32 %v808_v22, 0.0  ;;  %v811_v30 = vadd.f32 %v1691_v3, %v810_v25  ;;  %v812_v31 = vpop.f32.mrb[31].mxu1 }
 0x156   : > { %v1345_v32 = vpack.c.bf16 %v860_v26, %v860_v26  ;;  %v861_v33 = vmax.f32 %v707_v27, 0.0  ;;  %v1371_v34 = vpack.c.bf16 %v886_v29, %v886_v29  ;;  %v887_v35 = vmax.f32 %v811_v30, 0.0 }
 0x158   : > { %1111 = vst.msk [vmem:[%s1701_s16 + $0x38] sm:$0xf] %vm1096_vm0, %v1345_v32  ;;  %v1346_v36 = vpack.c.bf16 %v861_v33, %v861_v33  ;;  %1137 = vst.msk [vmem:[%s1701_s16 + $0xa0] sm:$0xf] %vm1096_vm0, %v1371_v34  ;;  %v1372_v37 = vpack.c.bf16 %v887_v35, %v887_v35 }
 0x159   : > { %v711_v38 = vpop.f32.mrb[32].mxu0  ;;  %v815_v39 = vpop.f32.mrb[32].mxu1 }
 0x15a   : > { %1112 = vst.msk [vmem:[%s1701_s16 + $0x3c] sm:$0xf] %vm1096_vm0, %v1346_v36  ;;  %1138 = vst.msk [vmem:[%s1701_s16 + $0xa4] sm:$0xf] %vm1096_vm0, %v1372_v37  ;;  %v712_v40 = vadd.f32 %v1691_v3, %v711_v38  ;;  %v713_v41 = vpop.f32.mrb[33].mxu0  ;;  %v816_v42 = vadd.f32 %v1691_v3, %v815_v39  ;;  %v817_v43 = vpop.f32.mrb[33].mxu1 }
 0x15b   : > { %v714_v44 = vpop.f32.mrb[34].mxu0  ;;  %v818_v45 = vpop.f32.mrb[34].mxu1 }
 0x15c   : > { %v862_v46 = vmax.f32 %v712_v40, 0.0  ;;  %v715_v47 = vadd.f32 %v1691_v3, %v714_v44  ;;  %v716_v48 = vpop.f32.mrb[35].mxu0  ;;  %v888_v49 = vmax.f32 %v816_v42, 0.0  ;;  %v819_v50 = vadd.f32 %v1691_v3, %v818_v45  ;;  %v820_v51 = vpop.f32.mrb[35].mxu1 }
 0x15e   : > { %v1347_v52 = vpack.c.bf16 %v862_v46, %v862_v46  ;;  %v863_v53 = vmax.f32 %v715_v47, 0.0  ;;  %v1373_v54 = vpack.c.bf16 %v888_v49, %v888_v49  ;;  %v889_v55 = vmax.f32 %v819_v50, 0.0 }
 0x160   : > { %1113 = vst.msk [vmem:[%s1701_s16 + $0x40] sm:$0xf] %vm1096_vm0, %v1347_v52  ;;  %v1348_v56 = vpack.c.bf16 %v863_v53, %v863_v53  ;;  %1139 = vst.msk [vmem:[%s1701_s16 + $0xa8] sm:$0xf] %vm1096_vm0, %v1373_v54  ;;  %v1374_v57 = vpack.c.bf16 %v889_v55, %v889_v55 }
 0x161   : > { %v719_v58 = vpop.f32.mrb[36].mxu0  ;;  %v823_v59 = vpop.f32.mrb[36].mxu1 }
 0x162   : > { %1114 = vst.msk [vmem:[%s1701_s16 + $0x44] sm:$0xf] %vm1096_vm0, %v1348_v56  ;;  %1140 = vst.msk [vmem:[%s1701_s16 + $0xac] sm:$0xf] %vm1096_vm0, %v1374_v57  ;;  %v720_v60 = vadd.f32 %v1691_v3, %v719_v58  ;;  %v721_v61 = vpop.f32.mrb[37].mxu0  ;;  %v824_v62 = vadd.f32 %v1691_v3, %v823_v59  ;;  %v825_v63 = vpop.f32.mrb[37].mxu1 }
 0x163   : > { %v722_v0 = vpop.f32.mrb[38].mxu0  ;;  %v826_v1 = vpop.f32.mrb[38].mxu1 }
 0x164   : > { %v864_v2 = vmax.f32 %v720_v60, 0.0  ;;  %v723_v4 = vadd.f32 %v1691_v3, %v722_v0  ;;  %v724_v5 = vpop.f32.mrb[39].mxu0  ;;  %v890_v6 = vmax.f32 %v824_v62, 0.0  ;;  %v827_v7 = vadd.f32 %v1691_v3, %v826_v1  ;;  %v828_v8 = vpop.f32.mrb[39].mxu1 }
 0x166   : > { %v1349_v9 = vpack.c.bf16 %v864_v2, %v864_v2  ;;  %v865_v10 = vmax.f32 %v723_v4, 0.0  ;;  %v1375_v11 = vpack.c.bf16 %v890_v6, %v890_v6  ;;  %v891_v12 = vmax.f32 %v827_v7, 0.0 }
 0x168   : > { %1115 = vst.msk [vmem:[%s1701_s16 + $0x48] sm:$0xf] %vm1096_vm0, %v1349_v9  ;;  %v1350_v13 = vpack.c.bf16 %v865_v10, %v865_v10  ;;  %1141 = vst.msk [vmem:[%s1701_s16 + $0xb0] sm:$0xf] %vm1096_vm0, %v1375_v11  ;;  %v1376_v14 = vpack.c.bf16 %v891_v12, %v891_v12 }
 0x169   : > { %v727_v15 = vpop.f32.mrb[40].mxu0  ;;  %v831_v16 = vpop.f32.mrb[40].mxu1 }
 0x16a   : > { %1116 = vst.msk [vmem:[%s1701_s16 + $0x4c] sm:$0xf] %vm1096_vm0, %v1350_v13  ;;  %1142 = vst.msk [vmem:[%s1701_s16 + $0xb4] sm:$0xf] %vm1096_vm0, %v1376_v14  ;;  %v728_v17 = vadd.f32 %v1691_v3, %v727_v15  ;;  %v729_v18 = vpop.f32.mrb[41].mxu0  ;;  %v832_v19 = vadd.f32 %v1691_v3, %v831_v16  ;;  %v833_v20 = vpop.f32.mrb[41].mxu1 }
 0x16b   : > { %v730_v21 = vpop.f32.mrb[42].mxu0  ;;  %v834_v22 = vpop.f32.mrb[42].mxu1 }
 0x16c   : > { %v866_v23 = vmax.f32 %v728_v17, 0.0  ;;  %v731_v24 = vadd.f32 %v1691_v3, %v730_v21  ;;  %v732_v25 = vpop.f32.mrb[43].mxu0  ;;  %v892_v26 = vmax.f32 %v832_v19, 0.0  ;;  %v835_v27 = vadd.f32 %v1691_v3, %v834_v22  ;;  %v836_v28 = vpop.f32.mrb[43].mxu1 }
 0x16e   : > { %v1351_v29 = vpack.c.bf16 %v866_v23, %v866_v23  ;;  %v867_v30 = vmax.f32 %v731_v24, 0.0  ;;  %v1377_v31 = vpack.c.bf16 %v892_v26, %v892_v26  ;;  %v893_v32 = vmax.f32 %v835_v27, 0.0 }
 0x170   : > { %1117 = vst.msk [vmem:[%s1701_s16 + $0x50] sm:$0xf] %vm1096_vm0, %v1351_v29  ;;  %v1352_v33 = vpack.c.bf16 %v867_v30, %v867_v30  ;;  %1143 = vst.msk [vmem:[%s1701_s16 + $0xb8] sm:$0xf] %vm1096_vm0, %v1377_v31  ;;  %v1378_v34 = vpack.c.bf16 %v893_v32, %v893_v32 }
 0x171   : > { %v735_v35 = vpop.f32.mrb[44].mxu0  ;;  %v839_v36 = vpop.f32.mrb[44].mxu1 }
 0x172   : > { %1118 = vst.msk [vmem:[%s1701_s16 + $0x54] sm:$0xf] %vm1096_vm0, %v1352_v33  ;;  %1144 = vst.msk [vmem:[%s1701_s16 + $0xbc] sm:$0xf] %vm1096_vm0, %v1378_v34  ;;  %v736_v37 = vadd.f32 %v1691_v3, %v735_v35  ;;  %v737_v38 = vpop.f32.mrb[45].mxu0  ;;  %v840_v39 = vadd.f32 %v1691_v3, %v839_v36  ;;  %v841_v40 = vpop.f32.mrb[45].mxu1 }
 0x173   : > { %v738_v41 = vpop.f32.mrb[46].mxu0  ;;  %v842_v42 = vpop.f32.mrb[46].mxu1 }
 0x174   : > { %v868_v43 = vmax.f32 %v736_v37, 0.0  ;;  %v739_v44 = vadd.f32 %v1691_v3, %v738_v41  ;;  %v740_v45 = vpop.f32.mrb[47].mxu0  ;;  %v894_v46 = vmax.f32 %v840_v39, 0.0  ;;  %v843_v47 = vadd.f32 %v1691_v3, %v842_v42  ;;  %v844_v48 = vpop.f32.mrb[47].mxu1 }
 0x176   : > { %v1353_v49 = vpack.c.bf16 %v868_v43, %v868_v43  ;;  %v869_v50 = vmax.f32 %v739_v44, 0.0  ;;  %v1379_v51 = vpack.c.bf16 %v894_v46, %v894_v46  ;;  %v895_v52 = vmax.f32 %v843_v47, 0.0 }
 0x178   : > { %1119 = vst.msk [vmem:[%s1701_s16 + $0x58] sm:$0xf] %vm1096_vm0, %v1353_v49  ;;  %v1354_v53 = vpack.c.bf16 %v869_v50, %v869_v50  ;;  %1145 = vst.msk [vmem:[%s1701_s16 + $0xc0] sm:$0xf] %vm1096_vm0, %v1379_v51  ;;  %v1380_v54 = vpack.c.bf16 %v895_v52, %v895_v52 }
 0x179   : > { %v743_v55 = vpop.f32.mrb[48].mxu0 }
 0x17a   : > { %1120 = vst.msk [vmem:[%s1701_s16 + $0x5c] sm:$0xf] %vm1096_vm0, %v1354_v53  ;;  %1146 = vst.msk [vmem:[%s1701_s16 + $0xc4] sm:$0xf] %vm1096_vm0, %v1380_v54  ;;  %v744_v56 = vadd.f32 %v1691_v3, %v743_v55  ;;  %v745_v57 = vpop.f32.mrb[49].mxu0 }
 0x17b   : > { %v746_v58 = vpop.f32.mrb[50].mxu0 }
 0x17c   : > { %v870_v59 = vmax.f32 %v744_v56, 0.0  ;;  %v747_v60 = vadd.f32 %v1691_v3, %v746_v58  ;;  %v748_v61 = vpop.f32.mrb[51].mxu0 }
 0x17e   : > { %v1355_v62 = vpack.c.bf16 %v870_v59, %v870_v59  ;;  %v871_v63 = vmax.f32 %v747_v60, 0.0 }
 0x180   : > { %1121 = vst.msk [vmem:[%s1701_s16 + $0x60] sm:$0xf] %vm1096_vm0, %v1355_v62  ;;  %v1356_v0 = vpack.c.bf16 %v871_v63, %v871_v63 }
 0x182   : > { %1122 = vst.msk [vmem:[%s1701_s16 + $0x64] sm:$0xf] %vm1096_vm0, %v1356_v0 }
 0x183 PF: > { %s13_s12 = sadd.s32 1, %s1519_s12  }
 0x184   : > { %p10_p4 = scmp.ge.s32.totalorder %s13_s12, 4  }
 0x186   :  { %12 = sbr.rel (!%p10_p4) target bundleno = 1 (0x1), region = 62 }

// kernel: cnn_forward.5
= control target key start
LH: loop header
LB: loop body
LE: loop exit
PB: predicated region body
PF: predicated region fallthrough
CT: control target
= control target key end

     0   :  { %vm880_vm0 = vcmask 519168   ;;  %vm901_vm1 = vcmask 516096   ;;  %s1637_s1 = inlined_call_operand.vmem [shape: bf16[512,64], index: 1, kind: input, shape index: {}]   ;;  %s1638_s0 = inlined_call_operand.vmem [shape: bf16[162,512], index: 0, kind: input, shape index: {}]   ;;  %s1639_s2 = inlined_call_operand.vmem [shape: f32[1,64], index: 2, kind: input, shape index: {}]   ;;  %s1640_s3 = inlined_call_operand.vmem [shape: bf16[162,64], index: 3, kind: output, shape index: {}]  }
   0x1   :  { %v1190_v0 = vld [vmem:[%s1637_s1 + $0x40] sm:$0xff]   ;;  %v1194_v4 = vld [vmem:[%s1637_s1 + $0x48] sm:$0xff]   ;;  %v1198_v8 = vld [vmem:[%s1637_s1 + $0x50] sm:$0xff]  }
   0x2   :  { %v1191_v1 = vld [vmem:[%s1637_s1 + $0xc0] sm:$0xff]   ;;  %1026 = vmatprep.subr.bf16.mxu0 %v1190_v0  ;;  %v1195_v5 = vld [vmem:[%s1637_s1 + $0xc8] sm:$0xff]   ;;  %v1199_v9 = vld [vmem:[%s1637_s1 + $0xd0] sm:$0xff]  }
   0x3   :  { %v1192_v2 = vld [vmem:[%s1637_s1] sm:$0xff]   ;;  %1108 = vmatprep.subr.bf16.mxu1 %v1191_v1  ;;  %v1196_v6 = vld [vmem:[%s1637_s1 + $0x8] sm:$0xff]   ;;  %v1200_v10 = vld [vmem:[%s1637_s1 + $0x10] sm:$0xff]  }
   0x4   :  { %v1193_v3 = vld [vmem:[%s1637_s1 + $0x80] sm:$0xff]   ;;  %1027 = vmatpush3.bf16.msra.mxu0 %v1192_v2  ;;  %v1197_v7 = vld [vmem:[%s1637_s1 + $0x88] sm:$0xff]   ;;  %v1201_v11 = vld [vmem:[%s1637_s1 + $0x90] sm:$0xff]  }
   0x5   :  { %1109 = vmatpush3.bf16.msra.mxu1 %v1193_v3  ;;  %1028 = vmatprep.subr.bf16.mxu0 %v1194_v4  ;;  %v1202_v12 = vld [vmem:[%s1637_s1 + $0x58] sm:$0xff]   ;;  %v1206_v16 = vld [vmem:[%s1637_s1 + $0x60] sm:$0xff]   ;;  %v1210_v20 = vld [vmem:[%s1637_s1 + $0x68] sm:$0xff]  }
   0x6   :  { %1110 = vmatprep.subr.bf16.mxu1 %v1195_v5  ;;  %v1203_v13 = vld [vmem:[%s1637_s1 + $0xd8] sm:$0xff]   ;;  %v1207_v17 = vld [vmem:[%s1637_s1 + $0xe0] sm:$0xff]   ;;  %v1211_v21 = vld [vmem:[%s1637_s1 + $0xe8] sm:$0xff]  }
   0x7   :  { %v1204_v14 = vld [vmem:[%s1637_s1 + $0x18] sm:$0xff]   ;;  %v1208_v18 = vld [vmem:[%s1637_s1 + $0x20] sm:$0xff]   ;;  %v1212_v22 = vld [vmem:[%s1637_s1 + $0x28] sm:$0xff]  }
   0x8   :  { %1029 = vmatpush3.bf16.msra.mxu0 %v1196_v6  ;;  %v1205_v15 = vld [vmem:[%s1637_s1 + $0x98] sm:$0xff]   ;;  %v1209_v19 = vld [vmem:[%s1637_s1 + $0xa0] sm:$0xff]   ;;  %v1213_v23 = vld [vmem:[%s1637_s1 + $0xa8] sm:$0xff]  }
   0x9   :  { %1111 = vmatpush3.bf16.msra.mxu1 %v1197_v7  ;;  %1030 = vmatprep.subr.bf16.mxu0 %v1198_v8  ;;  %v1214_v24 = vld [vmem:[%s1637_s1 + $0x70] sm:$0xff]   ;;  %v1218_v28 = vld [vmem:[%s1637_s1 + $0x78] sm:$0xff]   ;;  %v55_v6 = vld [vmem:[%s1638_s0 + $0x140] sm:$0x11] }
   0xa   :  { %1112 = vmatprep.subr.bf16.mxu1 %v1199_v9  ;;  %v1215_v25 = vld [vmem:[%s1637_s1 + $0xf0] sm:$0xff]   ;;  %v1219_v29 = vld [vmem:[%s1637_s1 + $0xf8] sm:$0xff]   ;;  %v56_v7 = vld [vmem:[%s1638_s0 + $0x148] sm:$0x11] }
   0xb   :  { %v1216_v26 = vld [vmem:[%s1637_s1 + $0x30] sm:$0xff]   ;;  %v1220_v30 = vld [vmem:[%s1637_s1 + $0x38] sm:$0xff]  }
   0xc   :  { %1031 = vmatpush3.bf16.msra.mxu0 %v1200_v10  ;;  %v1217_v27 = vld [vmem:[%s1637_s1 + $0xb0] sm:$0xff]   ;;  %v1221_v31 = vld [vmem:[%s1637_s1 + $0xb8] sm:$0xff]   ;;  %v949_v10 = vcombine.high %v55_v6, %v55_v6 }
   0xd   :  { %1113 = vmatpush3.bf16.msra.mxu1 %v1201_v11  ;;  %1032 = vmatprep.subr.bf16.mxu0 %v1202_v12  ;;  %v1222_v32 = vld [vmem:[%s1638_s0] ss:$16 sps:$4 sm:$0xff]   ;;  %v1224_v33 = vld [vmem:[%s1638_s0 + $0x4] ss:$16 sps:$4 sm:$0xff]   ;;  %v1225_v34 = vld [vmem:[%s1638_s0 + $0x8] ss:$16 sps:$4 sm:$0xff]   ;;  %v951_v11 = vcombine.high %v56_v7, %v56_v7  ;;  %v948_v12 = vcombine.low %v55_v6, %v55_v6 }
   0xe   :  { %1114 = vmatprep.subr.bf16.mxu1 %v1203_v13  ;;  %v1227_v35 = vld [vmem:[%s1638_s0 + $0xc] ss:$16 sps:$4 sm:$0xff]   ;;  %566 = vmatprep.mubr.bf16.mxu0 %v1224_v33  ;;  %v1228_v36 = vld [vmem:[%s1638_s0 + $0x24] ss:$16 sps:$4 sm:$0xff]   ;;  %v1232_v38 = vld [vmem:[%s1638_s0 + $0x20] ss:$16 sps:$4 sm:$0xff]   ;;  %v950_v13 = vcombine.low %v56_v7, %v56_v7 }
   0xf   :  { %686 = vmatprep.mubr.bf16.mxu1 %v1227_v35  ;;  %v1230_v37 = vld [vmem:[%s1638_s0 + $0x2c] ss:$16 sps:$4 sm:$0xff]   ;;  %v1233_v39 = vld [vmem:[%s1638_s0 + $0x28] ss:$16 sps:$4 sm:$0xff]   ;;  %v1234_v40 = vld [vmem:[%s1638_s0 + $0x44] ss:$16 sps:$4 sm:$0xff]  }
  0x10   :  { %1033 = vmatpush3.bf16.msra.mxu0 %v1204_v14  ;;  %v1236_v41 = vld [vmem:[%s1638_s0 + $0x4c] ss:$16 sps:$4 sm:$0xff]   ;;  %v1238_v42 = vld [vmem:[%s1638_s0 + $0x40] ss:$16 sps:$4 sm:$0xff]   ;;  %v1239_v43 = vld [vmem:[%s1638_s0 + $0x48] ss:$16 sps:$4 sm:$0xff]  }
  0x11   :  { %1115 = vmatpush3.bf16.msra.mxu1 %v1205_v15  ;;  %1034 = vmatprep.subr.bf16.mxu0 %v1206_v16  ;;  %v1240_v44 = vld [vmem:[%s1638_s0 + $0x64] ss:$16 sps:$4 sm:$0xff]   ;;  %v1242_v45 = vld [vmem:[%s1638_s0 + $0x6c] ss:$16 sps:$4 sm:$0xff]   ;;  %v1244_v46 = vld [vmem:[%s1638_s0 + $0x60] ss:$16 sps:$4 sm:$0xff]  }
  0x12   :  { %1116 = vmatprep.subr.bf16.mxu1 %v1207_v17  ;;  %v1245_v47 = vld [vmem:[%s1638_s0 + $0x68] ss:$16 sps:$4 sm:$0xff]   ;;  %v1246_v48 = vld [vmem:[%s1638_s0 + $0x84] ss:$16 sps:$4 sm:$0xff]   ;;  %v1248_v49 = vld [vmem:[%s1638_s0 + $0x8c] ss:$16 sps:$4 sm:$0xff]  }
  0x13   :  { %v1250_v50 = vld [vmem:[%s1638_s0 + $0x80] ss:$16 sps:$4 sm:$0xff]   ;;  %v1251_v51 = vld [vmem:[%s1638_s0 + $0x88] ss:$16 sps:$4 sm:$0xff]   ;;  %v1252_v52 = vld [vmem:[%s1638_s0 + $0xa4] ss:$16 sps:$4 sm:$0xff]  }
  0x14   :  { %1035 = vmatpush3.bf16.msra.mxu0 %v1208_v18  ;;  %v1254_v53 = vld [vmem:[%s1638_s0 + $0xac] ss:$16 sps:$4 sm:$0xff]   ;;  %v1256_v54 = vld [vmem:[%s1638_s0 + $0xa0] ss:$16 sps:$4 sm:$0xff]   ;;  %v1257_v55 = vld [vmem:[%s1638_s0 + $0xa8] ss:$16 sps:$4 sm:$0xff]  }
  0x15   :  { %1117 = vmatpush3.bf16.msra.mxu1 %v1209_v19  ;;  %1036 = vmatprep.subr.bf16.mxu0 %v1210_v20  ;;  %v1258_v56 = vld [vmem:[%s1638_s0 + $0xc4] ss:$16 sps:$4 sm:$0xff]   ;;  %v1260_v57 = vld [vmem:[%s1638_s0 + $0xcc] ss:$16 sps:$4 sm:$0xff]   ;;  %v1262_v58 = vld [vmem:[%s1638_s0 + $0xc0] ss:$16 sps:$4 sm:$0xff]  }
  0x16   :  { %1118 = vmatprep.subr.bf16.mxu1 %v1211_v21  ;;  %v1263_v59 = vld [vmem:[%s1638_s0 + $0xc8] ss:$16 sps:$4 sm:$0xff]   ;;  %v1264_v60 = vld [vmem:[%s1638_s0 + $0xe4] ss:$16 sps:$4 sm:$0xff]   ;;  %v1266_v61 = vld [vmem:[%s1638_s0 + $0xec] ss:$16 sps:$4 sm:$0xff]  }
  0x17   :  { %v1268_v62 = vld [vmem:[%s1638_s0 + $0xe0] ss:$16 sps:$4 sm:$0xff]   ;;  %v1269_v63 = vld [vmem:[%s1638_s0 + $0xe8] ss:$16 sps:$4 sm:$0xff]   ;;  %v1270_v0 = vld [vmem:[%s1638_s0 + $0x104] ss:$16 sps:$4 sm:$0xff]  }
  0x18   :  { %1037 = vmatpush3.bf16.msra.mxu0 %v1212_v22  ;;  %v1272_v1 = vld [vmem:[%s1638_s0 + $0x10c] ss:$16 sps:$4 sm:$0xff]   ;;  %v1274_v2 = vld [vmem:[%s1638_s0 + $0x100] ss:$16 sps:$4 sm:$0xff]   ;;  %v1275_v3 = vld [vmem:[%s1638_s0 + $0x108] ss:$16 sps:$4 sm:$0xff]  }
  0x19   :  { %1119 = vmatpush3.bf16.msra.mxu1 %v1213_v23  ;;  %1038 = vmatprep.subr.bf16.mxu0 %v1214_v24  ;;  %v1276_v4 = vld [vmem:[%s1638_s0 + $0x124] ss:$16 sps:$4 sm:$0xff]   ;;  %v1278_v5 = vld [vmem:[%s1638_s0 + $0x12c] ss:$16 sps:$4 sm:$0xff]   ;;  %v1280_v8 = vld [vmem:[%s1638_s0 + $0x120] ss:$16 sps:$4 sm:$0xff]  }
  0x1a   :  { %1120 = vmatprep.subr.bf16.mxu1 %v1215_v25  ;;  %v1281_v9 = vld [vmem:[%s1638_s0 + $0x128] ss:$16 sps:$4 sm:$0xff]   ;;  %v1531_v16 = vld [vmem:[%s1639_s2] ss:$0 sm:$0xff] }
  0x1c   :  { %1039 = vmatpush3.bf16.msra.mxu0 %v1216_v26 }
  0x1d   :  { %1121 = vmatpush3.bf16.msra.mxu1 %v1217_v27  ;;  %1040 = vmatprep.subr.bf16.mxu0 %v1218_v28 }
  0x1e   :  { %1122 = vmatprep.subr.bf16.mxu1 %v1219_v29 }
  0x20   :  { %1041 = vmatpush3.bf16.msra.mxu0 %v1220_v30 }
  0x21   :  { %1123 = vmatpush3.bf16.msra.mxu1 %v1221_v31 }
  0x23   :  { %567 = vmatmul.mubr.bf16.vlgmr.msra.gmra.mrb[0].mxu0 %v1222_v32 }
  0x24   :  { %687 = vmatmul.mubr.bf16.vlgmr.msra.gmra.mrb[0].mxu1 %v1225_v34  ;;  %574 = vmatprep.mubr.bf16.mxu0 %v1228_v36 }
  0x25   :  { %694 = vmatprep.mubr.bf16.mxu1 %v1230_v37 }
  0x2b   :  { %575 = vmatmul.mubr.bf16.gmra.mrb[4].mxu0 %v1232_v38 }
  0x2c   :  { %695 = vmatmul.mubr.bf16.gmra.mrb[4].mxu1 %v1233_v39  ;;  %582 = vmatprep.mubr.bf16.mxu0 %v1234_v40 }
  0x2d   :  { %702 = vmatprep.mubr.bf16.mxu1 %v1236_v41 }
  0x33   :  { %583 = vmatmul.mubr.bf16.gmra.mrb[8].mxu0 %v1238_v42 }
  0x34   :  { %703 = vmatmul.mubr.bf16.gmra.mrb[8].mxu1 %v1239_v43  ;;  %590 = vmatprep.mubr.bf16.mxu0 %v1240_v44 }
  0x35   :  { %710 = vmatprep.mubr.bf16.mxu1 %v1242_v45 }
  0x3b   :  { %591 = vmatmul.mubr.bf16.gmra.mrb[12].mxu0 %v1244_v46 }
  0x3c   :  { %711 = vmatmul.mubr.bf16.gmra.mrb[12].mxu1 %v1245_v47  ;;  %598 = vmatprep.mubr.bf16.mxu0 %v1246_v48 }
  0x3d   :  { %718 = vmatprep.mubr.bf16.mxu1 %v1248_v49 }
  0x43   :  { %599 = vmatmul.mubr.bf16.gmra.mrb[16].mxu0 %v1250_v50 }
  0x44   :  { %719 = vmatmul.mubr.bf16.gmra.mrb[16].mxu1 %v1251_v51  ;;  %606 = vmatprep.mubr.bf16.mxu0 %v1252_v52 }
  0x45   :  { %726 = vmatprep.mubr.bf16.mxu1 %v1254_v53 }
  0x4b   :  { %607 = vmatmul.mubr.bf16.gmra.mrb[20].mxu0 %v1256_v54 }
  0x4c   :  { %727 = vmatmul.mubr.bf16.gmra.mrb[20].mxu1 %v1257_v55  ;;  %614 = vmatprep.mubr.bf16.mxu0 %v1258_v56 }
  0x4d   :  { %734 = vmatprep.mubr.bf16.mxu1 %v1260_v57 }
  0x53   :  { %615 = vmatmul.mubr.bf16.gmra.mrb[24].mxu0 %v1262_v58 }
  0x54   :  { %735 = vmatmul.mubr.bf16.gmra.mrb[24].mxu1 %v1263_v59  ;;  %622 = vmatprep.mubr.bf16.mxu0 %v1264_v60 }
  0x55   :  { %742 = vmatprep.mubr.bf16.mxu1 %v1266_v61 }
  0x5b   :  { %623 = vmatmul.mubr.bf16.gmra.mrb[28].mxu0 %v1268_v62 }
  0x5c   :  { %743 = vmatmul.mubr.bf16.gmra.mrb[28].mxu1 %v1269_v63  ;;  %630 = vmatprep.mubr.bf16.mxu0 %v1270_v0 }
  0x5d   :  { %750 = vmatprep.mubr.bf16.mxu1 %v1272_v1 }
  0x63   :  { %631 = vmatmul.mubr.bf16.gmra.mrb[32].mxu0 %v1274_v2 }
  0x64   :  { %751 = vmatmul.mubr.bf16.gmra.mrb[32].mxu1 %v1275_v3  ;;  %638 = vmatprep.mubr.bf16.mxu0 %v1276_v4 }
  0x65   :  { %758 = vmatprep.mubr.bf16.mxu1 %v1278_v5 }
  0x6b   :  { %639 = vmatmul.mubr.bf16.gmra.mrb[36].mxu0 %v1280_v8 }
  0x6c   :  { %759 = vmatmul.mubr.bf16.gmra.mrb[36].mxu1 %v1281_v9  ;;  %646 = vmatprep.mubr.bf16.mxu0 %v949_v10 }
  0x6d   :  { %766 = vmatprep.mubr.bf16.mxu1 %v951_v11 }
  0x73   :  { %647 = vmatmul.mubr.bf16.gmra.mrb[40].mxu0 %v948_v12 }
  0x74   :  { %767 = vmatmul.mubr.bf16.gmra.mrb[40].mxu1 %v950_v13 }
  0xf6   :  { %v1042_v14 = vpop.f32.mrb[0].mxu0 }
  0xf7   :  { %v1124_v15 = vpop.f32.mrb[0].mxu1  ;;  %v1043_v17 = vpop.f32.mrb[1].mxu0 }
  0xf8   :  { %v1044_v18 = vadd.f32 %v1043_v17, %v1042_v14  ;;  %v1125_v19 = vpop.f32.mrb[1].mxu1  ;;  %v1045_v20 = vpop.f32.mrb[2].mxu0 }
  0xf9   :  { %v1126_v21 = vadd.f32 %v1125_v19, %v1124_v15  ;;  %v1127_v22 = vpop.f32.mrb[2].mxu1  ;;  %v1046_v23 = vpop.f32.mrb[3].mxu0 }
  0xfa   :  { %v569_v24 = vadd.f32 %v1044_v18, %v1531_v16  ;;  %v1047_v25 = vadd.f32 %v1046_v23, %v1045_v20  ;;  %v1128_v26 = vpop.f32.mrb[3].mxu1 }
  0xfb   :  { %v1129_v27 = vadd.f32 %v1128_v26, %v1127_v22 }
  0xfc   :  { %v689_v28 = vadd.f32 %v1126_v21, %v569_v24  ;;  %v572_v29 = vadd.f32 %v1047_v25, %v1531_v16 }
  0xfe   :  { %v774_v30 = vmax.f32 %v689_v28, 0.0  ;;  %v692_v31 = vadd.f32 %v1129_v27, %v572_v29  ;;  %v1048_v32 = vpop.f32.mrb[4].mxu0 }
  0xff   :  { %v1130_v33 = vpop.f32.mrb[4].mxu1  ;;  %v1049_v34 = vpop.f32.mrb[5].mxu0 }
 0x100   :  { %v1005_v35 = vpack.c.bf16 %v774_v30, %v774_v30  ;;  %v775_v36 = vmax.f32 %v692_v31, 0.0  ;;  %v1050_v37 = vadd.f32 %v1049_v34, %v1048_v32  ;;  %v1131_v38 = vpop.f32.mrb[5].mxu1  ;;  %v1051_v39 = vpop.f32.mrb[6].mxu0 }
 0x101   :  { %v1132_v40 = vadd.f32 %v1131_v38, %v1130_v33  ;;  %v1133_v41 = vpop.f32.mrb[6].mxu1  ;;  %v1052_v42 = vpop.f32.mrb[7].mxu0 }
 0x102   :  { %881 = vst.msk [vmem:[%s1640_s3] sm:$0xf] %vm880_vm0, %v1005_v35  ;;  %v1006_v43 = vpack.c.bf16 %v775_v36, %v775_v36  ;;  %v577_v44 = vadd.f32 %v1050_v37, %v1531_v16  ;;  %v1053_v45 = vadd.f32 %v1052_v42, %v1051_v39  ;;  %v1134_v46 = vpop.f32.mrb[7].mxu1 }
 0x103   :  { %v1135_v47 = vadd.f32 %v1134_v46, %v1133_v41 }
 0x104   :  { %882 = vst.msk [vmem:[%s1640_s3 + $0x4] sm:$0xf] %vm880_vm0, %v1006_v43  ;;  %v697_v48 = vadd.f32 %v1132_v40, %v577_v44  ;;  %v580_v49 = vadd.f32 %v1053_v45, %v1531_v16 }
 0x106   :  { %v776_v50 = vmax.f32 %v697_v48, 0.0  ;;  %v700_v51 = vadd.f32 %v1135_v47, %v580_v49  ;;  %v1054_v52 = vpop.f32.mrb[8].mxu0 }
 0x107   :  { %v1136_v53 = vpop.f32.mrb[8].mxu1  ;;  %v1055_v54 = vpop.f32.mrb[9].mxu0 }
 0x108   :  { %v1007_v55 = vpack.c.bf16 %v776_v50, %v776_v50  ;;  %v777_v56 = vmax.f32 %v700_v51, 0.0  ;;  %v1056_v57 = vadd.f32 %v1055_v54, %v1054_v52  ;;  %v1137_v58 = vpop.f32.mrb[9].mxu1  ;;  %v1057_v59 = vpop.f32.mrb[10].mxu0 }
 0x109   :  { %v1138_v60 = vadd.f32 %v1137_v58, %v1136_v53  ;;  %v1139_v61 = vpop.f32.mrb[10].mxu1  ;;  %v1058_v62 = vpop.f32.mrb[11].mxu0 }
 0x10a   :  { %883 = vst.msk [vmem:[%s1640_s3 + $0x8] sm:$0xf] %vm880_vm0, %v1007_v55  ;;  %v1008_v63 = vpack.c.bf16 %v777_v56, %v777_v56  ;;  %v585_v0 = vadd.f32 %v1056_v57, %v1531_v16  ;;  %v1059_v1 = vadd.f32 %v1058_v62, %v1057_v59  ;;  %v1140_v2 = vpop.f32.mrb[11].mxu1 }
 0x10b   :  { %v1141_v3 = vadd.f32 %v1140_v2, %v1139_v61 }
 0x10c   :  { %884 = vst.msk [vmem:[%s1640_s3 + $0xc] sm:$0xf] %vm880_vm0, %v1008_v63  ;;  %v705_v4 = vadd.f32 %v1138_v60, %v585_v0  ;;  %v588_v5 = vadd.f32 %v1059_v1, %v1531_v16 }
 0x10e   :  { %v778_v6 = vmax.f32 %v705_v4, 0.0  ;;  %v708_v7 = vadd.f32 %v1141_v3, %v588_v5  ;;  %v1060_v8 = vpop.f32.mrb[12].mxu0 }
 0x10f   :  { %v1142_v9 = vpop.f32.mrb[12].mxu1  ;;  %v1061_v10 = vpop.f32.mrb[13].mxu0 }
 0x110   :  { %v1009_v11 = vpack.c.bf16 %v778_v6, %v778_v6  ;;  %v779_v12 = vmax.f32 %v708_v7, 0.0  ;;  %v1062_v13 = vadd.f32 %v1061_v10, %v1060_v8  ;;  %v1143_v14 = vpop.f32.mrb[13].mxu1  ;;  %v1063_v15 = vpop.f32.mrb[14].mxu0 }
 0x111   :  { %v1144_v17 = vadd.f32 %v1143_v14, %v1142_v9  ;;  %v1145_v18 = vpop.f32.mrb[14].mxu1  ;;  %v1064_v19 = vpop.f32.mrb[15].mxu0 }
 0x112   :  { %885 = vst.msk [vmem:[%s1640_s3 + $0x10] sm:$0xf] %vm880_vm0, %v1009_v11  ;;  %v1010_v20 = vpack.c.bf16 %v779_v12, %v779_v12  ;;  %v593_v21 = vadd.f32 %v1062_v13, %v1531_v16  ;;  %v1065_v22 = vadd.f32 %v1064_v19, %v1063_v15  ;;  %v1146_v23 = vpop.f32.mrb[15].mxu1 }
 0x113   :  { %v1147_v24 = vadd.f32 %v1146_v23, %v1145_v18 }
 0x114   :  { %886 = vst.msk [vmem:[%s1640_s3 + $0x14] sm:$0xf] %vm880_vm0, %v1010_v20  ;;  %v713_v25 = vadd.f32 %v1144_v17, %v593_v21  ;;  %v596_v26 = vadd.f32 %v1065_v22, %v1531_v16 }
 0x116   :  { %v780_v27 = vmax.f32 %v713_v25, 0.0  ;;  %v716_v28 = vadd.f32 %v1147_v24, %v596_v26  ;;  %v1066_v29 = vpop.f32.mrb[16].mxu0 }
 0x117   :  { %v1148_v30 = vpop.f32.mrb[16].mxu1  ;;  %v1067_v31 = vpop.f32.mrb[17].mxu0 }
 0x118   :  { %v1011_v32 = vpack.c.bf16 %v780_v27, %v780_v27  ;;  %v781_v33 = vmax.f32 %v716_v28, 0.0  ;;  %v1068_v34 = vadd.f32 %v1067_v31, %v1066_v29  ;;  %v1149_v35 = vpop.f32.mrb[17].mxu1  ;;  %v1069_v36 = vpop.f32.mrb[18].mxu0 }
 0x119   :  { %v1150_v37 = vadd.f32 %v1149_v35, %v1148_v30  ;;  %v1151_v38 = vpop.f32.mrb[18].mxu1  ;;  %v1070_v39 = vpop.f32.mrb[19].mxu0 }
 0x11a   :  { %887 = vst.msk [vmem:[%s1640_s3 + $0x18] sm:$0xf] %vm880_vm0, %v1011_v32  ;;  %v1012_v40 = vpack.c.bf16 %v781_v33, %v781_v33  ;;  %v601_v41 = vadd.f32 %v1068_v34, %v1531_v16  ;;  %v1071_v42 = vadd.f32 %v1070_v39, %v1069_v36  ;;  %v1152_v43 = vpop.f32.mrb[19].mxu1 }
 0x11b   :  { %v1153_v44 = vadd.f32 %v1152_v43, %v1151_v38 }
 0x11c   :  { %888 = vst.msk [vmem:[%s1640_s3 + $0x1c] sm:$0xf] %vm880_vm0, %v1012_v40  ;;  %v721_v45 = vadd.f32 %v1150_v37, %v601_v41  ;;  %v604_v46 = vadd.f32 %v1071_v42, %v1531_v16 }
 0x11e   :  { %v782_v47 = vmax.f32 %v721_v45, 0.0  ;;  %v724_v48 = vadd.f32 %v1153_v44, %v604_v46  ;;  %v1072_v49 = vpop.f32.mrb[20].mxu0 }
 0x11f   :  { %v1154_v50 = vpop.f32.mrb[20].mxu1  ;;  %v1073_v51 = vpop.f32.mrb[21].mxu0 }
 0x120   :  { %v1013_v52 = vpack.c.bf16 %v782_v47, %v782_v47  ;;  %v783_v53 = vmax.f32 %v724_v48, 0.0  ;;  %v1074_v54 = vadd.f32 %v1073_v51, %v1072_v49  ;;  %v1155_v55 = vpop.f32.mrb[21].mxu1  ;;  %v1075_v56 = vpop.f32.mrb[22].mxu0 }
 0x121   :  { %v1156_v57 = vadd.f32 %v1155_v55, %v1154_v50  ;;  %v1157_v58 = vpop.f32.mrb[22].mxu1  ;;  %v1076_v59 = vpop.f32.mrb[23].mxu0 }
 0x122   :  { %889 = vst.msk [vmem:[%s1640_s3 + $0x20] sm:$0xf] %vm880_vm0, %v1013_v52  ;;  %v1014_v60 = vpack.c.bf16 %v783_v53, %v783_v53  ;;  %v609_v61 = vadd.f32 %v1074_v54, %v1531_v16  ;;  %v1077_v62 = vadd.f32 %v1076_v59, %v1075_v56  ;;  %v1158_v63 = vpop.f32.mrb[23].mxu1 }
 0x123   :  { %v1159_v0 = vadd.f32 %v1158_v63, %v1157_v58 }
 0x124   :  { %890 = vst.msk [vmem:[%s1640_s3 + $0x24] sm:$0xf] %vm880_vm0, %v1014_v60  ;;  %v729_v1 = vadd.f32 %v1156_v57, %v609_v61  ;;  %v612_v2 = vadd.f32 %v1077_v62, %v1531_v16 }
 0x126   :  { %v784_v3 = vmax.f32 %v729_v1, 0.0  ;;  %v732_v4 = vadd.f32 %v1159_v0, %v612_v2  ;;  %v1078_v5 = vpop.f32.mrb[24].mxu0 }
 0x127   :  { %v1160_v6 = vpop.f32.mrb[24].mxu1  ;;  %v1079_v7 = vpop.f32.mrb[25].mxu0 }
 0x128   :  { %v1015_v8 = vpack.c.bf16 %v784_v3, %v784_v3  ;;  %v785_v9 = vmax.f32 %v732_v4, 0.0  ;;  %v1080_v10 = vadd.f32 %v1079_v7, %v1078_v5  ;;  %v1161_v11 = vpop.f32.mrb[25].mxu1  ;;  %v1081_v12 = vpop.f32.mrb[26].mxu0 }
 0x129   :  { %v1162_v13 = vadd.f32 %v1161_v11, %v1160_v6  ;;  %v1163_v14 = vpop.f32.mrb[26].mxu1  ;;  %v1082_v15 = vpop.f32.mrb[27].mxu0 }
 0x12a   :  { %891 = vst.msk [vmem:[%s1640_s3 + $0x28] sm:$0xf] %vm880_vm0, %v1015_v8  ;;  %v1016_v17 = vpack.c.bf16 %v785_v9, %v785_v9  ;;  %v617_v18 = vadd.f32 %v1080_v10, %v1531_v16  ;;  %v1083_v19 = vadd.f32 %v1082_v15, %v1081_v12  ;;  %v1164_v20 = vpop.f32.mrb[27].mxu1 }
 0x12b   :  { %v1165_v21 = vadd.f32 %v1164_v20, %v1163_v14 }
 0x12c   :  { %892 = vst.msk [vmem:[%s1640_s3 + $0x2c] sm:$0xf] %vm880_vm0, %v1016_v17  ;;  %v737_v22 = vadd.f32 %v1162_v13, %v617_v18  ;;  %v620_v23 = vadd.f32 %v1083_v19, %v1531_v16 }
 0x12e   :  { %v786_v24 = vmax.f32 %v737_v22, 0.0  ;;  %v740_v25 = vadd.f32 %v1165_v21, %v620_v23  ;;  %v1084_v26 = vpop.f32.mrb[28].mxu0 }
 0x12f   :  { %v1166_v27 = vpop.f32.mrb[28].mxu1  ;;  %v1085_v28 = vpop.f32.mrb[29].mxu0 }
 0x130   :  { %v1017_v29 = vpack.c.bf16 %v786_v24, %v786_v24  ;;  %v787_v30 = vmax.f32 %v740_v25, 0.0  ;;  %v1086_v31 = vadd.f32 %v1085_v28, %v1084_v26  ;;  %v1167_v32 = vpop.f32.mrb[29].mxu1  ;;  %v1087_v33 = vpop.f32.mrb[30].mxu0 }
 0x131   :  { %v1168_v34 = vadd.f32 %v1167_v32, %v1166_v27  ;;  %v1169_v35 = vpop.f32.mrb[30].mxu1  ;;  %v1088_v36 = vpop.f32.mrb[31].mxu0 }
 0x132   :  { %893 = vst.msk [vmem:[%s1640_s3 + $0x30] sm:$0xf] %vm880_vm0, %v1017_v29  ;;  %v1018_v37 = vpack.c.bf16 %v787_v30, %v787_v30  ;;  %v625_v38 = vadd.f32 %v1086_v31, %v1531_v16  ;;  %v1089_v39 = vadd.f32 %v1088_v36, %v1087_v33  ;;  %v1170_v40 = vpop.f32.mrb[31].mxu1 }
 0x133   :  { %v1171_v41 = vadd.f32 %v1170_v40, %v1169_v35 }
 0x134   :  { %894 = vst.msk [vmem:[%s1640_s3 + $0x34] sm:$0xf] %vm880_vm0, %v1018_v37  ;;  %v745_v42 = vadd.f32 %v1168_v34, %v625_v38  ;;  %v628_v43 = vadd.f32 %v1089_v39, %v1531_v16 }
 0x136   :  { %v788_v44 = vmax.f32 %v745_v42, 0.0  ;;  %v748_v45 = vadd.f32 %v1171_v41, %v628_v43  ;;  %v1090_v46 = vpop.f32.mrb[32].mxu0 }
 0x137   :  { %v1172_v47 = vpop.f32.mrb[32].mxu1  ;;  %v1091_v48 = vpop.f32.mrb[33].mxu0 }
 0x138   :  { %v1019_v49 = vpack.c.bf16 %v788_v44, %v788_v44  ;;  %v789_v50 = vmax.f32 %v748_v45, 0.0  ;;  %v1092_v51 = vadd.f32 %v1091_v48, %v1090_v46  ;;  %v1173_v52 = vpop.f32.mrb[33].mxu1  ;;  %v1093_v53 = vpop.f32.mrb[34].mxu0 }
 0x139   :  { %v1174_v54 = vadd.f32 %v1173_v52, %v1172_v47  ;;  %v1175_v55 = vpop.f32.mrb[34].mxu1  ;;  %v1094_v56 = vpop.f32.mrb[35].mxu0 }
 0x13a   :  { %895 = vst.msk [vmem:[%s1640_s3 + $0x38] sm:$0xf] %vm880_vm0, %v1019_v49  ;;  %v1020_v57 = vpack.c.bf16 %v789_v50, %v789_v50  ;;  %v633_v58 = vadd.f32 %v1092_v51, %v1531_v16  ;;  %v1095_v59 = vadd.f32 %v1094_v56, %v1093_v53  ;;  %v1176_v60 = vpop.f32.mrb[35].mxu1 }
 0x13b   :  { %v1177_v61 = vadd.f32 %v1176_v60, %v1175_v55 }
 0x13c   :  { %896 = vst.msk [vmem:[%s1640_s3 + $0x3c] sm:$0xf] %vm880_vm0, %v1020_v57  ;;  %v753_v62 = vadd.f32 %v1174_v54, %v633_v58  ;;  %v636_v63 = vadd.f32 %v1095_v59, %v1531_v16 }
 0x13e   :  { %v790_v0 = vmax.f32 %v753_v62, 0.0  ;;  %v756_v1 = vadd.f32 %v1177_v61, %v636_v63  ;;  %v1096_v2 = vpop.f32.mrb[36].mxu0 }
 0x13f   :  { %v1178_v3 = vpop.f32.mrb[36].mxu1  ;;  %v1097_v4 = vpop.f32.mrb[37].mxu0 }
 0x140   :  { %v1021_v5 = vpack.c.bf16 %v790_v0, %v790_v0  ;;  %v791_v6 = vmax.f32 %v756_v1, 0.0  ;;  %v1098_v7 = vadd.f32 %v1097_v4, %v1096_v2  ;;  %v1179_v8 = vpop.f32.mrb[37].mxu1  ;;  %v1099_v9 = vpop.f32.mrb[38].mxu0 }
 0x141   :  { %v1180_v10 = vadd.f32 %v1179_v8, %v1178_v3  ;;  %v1181_v11 = vpop.f32.mrb[38].mxu1  ;;  %v1100_v12 = vpop.f32.mrb[39].mxu0 }
 0x142   :  { %897 = vst.msk [vmem:[%s1640_s3 + $0x40] sm:$0xf] %vm880_vm0, %v1021_v5  ;;  %v1022_v13 = vpack.c.bf16 %v791_v6, %v791_v6  ;;  %v641_v14 = vadd.f32 %v1098_v7, %v1531_v16  ;;  %v1101_v15 = vadd.f32 %v1100_v12, %v1099_v9  ;;  %v1182_v17 = vpop.f32.mrb[39].mxu1 }
 0x143   :  { %v1183_v18 = vadd.f32 %v1182_v17, %v1181_v11 }
 0x144   :  { %898 = vst.msk [vmem:[%s1640_s3 + $0x44] sm:$0xf] %vm880_vm0, %v1022_v13  ;;  %v761_v19 = vadd.f32 %v1180_v10, %v641_v14  ;;  %v644_v20 = vadd.f32 %v1101_v15, %v1531_v16 }
 0x146   :  { %v792_v21 = vmax.f32 %v761_v19, 0.0  ;;  %v764_v22 = vadd.f32 %v1183_v18, %v644_v20  ;;  %v1102_v23 = vpop.f32.mrb[40].mxu0 }
 0x147   :  { %v1184_v24 = vpop.f32.mrb[40].mxu1  ;;  %v1103_v25 = vpop.f32.mrb[41].mxu0 }
 0x148   :  { %v1023_v26 = vpack.c.bf16 %v792_v21, %v792_v21  ;;  %v793_v27 = vmax.f32 %v764_v22, 0.0  ;;  %v1104_v28 = vadd.f32 %v1103_v25, %v1102_v23  ;;  %v1185_v29 = vpop.f32.mrb[41].mxu1  ;;  %v1105_v30 = vpop.f32.mrb[42].mxu0 }
 0x149   :  { %v1186_v31 = vadd.f32 %v1185_v29, %v1184_v24  ;;  %v1187_v32 = vpop.f32.mrb[42].mxu1  ;;  %v1106_v33 = vpop.f32.mrb[43].mxu0 }
 0x14a   :  { %899 = vst.msk [vmem:[%s1640_s3 + $0x48] sm:$0xf] %vm880_vm0, %v1023_v26  ;;  %v1024_v34 = vpack.c.bf16 %v793_v27, %v793_v27  ;;  %v649_v35 = vadd.f32 %v1104_v28, %v1531_v16  ;;  %v1188_v36 = vpop.f32.mrb[43].mxu1 }
 0x14c   :  { %900 = vst.msk [vmem:[%s1640_s3 + $0x4c] sm:$0xf] %vm880_vm0, %v1024_v34  ;;  %v769_v37 = vadd.f32 %v1186_v31, %v649_v35 }
 0x14e   :  { %v794_v38 = vmax.f32 %v769_v37, 0.0 }
 0x150   :  { %v1025_v39 = vpack.c.bf16 %v794_v38, %v794_v38 }
 0x152   :  { %902 = vst.msk [vmem:[%s1640_s3 + $0x50] sm:$0x1] %vm901_vm1, %v1025_v39 }

// kernel: cnn_forward.6
= control target key start
LH: loop header
LB: loop body
LE: loop exit
PB: predicated region body
PF: predicated region fallthrough
CT: control target
= control target key end

     0   :  { %vm372_vm0 = vcmask 523264   ;;  %vm546_vm1 = vcmask 519168   ;;  %s909_s1 = inlined_call_operand.vmem [shape: bf16[576,64], index: 1, kind: input, shape index: {}]   ;;  %s910_s0 = inlined_call_operand.vmem [shape: bf16[32,576], index: 0, kind: input, shape index: {}]   ;;  %s911_s2 = inlined_call_operand.vmem [shape: f32[1,64], index: 2, kind: input, shape index: {}]   ;;  %s912_s3 = inlined_call_operand.vmem [shape: bf16[32,64], index: 3, kind: output, shape index: {}]  }
   0x1   :  { %v686_v0 = vld [vmem:[%s909_s1 + $0x40] sm:$0xff]   ;;  %v690_v4 = vld [vmem:[%s909_s1 + $0x48] sm:$0xff]   ;;  %v694_v8 = vld [vmem:[%s909_s1 + $0x50] sm:$0xff]  }
   0x2   :  { %v687_v1 = vld [vmem:[%s909_s1] sm:$0xff]   ;;  %612 = vmatprep.subr.bf16.mxu0 %v686_v0  ;;  %v691_v5 = vld [vmem:[%s909_s1 + $0x8] sm:$0xff]   ;;  %v695_v9 = vld [vmem:[%s909_s1 + $0x10] sm:$0xff]  }
   0x3   :  { %v688_v2 = vld [vmem:[%s909_s1 + $0xc0] sm:$0xff]   ;;  %613 = vmatpush3.bf16.msra.mxu0 %v687_v1  ;;  %v692_v6 = vld [vmem:[%s909_s1 + $0xc8] sm:$0xff]   ;;  %v696_v10 = vld [vmem:[%s909_s1 + $0xd0] sm:$0xff]  }
   0x4   :  { %v689_v3 = vld [vmem:[%s909_s1 + $0x80] sm:$0xff]   ;;  %640 = vmatprep.subr.bf16.mxu1 %v688_v2  ;;  %614 = vmatprep.subr.bf16.mxu0 %v690_v4  ;;  %v693_v7 = vld [vmem:[%s909_s1 + $0x88] sm:$0xff]   ;;  %v697_v11 = vld [vmem:[%s909_s1 + $0x90] sm:$0xff]  }
   0x5   :  { %641 = vmatpush3.bf16.msra.mxu1 %v689_v3  ;;  %v698_v12 = vld [vmem:[%s909_s1 + $0x58] sm:$0xff]   ;;  %v702_v16 = vld [vmem:[%s909_s1 + $0x60] sm:$0xff]   ;;  %v706_v20 = vld [vmem:[%s909_s1 + $0x68] sm:$0xff]  }
   0x6   :  { %642 = vmatprep.subr.bf16.mxu1 %v692_v6  ;;  %v699_v13 = vld [vmem:[%s909_s1 + $0x18] sm:$0xff]   ;;  %v703_v17 = vld [vmem:[%s909_s1 + $0x20] sm:$0xff]   ;;  %v707_v21 = vld [vmem:[%s909_s1 + $0x28] sm:$0xff]  }
   0x7   :  { %615 = vmatpush3.bf16.msra.mxu0 %v691_v5  ;;  %v700_v14 = vld [vmem:[%s909_s1 + $0xd8] sm:$0xff]   ;;  %v704_v18 = vld [vmem:[%s909_s1 + $0xe0] sm:$0xff]   ;;  %v708_v22 = vld [vmem:[%s909_s1 + $0xe8] sm:$0xff]  }
   0x8   :  { %616 = vmatprep.subr.bf16.mxu0 %v694_v8  ;;  %v701_v15 = vld [vmem:[%s909_s1 + $0x98] sm:$0xff]   ;;  %v705_v19 = vld [vmem:[%s909_s1 + $0xa0] sm:$0xff]   ;;  %v709_v23 = vld [vmem:[%s909_s1 + $0xa8] sm:$0xff]  }
   0x9   :  { %643 = vmatpush3.bf16.msra.mxu1 %v693_v7  ;;  %v710_v24 = vld [vmem:[%s909_s1 + $0x70] sm:$0xff]   ;;  %v714_v28 = vld [vmem:[%s909_s1 + $0x78] sm:$0xff]   ;;  %v721_v34 = vld [vmem:[%s909_s1 + $0x100] sm:$0xff]  }
   0xa   :  { %644 = vmatprep.subr.bf16.mxu1 %v696_v10  ;;  %v711_v25 = vld [vmem:[%s909_s1 + $0x30] sm:$0xff]   ;;  %v715_v29 = vld [vmem:[%s909_s1 + $0x38] sm:$0xff]   ;;  %v724_v36 = vld [vmem:[%s910_s0 + $0xc] ss:$20 sps:$4 sm:$0xff]  }
   0xb   :  { %617 = vmatpush3.bf16.msra.mxu0 %v695_v9  ;;  %v712_v26 = vld [vmem:[%s909_s1 + $0xf0] sm:$0xff]   ;;  %v716_v30 = vld [vmem:[%s909_s1 + $0xf8] sm:$0xff]   ;;  %v725_v37 = vld [vmem:[%s909_s1 + $0x108] sm:$0xff]   ;;  %460 = vmatprep.mubr.bf16.mxu1 %v724_v36 }
   0xc   :  { %618 = vmatprep.subr.bf16.mxu0 %v698_v12  ;;  %v713_v27 = vld [vmem:[%s909_s1 + $0xb0] sm:$0xff]   ;;  %v719_v32 = vld [vmem:[%s910_s0 + $0x4] ss:$20 sps:$4 sm:$0xff]   ;;  %v722_v35 = vld [vmem:[%s910_s0 + $0x8] ss:$20 sps:$4 sm:$0xff]  }
   0xd   :  { %645 = vmatpush3.bf16.msra.mxu1 %v697_v11  ;;  %v717_v31 = vld [vmem:[%s910_s0] ss:$20 sps:$4 sm:$0xff]   ;;  %v720_v33 = vld [vmem:[%s909_s1 + $0xb8] sm:$0xff]   ;;  %411 = vmatprep.mubr.bf16.mxu0 %v719_v32  ;;  %v732_v42 = vld [vmem:[%s910_s0 + $0x30] ss:$20 sps:$4 sm:$0xff]  }
   0xe   :  { %646 = vmatprep.subr.bf16.mxu1 %v700_v14  ;;  %v726_v38 = vld [vmem:[%s910_s0 + $0x2c] ss:$20 sps:$4 sm:$0xff]   ;;  %v728_v39 = vld [vmem:[%s910_s0 + $0x28] ss:$20 sps:$4 sm:$0xff]   ;;  %v729_v40 = vld [vmem:[%s909_s1 + $0x110] sm:$0xff]  }
   0xf   :  { %619 = vmatpush3.bf16.msra.mxu0 %v699_v13  ;;  %v730_v41 = vld [vmem:[%s910_s0 + $0x34] ss:$20 sps:$4 sm:$0xff]   ;;  %v733_v43 = vld [vmem:[%s909_s1 + $0x118] sm:$0xff]   ;;  %v734_v44 = vld [vmem:[%s910_s0 + $0x10] ss:$20 sps:$4 sm:$0xff]  }
  0x10   :  { %620 = vmatprep.subr.bf16.mxu0 %v702_v16  ;;  %v735_v45 = vld [vmem:[%s910_s0 + $0x38] ss:$20 sps:$4 sm:$0xff]   ;;  %v555_v47 = vld [vmem:[%s911_s2] ss:$0 sm:$0xff] }
  0x11   :  { %647 = vmatpush3.bf16.msra.mxu1 %v701_v15 }
  0x12   :  { %648 = vmatprep.subr.bf16.mxu1 %v704_v18 }
  0x13   :  { %621 = vmatpush3.bf16.msra.mxu0 %v703_v17 }
  0x14   :  { %622 = vmatprep.subr.bf16.mxu0 %v706_v20 }
  0x15   :  { %649 = vmatpush3.bf16.msra.mxu1 %v705_v19 }
  0x16   :  { %650 = vmatprep.subr.bf16.mxu1 %v708_v22 }
  0x17   :  { %623 = vmatpush3.bf16.msra.mxu0 %v707_v21 }
  0x18   :  { %624 = vmatprep.subr.bf16.mxu0 %v710_v24 }
  0x19   :  { %651 = vmatpush3.bf16.msra.mxu1 %v709_v23 }
  0x1a   :  { %652 = vmatprep.subr.bf16.mxu1 %v712_v26 }
  0x1b   :  { %625 = vmatpush3.bf16.msra.mxu0 %v711_v25 }
  0x1c   :  { %626 = vmatprep.subr.bf16.mxu0 %v714_v28 }
  0x1d   :  { %653 = vmatpush3.bf16.msra.mxu1 %v713_v27 }
  0x1e   :  { %654 = vmatprep.subr.bf16.mxu1 %v716_v30 }
  0x1f   :  { %627 = vmatpush3.bf16.msra.mxu0 %v715_v29 }
  0x20   :  { %674 = vmatprep.subr.bf16.mxu0 %v721_v34 }
  0x21   :  { %655 = vmatpush3.bf16.msra.mxu1 %v720_v33 }
  0x22   :  { %412 = vmatmul.mubr.bf16.vlgmr.msra.gmra.mrb[0].mxu0 %v717_v31 }
  0x23   :  { %675 = vmatpush3.bf16.msra.mxu0 %v721_v34  ;;  %419 = vmatprep.mubr.bf16.mxu0 %v726_v38 }
  0x24   :  { %461 = vmatmul.mubr.bf16.vlgmr.msra.gmra.mrb[0].mxu1 %v722_v35  ;;  %676 = vmatprep.subr.bf16.mxu0 %v725_v37 }
  0x25   :  { %468 = vmatprep.mubr.bf16.mxu1 %v730_v41 }
  0x27   :  { %677 = vmatpush3.bf16.msra.mxu0 %v725_v37 }
  0x28   :  { %678 = vmatprep.subr.bf16.mxu0 %v729_v40 }
  0x2a   :  { %420 = vmatmul.mubr.bf16.gmra.mrb[4].mxu0 %v728_v39 }
  0x2b   :  { %682 = vmatprep.mubr.msk.bf16.mxu0 %vm372_vm0, %v734_v44  ;;  %679 = vmatpush3.bf16.msra.mxu0 %v729_v40 }
  0x2c   :  { %469 = vmatmul.mubr.bf16.gmra.mrb[4].mxu1 %v732_v42  ;;  %680 = vmatprep.subr.bf16.mxu0 %v733_v43 }
  0x2f   :  { %681 = vmatpush3.bf16.msra.mxu0 %v733_v43 }
  0x32   :  { %683 = vmatmul.mubr.msk.bf16.vlgmr.msra.gmra.mrb[8].mxu0 %vm372_vm0, %v735_v45 }
  0xf5   :  { %v628_v46 = vpop.f32.mrb[0].mxu0 }
  0xf6   :  { %v629_v48 = vpop.f32.mrb[1].mxu0 }
  0xf7   :  { %v630_v49 = vadd.f32 %v629_v48, %v628_v46  ;;  %v631_v50 = vpop.f32.mrb[2].mxu0  ;;  %v656_v51 = vpop.f32.mrb[0].mxu1 }
  0xf8   :  { %v632_v52 = vpop.f32.mrb[3].mxu0  ;;  %v657_v55 = vpop.f32.mrb[1].mxu1 }
  0xf9   :  { %v414_v53 = vadd.f32 %v630_v49, %v555_v47  ;;  %v633_v54 = vadd.f32 %v632_v52, %v631_v50  ;;  %v658_v56 = vadd.f32 %v657_v55, %v656_v51  ;;  %v659_v57 = vpop.f32.mrb[2].mxu1 }
  0xfa   :  { %v660_v59 = vpop.f32.mrb[3].mxu1 }
  0xfb   :  { %v417_v58 = vadd.f32 %v633_v54, %v555_v47  ;;  %v661_v60 = vadd.f32 %v660_v59, %v659_v57  ;;  %v463_v61 = vadd.f32 %v658_v56, %v414_v53 }
  0xfd   :  { %v634_v62 = vpop.f32.mrb[4].mxu0  ;;  %v466_v0 = vadd.f32 %v661_v60, %v417_v58 }
  0xfe   :  { %v635_v63 = vpop.f32.mrb[5].mxu0 }
  0xff   :  { %v636_v1 = vadd.f32 %v635_v63, %v634_v62  ;;  %v637_v2 = vpop.f32.mrb[6].mxu0  ;;  %v662_v3 = vpop.f32.mrb[4].mxu1 }
 0x100   :  { %v638_v4 = vpop.f32.mrb[7].mxu0  ;;  %v663_v7 = vpop.f32.mrb[5].mxu1 }
 0x101   :  { %v422_v5 = vadd.f32 %v636_v1, %v555_v47  ;;  %v639_v6 = vadd.f32 %v638_v4, %v637_v2  ;;  %v664_v8 = vadd.f32 %v663_v7, %v662_v3  ;;  %v665_v9 = vpop.f32.mrb[6].mxu1 }
 0x102   :  { %v666_v11 = vpop.f32.mrb[7].mxu1 }
 0x103   :  { %v425_v10 = vadd.f32 %v639_v6, %v555_v47  ;;  %v667_v12 = vadd.f32 %v666_v11, %v665_v9  ;;  %v471_v13 = vadd.f32 %v664_v8, %v422_v5 }
 0x105   :  { %v684_v14 = vpop.f32.mrb[8].mxu0  ;;  %v474_v15 = vadd.f32 %v667_v12, %v425_v10 }
 0x106   :  { %v520_v16 = vadd.f32 %v684_v14, %v471_v13  ;;  %v511_v17 = vpop.f32.mrb[9].mxu0 }
 0x107   :  { %v512_v18 = vadd.f32 %v511_v17, %v463_v61  ;;  %v685_v19 = vpop.f32.mrb[10].mxu0 }
 0x108   :  { %v528_v20 = vmax.f32 %v520_v16, 0.0  ;;  %v523_v21 = vadd.f32 %v685_v19, %v474_v15  ;;  %v514_v22 = vpop.f32.mrb[11].mxu0 }
 0x109   :  { %v526_v23 = vmax.f32 %v512_v18, 0.0  ;;  %v515_v24 = vadd.f32 %v514_v22, %v466_v0 }
 0x10a   :  { %v610_v25 = vpack.c.bf16 %v528_v20, %v528_v20  ;;  %v529_v26 = vmax.f32 %v523_v21, 0.0 }
 0x10b   :  { %v608_v27 = vpack.c.bf16 %v526_v23, %v526_v23  ;;  %v527_v28 = vmax.f32 %v515_v24, 0.0 }
 0x10c   :  { %549 = vst.msk [vmem:[%s912_s3 + $0x8] sm:$0xf] %vm546_vm1, %v610_v25  ;;  %v611_v29 = vpack.c.bf16 %v529_v26, %v529_v26 }
 0x10d   :  { %547 = vst.msk [vmem:[%s912_s3] sm:$0xf] %vm546_vm1, %v608_v27  ;;  %v609_v30 = vpack.c.bf16 %v527_v28, %v527_v28 }
 0x10e   :  { %550 = vst.msk [vmem:[%s912_s3 + $0xc] sm:$0xf] %vm546_vm1, %v611_v29 }
 0x10f   :  { %548 = vst.msk [vmem:[%s912_s3 + $0x4] sm:$0xf] %vm546_vm1, %v609_v30 }

// kernel: cnn_forward.7
= control target key start
LH: loop header
LB: loop body
LE: loop exit
PB: predicated region body
PF: predicated region fallthrough
CT: control target
= control target key end

     0   :  { %v286_v36 = vlaneseq  ;;  %v4402_v37 = vmov 1966171168   ;;  %vm3285_vm0 = vcmask 17408   ;;  %s5764_s1 = inlined_call_operand.vmem [shape: bf16[1024,512], index: 1, kind: input, shape index: {}]   ;;  %s5765_s0 = inlined_call_operand.vmem [shape: bf16[2,1024], index: 0, kind: input, shape index: {}]   ;;  %s5766_s3 = inlined_call_operand.vmem [shape: bf16[512,512], index: 3, kind: input, shape index: {}]   ;;  %s5767_s5 = inlined_call_operand.vmem [shape: bf16[512,3], index: 5, kind: input, shape index: {}]   ;;  %s5768_s2 = inlined_call_operand.vmem [shape: f32[1,512], index: 2, kind: input, shape index: {}]   ;;  %s5769_s4 = inlined_call_operand.vmem [shape: f32[1,512], index: 4, kind: input, shape index: {}]   ;;  %s5770_s6 = inlined_call_operand.vmem [shape: f32[1,3], index: 6, kind: input, shape index: {}]   ;;  %s5771_s7 = inlined_call_operand.vmem [shape: f32[2,3], index: 7, kind: output, shape index: {}]  }
   0x1   :  { %v3793_v0 = vld [vmem:[%s5764_s1 + $0x4] ss:$16 sps:$4 sm:$0xff]   ;;  %v3795_v1 = vld [vmem:[%s5764_s1 + $0xc] ss:$16 sps:$4 sm:$0xff]   ;;  %v3797_v2 = vld [vmem:[%s5764_s1] ss:$16 sps:$4 sm:$0xff]   ;;  %v309_v38 = vunpack.c.l.s4 %v4402_v37 }
   0x2   :  { %1644 = vmatprep.subr.bf16.mxu0 %v3793_v0  ;;  %v3798_v3 = vld [vmem:[%s5764_s1 + $0x8] ss:$16 sps:$4 sm:$0xff]   ;;  %1808 = vmatprep.subr.bf16.mxu1 %v3795_v1  ;;  %v3799_v4 = vld [vmem:[%s5764_s1 + $0x24] ss:$16 sps:$4 sm:$0xff]   ;;  %v3801_v5 = vld [vmem:[%s5764_s1 + $0x2c] ss:$16 sps:$4 sm:$0xff]  }
   0x3   :  { %1645 = vmatpush1.bf16.msra.mxu0 %v3797_v2  ;;  %1809 = vmatpush1.bf16.msra.mxu1 %v3798_v3  ;;  %v3803_v6 = vld [vmem:[%s5764_s1 + $0x20] ss:$16 sps:$4 sm:$0xff]   ;;  %v3804_v7 = vld [vmem:[%s5764_s1 + $0x28] ss:$16 sps:$4 sm:$0xff]   ;;  %v3805_v8 = vld [vmem:[%s5764_s1 + $0x44] ss:$16 sps:$4 sm:$0xff]   ;;  %v310_v43 = vunpack.c.0.s8 %v309_v38 }
   0x4   :  { %1646 = vmatprep.subr.bf16.mxu0 %v3799_v4  ;;  %1810 = vmatprep.subr.bf16.mxu1 %v3801_v5  ;;  %v3807_v9 = vld [vmem:[%s5764_s1 + $0x4c] ss:$16 sps:$4 sm:$0xff]   ;;  %v3809_v10 = vld [vmem:[%s5764_s1 + $0x40] ss:$16 sps:$4 sm:$0xff]   ;;  %v3810_v11 = vld [vmem:[%s5764_s1 + $0x48] ss:$16 sps:$4 sm:$0xff]  }
   0x5   :  { %v3811_v12 = vld [vmem:[%s5764_s1 + $0x64] ss:$16 sps:$4 sm:$0xff]   ;;  %v3813_v13 = vld [vmem:[%s5764_s1 + $0x6c] ss:$16 sps:$4 sm:$0xff]   ;;  %v3815_v14 = vld [vmem:[%s5764_s1 + $0x60] ss:$16 sps:$4 sm:$0xff]  }
   0x6   :  { %v3816_v15 = vld [vmem:[%s5764_s1 + $0x68] ss:$16 sps:$4 sm:$0xff]   ;;  %v3817_v16 = vld [vmem:[%s5764_s1 + $0x84] ss:$16 sps:$4 sm:$0xff]   ;;  %v3819_v17 = vld [vmem:[%s5764_s1 + $0x8c] ss:$16 sps:$4 sm:$0xff]  }
   0x7   :  { %1647 = vmatpush1.bf16.msra.mxu0 %v3803_v6  ;;  %1811 = vmatpush1.bf16.msra.mxu1 %v3804_v7  ;;  %v3821_v18 = vld [vmem:[%s5764_s1 + $0x80] ss:$16 sps:$4 sm:$0xff]   ;;  %v3822_v19 = vld [vmem:[%s5764_s1 + $0x88] ss:$16 sps:$4 sm:$0xff]   ;;  %v3823_v20 = vld [vmem:[%s5764_s1 + $0xa4] ss:$16 sps:$4 sm:$0xff]  }
   0x8   :  { %1648 = vmatprep.subr.bf16.mxu0 %v3805_v8  ;;  %1812 = vmatprep.subr.bf16.mxu1 %v3807_v9  ;;  %v3825_v21 = vld [vmem:[%s5764_s1 + $0xac] ss:$16 sps:$4 sm:$0xff]   ;;  %v3827_v22 = vld [vmem:[%s5764_s1 + $0xa0] ss:$16 sps:$4 sm:$0xff]   ;;  %v3828_v23 = vld [vmem:[%s5764_s1 + $0xa8] ss:$16 sps:$4 sm:$0xff]  }
   0x9   :  { %v3829_v24 = vld [vmem:[%s5764_s1 + $0xc4] ss:$16 sps:$4 sm:$0xff]   ;;  %v3831_v25 = vld [vmem:[%s5764_s1 + $0xcc] ss:$16 sps:$4 sm:$0xff]   ;;  %v3833_v26 = vld [vmem:[%s5764_s1 + $0xc0] ss:$16 sps:$4 sm:$0xff]  }
   0xa   :  { %v3834_v27 = vld [vmem:[%s5764_s1 + $0xc8] ss:$16 sps:$4 sm:$0xff]   ;;  %v3835_v28 = vld [vmem:[%s5764_s1 + $0xe4] ss:$16 sps:$4 sm:$0xff]   ;;  %v3837_v29 = vld [vmem:[%s5764_s1 + $0xec] ss:$16 sps:$4 sm:$0xff]  }
   0xb   :  { %1649 = vmatpush1.bf16.msra.mxu0 %v3809_v10  ;;  %1813 = vmatpush1.bf16.msra.mxu1 %v3810_v11  ;;  %v3839_v30 = vld [vmem:[%s5764_s1 + $0xe0] ss:$16 sps:$4 sm:$0xff]   ;;  %v3840_v31 = vld [vmem:[%s5764_s1 + $0xe8] ss:$16 sps:$4 sm:$0xff]   ;;  %v3841_v32 = vld [vmem:[%s5764_s1 + $0x104] ss:$16 sps:$4 sm:$0xff]  }
   0xc   :  { %1650 = vmatprep.subr.bf16.mxu0 %v3811_v12  ;;  %1814 = vmatprep.subr.bf16.mxu1 %v3813_v13  ;;  %v3843_v33 = vld [vmem:[%s5764_s1 + $0x10c] ss:$16 sps:$4 sm:$0xff]   ;;  %v3845_v34 = vld [vmem:[%s5764_s1 + $0x100] ss:$16 sps:$4 sm:$0xff]   ;;  %v3846_v35 = vld [vmem:[%s5764_s1 + $0x108] ss:$16 sps:$4 sm:$0xff]  }
   0xd   :  { %v3847_v39 = vld [vmem:[%s5764_s1 + $0x124] ss:$16 sps:$4 sm:$0xff]   ;;  %v3849_v40 = vld [vmem:[%s5764_s1 + $0x12c] ss:$16 sps:$4 sm:$0xff]   ;;  %v3851_v41 = vld [vmem:[%s5764_s1 + $0x120] ss:$16 sps:$4 sm:$0xff]  }
   0xe   :  { %v4560_v42 = vshrl.u32 %v286_v36, 7  ;;  %v3852_v44 = vld [vmem:[%s5764_s1 + $0x128] ss:$16 sps:$4 sm:$0xff]   ;;  %v3853_v45 = vld [vmem:[%s5764_s1 + $0x144] ss:$16 sps:$4 sm:$0xff]  }
   0xf   :  { %1651 = vmatpush1.bf16.msra.mxu0 %v3815_v14  ;;  %1815 = vmatpush1.bf16.msra.mxu1 %v3816_v15  ;;  %v3855_v46 = vld [vmem:[%s5764_s1 + $0x14c] ss:$16 sps:$4 sm:$0xff]   ;;  %v3857_v47 = vld [vmem:[%s5764_s1 + $0x140] ss:$16 sps:$4 sm:$0xff]   ;;  %v3858_v48 = vld [vmem:[%s5764_s1 + $0x148] ss:$16 sps:$4 sm:$0xff]  }
  0x10   :  { %1652 = vmatprep.subr.bf16.mxu0 %v3817_v16  ;;  %1816 = vmatprep.subr.bf16.mxu1 %v3819_v17  ;;  %v4578_v49 = vsub.s32 %v310_v43, %v4560_v42  ;;  %v3859_v50 = vld [vmem:[%s5764_s1 + $0x164] ss:$16 sps:$4 sm:$0xff]   ;;  %v3861_v51 = vld [vmem:[%s5764_s1 + $0x16c] ss:$16 sps:$4 sm:$0xff]   ;;  %v3863_v53 = vld [vmem:[%s5764_s1 + $0x160] ss:$16 sps:$4 sm:$0xff]  }
  0x11   :  { %v27_v52 = vld [vmem:[%s5765_s0] sm:$0xff]  ;;  %v3864_v55 = vld [vmem:[%s5764_s1 + $0x168] ss:$16 sps:$4 sm:$0xff]   ;;  %v3867_v57 = vld [vmem:[%s5764_s1 + $0x18c] ss:$16 sps:$4 sm:$0xff]  }
  0x12   :  { %v314_v54 = vrot.slane %v27_v52, %v4578_v49  ;;  %v3865_v56 = vld [vmem:[%s5764_s1 + $0x184] ss:$16 sps:$4 sm:$0xff]   ;;  %v3869_v59 = vld [vmem:[%s5764_s1 + $0x180] ss:$16 sps:$4 sm:$0xff]   ;;  %v3870_v61 = vld [vmem:[%s5764_s1 + $0x188] ss:$16 sps:$4 sm:$0xff]   ;;  %v307_v9 = vcombine.high %v27_v52, %v27_v52 }
  0x13   :  { %1653 = vmatpush1.bf16.msra.mxu0 %v3821_v18  ;;  %1817 = vmatpush1.bf16.msra.mxu1 %v3822_v19  ;;  %v3871_v62 = vld [vmem:[%s5764_s1 + $0x1a4] ss:$16 sps:$4 sm:$0xff]   ;;  %v3873_v63 = vld [vmem:[%s5764_s1 + $0x1ac] ss:$16 sps:$4 sm:$0xff]   ;;  %v3875_v0 = vld [vmem:[%s5764_s1 + $0x1a0] ss:$16 sps:$4 sm:$0xff]  }
  0x14   :  { %1654 = vmatprep.subr.bf16.mxu0 %v3823_v20  ;;  %1818 = vmatprep.subr.bf16.mxu1 %v3825_v21  ;;  %v322_v58 = vcombine.high %v314_v54, %v314_v54  ;;  %v3876_v1 = vld [vmem:[%s5764_s1 + $0x1a8] ss:$16 sps:$4 sm:$0xff]   ;;  %v3877_v2 = vld [vmem:[%s5764_s1 + $0x1c4] ss:$16 sps:$4 sm:$0xff]   ;;  %v3879_v3 = vld [vmem:[%s5764_s1 + $0x1cc] ss:$16 sps:$4 sm:$0xff]   ;;  %v321_v13 = vrot.slane %v307_v9, %v4578_v49  ;;  %v4656_v15 = vrot.slane %v314_v54, %v4578_v49 }
  0x15   :  { %v3881_v4 = vld [vmem:[%s5764_s1 + $0x1c0] ss:$16 sps:$4 sm:$0xff]   ;;  %v3882_v5 = vld [vmem:[%s5764_s1 + $0x1c8] ss:$16 sps:$4 sm:$0xff]   ;;  %v3883_v6 = vld [vmem:[%s5764_s1 + $0x1e4] ss:$16 sps:$4 sm:$0xff]  }
  0x16   :  { %v344_v60 = vrot.slane %v322_v58, %v4578_v49  ;;  %v3885_v7 = vld [vmem:[%s5764_s1 + $0x1ec] ss:$16 sps:$4 sm:$0xff]   ;;  %v3887_v8 = vld [vmem:[%s5764_s1 + $0x1e0] ss:$16 sps:$4 sm:$0xff]   ;;  %v3888_v10 = vld [vmem:[%s5764_s1 + $0x1e8] ss:$16 sps:$4 sm:$0xff]   ;;  %v323_v16 = vcombine.high %v321_v13, %v321_v13  ;;  %v4671_v21 = vrot.slane %v321_v13, %v4578_v49 }
  0x17   :  { %1655 = vmatpush1.bf16.msra.mxu0 %v3827_v22  ;;  %1819 = vmatpush1.bf16.msra.mxu1 %v3828_v23  ;;  %v3891_v11 = vld [vmem:[%s5764_s1 + $0x204] ss:$16 sps:$4 sm:$0xff]   ;;  %v3894_v12 = vld [vmem:[%s5764_s1 + $0x20c] ss:$16 sps:$4 sm:$0xff]   ;;  %v3889_v14 = vld [vmem:[%s5764_s1 + $0x200] ss:$16 sps:$4 sm:$0xff]  }
  0x18   :  { %1656 = vmatprep.subr.bf16.mxu0 %v3829_v24  ;;  %1820 = vmatprep.subr.bf16.mxu1 %v3831_v25  ;;  %v3892_v17 = vld [vmem:[%s5764_s1 + $0x208] ss:$16 sps:$4 sm:$0xff]   ;;  %v3897_v18 = vld [vmem:[%s5764_s1 + $0x224] ss:$16 sps:$4 sm:$0xff]   ;;  %v3900_v19 = vld [vmem:[%s5764_s1 + $0x22c] ss:$16 sps:$4 sm:$0xff]   ;;  %v4668_v20 = vrot.slane %v323_v16, %v4578_v49  ;;  %v354_v22 = vcombine.high %v344_v60, %v344_v60 }
  0x19   :  { %1676 = vmatprep.mubr.bf16.mxu0 %v344_v60  ;;  %1840 = vmatprep.mubr.bf16.mxu1 %v344_v60  ;;  %v3895_v23 = vld [vmem:[%s5764_s1 + $0x220] ss:$16 sps:$4 sm:$0xff]   ;;  %v3898_v24 = vld [vmem:[%s5764_s1 + $0x228] ss:$16 sps:$4 sm:$0xff]   ;;  %v3903_v25 = vld [vmem:[%s5764_s1 + $0x244] ss:$16 sps:$4 sm:$0xff]  }
  0x1a   :  { %v3916_v36 = vld [vmem:[%s5764_s1 + $0x288] ss:$16 sps:$4 sm:$0xff]   ;;  %v3921_v37 = vld [vmem:[%s5764_s1 + $0x2a4] ss:$16 sps:$4 sm:$0xff]   ;;  %v3924_v38 = vld [vmem:[%s5764_s1 + $0x2ac] ss:$16 sps:$4 sm:$0xff]  }
  0x1b   :  { %1657 = vmatpush1.bf16.msra.mxu0 %v3833_v26  ;;  %1821 = vmatpush1.bf16.msra.mxu1 %v3834_v27  ;;  %v3906_v26 = vld [vmem:[%s5764_s1 + $0x24c] ss:$16 sps:$4 sm:$0xff]   ;;  %v3901_v27 = vld [vmem:[%s5764_s1 + $0x240] ss:$16 sps:$4 sm:$0xff]   ;;  %v3934_v49 = vld [vmem:[%s5764_s1 + $0x2e8] ss:$16 sps:$4 sm:$0xff]  }
  0x1c   :  { %1658 = vmatprep.subr.bf16.mxu0 %v3835_v28  ;;  %1822 = vmatprep.subr.bf16.mxu1 %v3837_v29  ;;  %v3904_v28 = vld [vmem:[%s5764_s1 + $0x248] ss:$16 sps:$4 sm:$0xff]   ;;  %v3909_v29 = vld [vmem:[%s5764_s1 + $0x264] ss:$16 sps:$4 sm:$0xff]   ;;  %v3930_v43 = vld [vmem:[%s5764_s1 + $0x2cc] ss:$16 sps:$4 sm:$0xff]  }
  0x1d   :  { %v3937_v52 = vld [vmem:[%s5764_s1 + $0x300] ss:$16 sps:$4 sm:$0xff]   ;;  %v3945_v54 = vld [vmem:[%s5764_s1 + $0x324] ss:$16 sps:$4 sm:$0xff]   ;;  %v3970_v9 = vld [vmem:[%s5764_s1 + $0x3a8] ss:$16 sps:$4 sm:$0xff]  }
  0x1e   :  { %v3951_v58 = vld [vmem:[%s5764_s1 + $0x344] ss:$16 sps:$4 sm:$0xff]   ;;  %v3949_v60 = vld [vmem:[%s5764_s1 + $0x340] ss:$16 sps:$4 sm:$0xff]   ;;  %v3976_v13 = vld [vmem:[%s5764_s1 + $0x3c8] ss:$16 sps:$4 sm:$0xff]  }
  0x1f   :  { %1659 = vmatpush1.bf16.msra.mxu0 %v3839_v30  ;;  %1823 = vmatpush1.bf16.msra.mxu1 %v3840_v31  ;;  %v3912_v30 = vld [vmem:[%s5764_s1 + $0x26c] ss:$16 sps:$4 sm:$0xff]   ;;  %v3907_v31 = vld [vmem:[%s5764_s1 + $0x260] ss:$16 sps:$4 sm:$0xff]  }
  0x20   :  { %1660 = vmatprep.subr.bf16.mxu0 %v3841_v32  ;;  %1824 = vmatprep.subr.bf16.mxu1 %v3843_v33  ;;  %v3910_v32 = vld [vmem:[%s5764_s1 + $0x268] ss:$16 sps:$4 sm:$0xff]   ;;  %v3915_v33 = vld [vmem:[%s5764_s1 + $0x284] ss:$16 sps:$4 sm:$0xff]   ;;  %v3984_v16 = vld [vmem:[%s5764_s1 + $0x3ec] ss:$16 sps:$4 sm:$0xff]  }
  0x23   :  { %1661 = vmatpush1.bf16.msra.mxu0 %v3845_v34  ;;  %1825 = vmatpush1.bf16.msra.mxu1 %v3846_v35  ;;  %v3918_v34 = vld [vmem:[%s5764_s1 + $0x28c] ss:$16 sps:$4 sm:$0xff]   ;;  %v3913_v35 = vld [vmem:[%s5764_s1 + $0x280] ss:$16 sps:$4 sm:$0xff]  }
  0x24   :  { %1662 = vmatprep.subr.bf16.mxu0 %v3847_v39  ;;  %1826 = vmatprep.subr.bf16.mxu1 %v3849_v40  ;;  %v3919_v39 = vld [vmem:[%s5764_s1 + $0x2a0] ss:$16 sps:$4 sm:$0xff]   ;;  %v3922_v40 = vld [vmem:[%s5764_s1 + $0x2a8] ss:$16 sps:$4 sm:$0xff]  }
  0x27   :  { %1663 = vmatpush1.bf16.msra.mxu0 %v3851_v41  ;;  %1827 = vmatpush1.bf16.msra.mxu1 %v3852_v44  ;;  %v3927_v41 = vld [vmem:[%s5764_s1 + $0x2c4] ss:$16 sps:$4 sm:$0xff]   ;;  %v3925_v44 = vld [vmem:[%s5764_s1 + $0x2c0] ss:$16 sps:$4 sm:$0xff]  }
  0x28   :  { %1664 = vmatprep.subr.bf16.mxu0 %v3853_v45  ;;  %1828 = vmatprep.subr.bf16.mxu1 %v3855_v46  ;;  %v3928_v45 = vld [vmem:[%s5764_s1 + $0x2c8] ss:$16 sps:$4 sm:$0xff]   ;;  %v3933_v46 = vld [vmem:[%s5764_s1 + $0x2e4] ss:$16 sps:$4 sm:$0xff]  }
  0x2b   :  { %1665 = vmatpush1.bf16.msra.mxu0 %v3857_v47  ;;  %1829 = vmatpush1.bf16.msra.mxu1 %v3858_v48  ;;  %v3936_v47 = vld [vmem:[%s5764_s1 + $0x2ec] ss:$16 sps:$4 sm:$0xff]   ;;  %v3931_v48 = vld [vmem:[%s5764_s1 + $0x2e0] ss:$16 sps:$4 sm:$0xff]  }
  0x2c   :  { %1666 = vmatprep.subr.bf16.mxu0 %v3859_v50  ;;  %1830 = vmatprep.subr.bf16.mxu1 %v3861_v51  ;;  %v3939_v50 = vld [vmem:[%s5764_s1 + $0x304] ss:$16 sps:$4 sm:$0xff]   ;;  %v3942_v51 = vld [vmem:[%s5764_s1 + $0x30c] ss:$16 sps:$4 sm:$0xff]  }
  0x2f   :  { %1667 = vmatpush1.bf16.msra.mxu0 %v3863_v53  ;;  %1831 = vmatpush1.bf16.msra.mxu1 %v3864_v55  ;;  %v3940_v53 = vld [vmem:[%s5764_s1 + $0x308] ss:$16 sps:$4 sm:$0xff]   ;;  %v3948_v55 = vld [vmem:[%s5764_s1 + $0x32c] ss:$16 sps:$4 sm:$0xff]  }
  0x30   :  { %1668 = vmatprep.subr.bf16.mxu0 %v3865_v56  ;;  %1832 = vmatprep.subr.bf16.mxu1 %v3867_v57  ;;  %v3943_v56 = vld [vmem:[%s5764_s1 + $0x320] ss:$16 sps:$4 sm:$0xff]   ;;  %v3946_v57 = vld [vmem:[%s5764_s1 + $0x328] ss:$16 sps:$4 sm:$0xff]  }
  0x33   :  { %1669 = vmatpush1.bf16.msra.mxu0 %v3869_v59  ;;  %1833 = vmatpush1.bf16.msra.mxu1 %v3870_v61  ;;  %v3954_v59 = vld [vmem:[%s5764_s1 + $0x34c] ss:$16 sps:$4 sm:$0xff]   ;;  %v3952_v61 = vld [vmem:[%s5764_s1 + $0x348] ss:$16 sps:$4 sm:$0xff]  }
  0x34   :  { %1670 = vmatprep.subr.bf16.mxu0 %v3871_v62  ;;  %1834 = vmatprep.subr.bf16.mxu1 %v3873_v63  ;;  %v3957_v62 = vld [vmem:[%s5764_s1 + $0x364] ss:$16 sps:$4 sm:$0xff]   ;;  %v3960_v63 = vld [vmem:[%s5764_s1 + $0x36c] ss:$16 sps:$4 sm:$0xff]  }
  0x37   :  { %1671 = vmatpush1.bf16.msra.mxu0 %v3875_v0  ;;  %1835 = vmatpush1.bf16.msra.mxu1 %v3876_v1  ;;  %v3955_v0 = vld [vmem:[%s5764_s1 + $0x360] ss:$16 sps:$4 sm:$0xff]   ;;  %v3958_v1 = vld [vmem:[%s5764_s1 + $0x368] ss:$16 sps:$4 sm:$0xff]  }
  0x38   :  { %1672 = vmatprep.subr.bf16.mxu0 %v3877_v2  ;;  %1836 = vmatprep.subr.bf16.mxu1 %v3879_v3  ;;  %v3963_v2 = vld [vmem:[%s5764_s1 + $0x384] ss:$16 sps:$4 sm:$0xff]   ;;  %v3966_v3 = vld [vmem:[%s5764_s1 + $0x38c] ss:$16 sps:$4 sm:$0xff]  }
  0x3b   :  { %1673 = vmatpush1.bf16.msra.mxu0 %v3881_v4  ;;  %1837 = vmatpush1.bf16.msra.mxu1 %v3882_v5  ;;  %v3961_v4 = vld [vmem:[%s5764_s1 + $0x380] ss:$16 sps:$4 sm:$0xff]   ;;  %v3964_v5 = vld [vmem:[%s5764_s1 + $0x388] ss:$16 sps:$4 sm:$0xff]  }
  0x3c   :  { %1674 = vmatprep.subr.bf16.mxu0 %v3883_v6  ;;  %1838 = vmatprep.subr.bf16.mxu1 %v3885_v7  ;;  %v3969_v6 = vld [vmem:[%s5764_s1 + $0x3a4] ss:$16 sps:$4 sm:$0xff]   ;;  %v3972_v7 = vld [vmem:[%s5764_s1 + $0x3ac] ss:$16 sps:$4 sm:$0xff]  }
  0x3f   :  { %1675 = vmatpush1.bf16.msra.mxu0 %v3887_v8  ;;  %1839 = vmatpush1.bf16.msra.mxu1 %v3888_v10  ;;  %v3967_v8 = vld [vmem:[%s5764_s1 + $0x3a0] ss:$16 sps:$4 sm:$0xff]   ;;  %v3975_v10 = vld [vmem:[%s5764_s1 + $0x3c4] ss:$16 sps:$4 sm:$0xff]  }
  0x40   :  { %1685 = vmatprep.subr.bf16.mxu0 %v3891_v11  ;;  %1849 = vmatprep.subr.bf16.mxu1 %v3894_v12  ;;  %v3978_v11 = vld [vmem:[%s5764_s1 + $0x3cc] ss:$16 sps:$4 sm:$0xff]   ;;  %v3973_v12 = vld [vmem:[%s5764_s1 + $0x3c0] ss:$16 sps:$4 sm:$0xff]  }
  0x42   :  { %1677 = vmatmul.mubr.bf16.vlgmr.msra.gmra.mrb[0].mxu0 %v4656_v15  ;;  %1841 = vmatmul.mubr.bf16.vlgmr.msra.gmra.mrb[0].mxu1 %v4656_v15 }
  0x43   :  { %1686 = vmatpush1.bf16.msra.mxu0 %v3889_v14  ;;  %1850 = vmatpush1.bf16.msra.mxu1 %v3892_v17  ;;  %v3981_v14 = vld [vmem:[%s5764_s1 + $0x3e4] ss:$16 sps:$4 sm:$0xff]   ;;  %v3979_v17 = vld [vmem:[%s5764_s1 + $0x3e0] ss:$16 sps:$4 sm:$0xff]  }
  0x44   :  { %1687 = vmatprep.subr.bf16.mxu0 %v3897_v18  ;;  %1851 = vmatprep.subr.bf16.mxu1 %v3900_v19  ;;  %v3982_v18 = vld [vmem:[%s5764_s1 + $0x3e8] ss:$16 sps:$4 sm:$0xff]   ;;  %v3987_v19 = vld [vmem:[%s5764_s1 + $0x404] ss:$16 sps:$4 sm:$0xff]  }
  0x45   :  { %1717 = vmatprep.mubr.bf16.mxu0 %v354_v22  ;;  %1881 = vmatprep.mubr.bf16.mxu1 %v354_v22  ;;  %v3990_v22 = vld [vmem:[%s5764_s1 + $0x40c] ss:$16 sps:$4 sm:$0xff]  }
  0x47   :  { %1688 = vmatpush1.bf16.msra.mxu0 %v3895_v23  ;;  %1852 = vmatpush1.bf16.msra.mxu1 %v3898_v24  ;;  %v3985_v23 = vld [vmem:[%s5764_s1 + $0x400] ss:$16 sps:$4 sm:$0xff]   ;;  %v352_v24 = vcombine.high %v4656_v15, %v4656_v15 }
  0x48   :  { %1689 = vmatprep.subr.bf16.mxu0 %v3903_v25  ;;  %1853 = vmatprep.subr.bf16.mxu1 %v3906_v26  ;;  %v3988_v25 = vld [vmem:[%s5764_s1 + $0x408] ss:$16 sps:$4 sm:$0xff]   ;;  %v3993_v26 = vld [vmem:[%s5764_s1 + $0x424] ss:$16 sps:$4 sm:$0xff]   ;;  %v3991_v15 = vld [vmem:[%s5764_s1 + $0x420] ss:$16 sps:$4 sm:$0xff]  }
  0x4b   :  { %1690 = vmatpush1.bf16.msra.mxu0 %v3901_v27  ;;  %1854 = vmatpush1.bf16.msra.mxu1 %v3904_v28  ;;  %v3996_v27 = vld [vmem:[%s5764_s1 + $0x42c] ss:$16 sps:$4 sm:$0xff]   ;;  %v3994_v28 = vld [vmem:[%s5764_s1 + $0x428] ss:$16 sps:$4 sm:$0xff]  }
  0x4c   :  { %1691 = vmatprep.subr.bf16.mxu0 %v3909_v29  ;;  %1855 = vmatprep.subr.bf16.mxu1 %v3912_v30  ;;  %v3999_v29 = vld [vmem:[%s5764_s1 + $0x444] ss:$16 sps:$4 sm:$0xff]   ;;  %v4002_v30 = vld [vmem:[%s5764_s1 + $0x44c] ss:$16 sps:$4 sm:$0xff]  }
  0x4f   :  { %1692 = vmatpush1.bf16.msra.mxu0 %v3907_v31  ;;  %1856 = vmatpush1.bf16.msra.mxu1 %v3910_v32  ;;  %v3997_v31 = vld [vmem:[%s5764_s1 + $0x440] ss:$16 sps:$4 sm:$0xff]   ;;  %v4000_v32 = vld [vmem:[%s5764_s1 + $0x448] ss:$16 sps:$4 sm:$0xff]  }
  0x50   :  { %1693 = vmatprep.subr.bf16.mxu0 %v3915_v33  ;;  %1857 = vmatprep.subr.bf16.mxu1 %v3918_v34  ;;  %v4005_v33 = vld [vmem:[%s5764_s1 + $0x464] ss:$16 sps:$4 sm:$0xff]   ;;  %v4008_v34 = vld [vmem:[%s5764_s1 + $0x46c] ss:$16 sps:$4 sm:$0xff]  }
  0x53   :  { %1694 = vmatpush1.bf16.msra.mxu0 %v3913_v35  ;;  %1858 = vmatpush1.bf16.msra.mxu1 %v3916_v36  ;;  %v4003_v35 = vld [vmem:[%s5764_s1 + $0x460] ss:$16 sps:$4 sm:$0xff]   ;;  %v4006_v36 = vld [vmem:[%s5764_s1 + $0x468] ss:$16 sps:$4 sm:$0xff]  }
  0x54   :  { %1695 = vmatprep.subr.bf16.mxu0 %v3921_v37  ;;  %1859 = vmatprep.subr.bf16.mxu1 %v3924_v38  ;;  %v4011_v37 = vld [vmem:[%s5764_s1 + $0x484] ss:$16 sps:$4 sm:$0xff]   ;;  %v4014_v38 = vld [vmem:[%s5764_s1 + $0x48c] ss:$16 sps:$4 sm:$0xff]  }
  0x57   :  { %1696 = vmatpush1.bf16.msra.mxu0 %v3919_v39  ;;  %1860 = vmatpush1.bf16.msra.mxu1 %v3922_v40  ;;  %v4009_v39 = vld [vmem:[%s5764_s1 + $0x480] ss:$16 sps:$4 sm:$0xff]   ;;  %v4012_v40 = vld [vmem:[%s5764_s1 + $0x488] ss:$16 sps:$4 sm:$0xff]  }
  0x58   :  { %1697 = vmatprep.subr.bf16.mxu0 %v3927_v41  ;;  %1861 = vmatprep.subr.bf16.mxu1 %v3930_v43  ;;  %v4017_v41 = vld [vmem:[%s5764_s1 + $0x4a4] ss:$16 sps:$4 sm:$0xff]   ;;  %v4020_v43 = vld [vmem:[%s5764_s1 + $0x4ac] ss:$16 sps:$4 sm:$0xff]  }
  0x5b   :  { %1698 = vmatpush1.bf16.msra.mxu0 %v3925_v44  ;;  %1862 = vmatpush1.bf16.msra.mxu1 %v3928_v45  ;;  %v4015_v44 = vld [vmem:[%s5764_s1 + $0x4a0] ss:$16 sps:$4 sm:$0xff]   ;;  %v4018_v45 = vld [vmem:[%s5764_s1 + $0x4a8] ss:$16 sps:$4 sm:$0xff]  }
  0x5c   :  { %1699 = vmatprep.subr.bf16.mxu0 %v3933_v46  ;;  %1863 = vmatprep.subr.bf16.mxu1 %v3936_v47  ;;  %v4023_v46 = vld [vmem:[%s5764_s1 + $0x4c4] ss:$16 sps:$4 sm:$0xff]   ;;  %v4026_v47 = vld [vmem:[%s5764_s1 + $0x4cc] ss:$16 sps:$4 sm:$0xff]  }
  0x5f   :  { %1700 = vmatpush1.bf16.msra.mxu0 %v3931_v48  ;;  %1864 = vmatpush1.bf16.msra.mxu1 %v3934_v49  ;;  %v4021_v48 = vld [vmem:[%s5764_s1 + $0x4c0] ss:$16 sps:$4 sm:$0xff]   ;;  %v4024_v49 = vld [vmem:[%s5764_s1 + $0x4c8] ss:$16 sps:$4 sm:$0xff]  }
  0x60   :  { %1701 = vmatprep.subr.bf16.mxu0 %v3939_v50  ;;  %1865 = vmatprep.subr.bf16.mxu1 %v3942_v51  ;;  %v4029_v50 = vld [vmem:[%s5764_s1 + $0x4e4] ss:$16 sps:$4 sm:$0xff]   ;;  %v4032_v51 = vld [vmem:[%s5764_s1 + $0x4ec] ss:$16 sps:$4 sm:$0xff]  }
  0x63   :  { %1702 = vmatpush1.bf16.msra.mxu0 %v3937_v52  ;;  %1866 = vmatpush1.bf16.msra.mxu1 %v3940_v53  ;;  %v4027_v52 = vld [vmem:[%s5764_s1 + $0x4e0] ss:$16 sps:$4 sm:$0xff]   ;;  %v4030_v53 = vld [vmem:[%s5764_s1 + $0x4e8] ss:$16 sps:$4 sm:$0xff]  }
  0x64   :  { %1703 = vmatprep.subr.bf16.mxu0 %v3945_v54  ;;  %1867 = vmatprep.subr.bf16.mxu1 %v3948_v55  ;;  %v4035_v54 = vld [vmem:[%s5764_s1 + $0x504] ss:$16 sps:$4 sm:$0xff]   ;;  %v4038_v55 = vld [vmem:[%s5764_s1 + $0x50c] ss:$16 sps:$4 sm:$0xff]  }
  0x67   :  { %1704 = vmatpush1.bf16.msra.mxu0 %v3943_v56  ;;  %1868 = vmatpush1.bf16.msra.mxu1 %v3946_v57  ;;  %v4033_v56 = vld [vmem:[%s5764_s1 + $0x500] ss:$16 sps:$4 sm:$0xff]   ;;  %v4036_v57 = vld [vmem:[%s5764_s1 + $0x508] ss:$16 sps:$4 sm:$0xff]  }
  0x68   :  { %1705 = vmatprep.subr.bf16.mxu0 %v3951_v58  ;;  %1869 = vmatprep.subr.bf16.mxu1 %v3954_v59  ;;  %v4041_v58 = vld [vmem:[%s5764_s1 + $0x524] ss:$16 sps:$4 sm:$0xff]   ;;  %v4044_v59 = vld [vmem:[%s5764_s1 + $0x52c] ss:$16 sps:$4 sm:$0xff]  }
  0x6b   :  { %1706 = vmatpush1.bf16.msra.mxu0 %v3949_v60  ;;  %1870 = vmatpush1.bf16.msra.mxu1 %v3952_v61  ;;  %v4039_v60 = vld [vmem:[%s5764_s1 + $0x520] ss:$16 sps:$4 sm:$0xff]   ;;  %v4042_v61 = vld [vmem:[%s5764_s1 + $0x528] ss:$16 sps:$4 sm:$0xff]  }
  0x6c   :  { %1707 = vmatprep.subr.bf16.mxu0 %v3957_v62  ;;  %1871 = vmatprep.subr.bf16.mxu1 %v3960_v63  ;;  %v4047_v62 = vld [vmem:[%s5764_s1 + $0x544] ss:$16 sps:$4 sm:$0xff]   ;;  %v4050_v63 = vld [vmem:[%s5764_s1 + $0x54c] ss:$16 sps:$4 sm:$0xff]  }
  0x6f   :  { %1708 = vmatpush1.bf16.msra.mxu0 %v3955_v0  ;;  %1872 = vmatpush1.bf16.msra.mxu1 %v3958_v1  ;;  %v4045_v0 = vld [vmem:[%s5764_s1 + $0x540] ss:$16 sps:$4 sm:$0xff]   ;;  %v4048_v1 = vld [vmem:[%s5764_s1 + $0x548] ss:$16 sps:$4 sm:$0xff]  }
  0x70   :  { %1709 = vmatprep.subr.bf16.mxu0 %v3963_v2  ;;  %1873 = vmatprep.subr.bf16.mxu1 %v3966_v3  ;;  %v4053_v2 = vld [vmem:[%s5764_s1 + $0x564] ss:$16 sps:$4 sm:$0xff]   ;;  %v4056_v3 = vld [vmem:[%s5764_s1 + $0x56c] ss:$16 sps:$4 sm:$0xff]  }
  0x73   :  { %1710 = vmatpush1.bf16.msra.mxu0 %v3961_v4  ;;  %1874 = vmatpush1.bf16.msra.mxu1 %v3964_v5  ;;  %v4051_v4 = vld [vmem:[%s5764_s1 + $0x560] ss:$16 sps:$4 sm:$0xff]   ;;  %v4054_v5 = vld [vmem:[%s5764_s1 + $0x568] ss:$16 sps:$4 sm:$0xff]  }
  0x74   :  { %1711 = vmatprep.subr.bf16.mxu0 %v3969_v6  ;;  %1875 = vmatprep.subr.bf16.mxu1 %v3972_v7  ;;  %v4059_v6 = vld [vmem:[%s5764_s1 + $0x584] ss:$16 sps:$4 sm:$0xff]   ;;  %v4062_v7 = vld [vmem:[%s5764_s1 + $0x58c] ss:$16 sps:$4 sm:$0xff]  }
  0x77   :  { %1712 = vmatpush1.bf16.msra.mxu0 %v3967_v8  ;;  %1876 = vmatpush1.bf16.msra.mxu1 %v3970_v9  ;;  %v4057_v8 = vld [vmem:[%s5764_s1 + $0x580] ss:$16 sps:$4 sm:$0xff]   ;;  %v4060_v9 = vld [vmem:[%s5764_s1 + $0x588] ss:$16 sps:$4 sm:$0xff]  }
  0x78   :  { %1713 = vmatprep.subr.bf16.mxu0 %v3975_v10  ;;  %1877 = vmatprep.subr.bf16.mxu1 %v3978_v11  ;;  %v4065_v10 = vld [vmem:[%s5764_s1 + $0x5a4] ss:$16 sps:$4 sm:$0xff]   ;;  %v4068_v11 = vld [vmem:[%s5764_s1 + $0x5ac] ss:$16 sps:$4 sm:$0xff]  }
  0x7b   :  { %1714 = vmatpush1.bf16.msra.mxu0 %v3973_v12  ;;  %1878 = vmatpush1.bf16.msra.mxu1 %v3976_v13  ;;  %v4063_v12 = vld [vmem:[%s5764_s1 + $0x5a0] ss:$16 sps:$4 sm:$0xff]   ;;  %v4066_v13 = vld [vmem:[%s5764_s1 + $0x5a8] ss:$16 sps:$4 sm:$0xff]  }
  0x7c   :  { %1715 = vmatprep.subr.bf16.mxu0 %v3981_v14  ;;  %1879 = vmatprep.subr.bf16.mxu1 %v3984_v16  ;;  %v4071_v14 = vld [vmem:[%s5764_s1 + $0x5c4] ss:$16 sps:$4 sm:$0xff]   ;;  %v4074_v16 = vld [vmem:[%s5764_s1 + $0x5cc] ss:$16 sps:$4 sm:$0xff]  }
  0x7f   :  { %1716 = vmatpush1.bf16.msra.mxu0 %v3979_v17  ;;  %1880 = vmatpush1.bf16.msra.mxu1 %v3982_v18  ;;  %v4069_v17 = vld [vmem:[%s5764_s1 + $0x5c0] ss:$16 sps:$4 sm:$0xff]   ;;  %v4072_v18 = vld [vmem:[%s5764_s1 + $0x5c8] ss:$16 sps:$4 sm:$0xff]  }
  0x80   :  { %1726 = vmatprep.subr.bf16.mxu0 %v3987_v19  ;;  %1890 = vmatprep.subr.bf16.mxu1 %v3990_v22  ;;  %v4077_v19 = vld [vmem:[%s5764_s1 + $0x5e4] ss:$16 sps:$4 sm:$0xff]   ;;  %v4080_v22 = vld [vmem:[%s5764_s1 + $0x5ec] ss:$16 sps:$4 sm:$0xff]  }
  0x82   :  { %1718 = vmatmul.mubr.bf16.vlgmr.msra.gmra.mrb[0].mxu0 %v352_v24  ;;  %1882 = vmatmul.mubr.bf16.vlgmr.msra.gmra.mrb[0].mxu1 %v352_v24  ;;  %v4078_v24 = vld [vmem:[%s5764_s1 + $0x5e8] ss:$16 sps:$4 sm:$0xff]  }
  0x83   :  { %1727 = vmatpush1.bf16.msra.mxu0 %v3985_v23  ;;  %1891 = vmatpush1.bf16.msra.mxu1 %v3988_v25  ;;  %v4075_v23 = vld [vmem:[%s5764_s1 + $0x5e0] ss:$16 sps:$4 sm:$0xff]   ;;  %v4084_v25 = vld [vmem:[%s5764_s1 + $0x604] ss:$16 sps:$4 sm:$0xff]  }
  0x84   :  { %1728 = vmatprep.subr.bf16.mxu0 %v3993_v26  ;;  %1892 = vmatprep.subr.bf16.mxu1 %v3996_v27  ;;  %v4087_v26 = vld [vmem:[%s5764_s1 + $0x60c] ss:$16 sps:$4 sm:$0xff]   ;;  %v4082_v27 = vld [vmem:[%s5764_s1 + $0x600] ss:$16 sps:$4 sm:$0xff]  }
  0x85   :  { %1758 = vmatprep.mubr.bf16.mxu0 %v4668_v20  ;;  %1922 = vmatprep.mubr.bf16.mxu1 %v4668_v20 }
  0x87   :  { %1729 = vmatpush1.bf16.msra.mxu0 %v3991_v15  ;;  %1893 = vmatpush1.bf16.msra.mxu1 %v3994_v28  ;;  %v4085_v15 = vld [vmem:[%s5764_s1 + $0x608] ss:$16 sps:$4 sm:$0xff]   ;;  %v4090_v28 = vld [vmem:[%s5764_s1 + $0x624] ss:$16 sps:$4 sm:$0xff]  }
  0x88   :  { %1730 = vmatprep.subr.bf16.mxu0 %v3999_v29  ;;  %1894 = vmatprep.subr.bf16.mxu1 %v4002_v30  ;;  %v4093_v29 = vld [vmem:[%s5764_s1 + $0x62c] ss:$16 sps:$4 sm:$0xff]   ;;  %v355_v30 = vcombine.high %v4668_v20, %v4668_v20  ;;  %v4096_v20 = vld [vmem:[%s5764_s1 + $0x644] ss:$16 sps:$4 sm:$0xff]  }
  0x8b   :  { %1731 = vmatpush1.bf16.msra.mxu0 %v3997_v31  ;;  %1895 = vmatpush1.bf16.msra.mxu1 %v4000_v32  ;;  %v4088_v31 = vld [vmem:[%s5764_s1 + $0x620] ss:$16 sps:$4 sm:$0xff]   ;;  %v4091_v32 = vld [vmem:[%s5764_s1 + $0x628] ss:$16 sps:$4 sm:$0xff]  }
  0x8c   :  { %1732 = vmatprep.subr.bf16.mxu0 %v4005_v33  ;;  %1896 = vmatprep.subr.bf16.mxu1 %v4008_v34  ;;  %v4099_v33 = vld [vmem:[%s5764_s1 + $0x64c] ss:$16 sps:$4 sm:$0xff]   ;;  %v4094_v34 = vld [vmem:[%s5764_s1 + $0x640] ss:$16 sps:$4 sm:$0xff]  }
  0x8f   :  { %1733 = vmatpush1.bf16.msra.mxu0 %v4003_v35  ;;  %1897 = vmatpush1.bf16.msra.mxu1 %v4006_v36  ;;  %v4097_v35 = vld [vmem:[%s5764_s1 + $0x648] ss:$16 sps:$4 sm:$0xff]   ;;  %v4102_v36 = vld [vmem:[%s5764_s1 + $0x664] ss:$16 sps:$4 sm:$0xff]  }
  0x90   :  { %1734 = vmatprep.subr.bf16.mxu0 %v4011_v37  ;;  %1898 = vmatprep.subr.bf16.mxu1 %v4014_v38  ;;  %v4105_v37 = vld [vmem:[%s5764_s1 + $0x66c] ss:$16 sps:$4 sm:$0xff]   ;;  %v4100_v38 = vld [vmem:[%s5764_s1 + $0x660] ss:$16 sps:$4 sm:$0xff]  }
  0x93   :  { %1735 = vmatpush1.bf16.msra.mxu0 %v4009_v39  ;;  %1899 = vmatpush1.bf16.msra.mxu1 %v4012_v40  ;;  %v4103_v39 = vld [vmem:[%s5764_s1 + $0x668] ss:$16 sps:$4 sm:$0xff]   ;;  %v4108_v40 = vld [vmem:[%s5764_s1 + $0x684] ss:$16 sps:$4 sm:$0xff]  }
  0x94   :  { %1736 = vmatprep.subr.bf16.mxu0 %v4017_v41  ;;  %1900 = vmatprep.subr.bf16.mxu1 %v4020_v43  ;;  %v4111_v41 = vld [vmem:[%s5764_s1 + $0x68c] ss:$16 sps:$4 sm:$0xff]   ;;  %v4106_v43 = vld [vmem:[%s5764_s1 + $0x680] ss:$16 sps:$4 sm:$0xff]  }
  0x97   :  { %1737 = vmatpush1.bf16.msra.mxu0 %v4015_v44  ;;  %1901 = vmatpush1.bf16.msra.mxu1 %v4018_v45  ;;  %v4109_v44 = vld [vmem:[%s5764_s1 + $0x688] ss:$16 sps:$4 sm:$0xff]   ;;  %v4114_v45 = vld [vmem:[%s5764_s1 + $0x6a4] ss:$16 sps:$4 sm:$0xff]  }
  0x98   :  { %1738 = vmatprep.subr.bf16.mxu0 %v4023_v46  ;;  %1902 = vmatprep.subr.bf16.mxu1 %v4026_v47  ;;  %v4117_v46 = vld [vmem:[%s5764_s1 + $0x6ac] ss:$16 sps:$4 sm:$0xff]   ;;  %v4112_v47 = vld [vmem:[%s5764_s1 + $0x6a0] ss:$16 sps:$4 sm:$0xff]  }
  0x9b   :  { %1739 = vmatpush1.bf16.msra.mxu0 %v4021_v48  ;;  %1903 = vmatpush1.bf16.msra.mxu1 %v4024_v49  ;;  %v4115_v48 = vld [vmem:[%s5764_s1 + $0x6a8] ss:$16 sps:$4 sm:$0xff]   ;;  %v4120_v49 = vld [vmem:[%s5764_s1 + $0x6c4] ss:$16 sps:$4 sm:$0xff]  }
  0x9c   :  { %1740 = vmatprep.subr.bf16.mxu0 %v4029_v50  ;;  %1904 = vmatprep.subr.bf16.mxu1 %v4032_v51  ;;  %v4123_v50 = vld [vmem:[%s5764_s1 + $0x6cc] ss:$16 sps:$4 sm:$0xff]   ;;  %v4118_v51 = vld [vmem:[%s5764_s1 + $0x6c0] ss:$16 sps:$4 sm:$0xff]  }
  0x9f   :  { %1741 = vmatpush1.bf16.msra.mxu0 %v4027_v52  ;;  %1905 = vmatpush1.bf16.msra.mxu1 %v4030_v53  ;;  %v4121_v52 = vld [vmem:[%s5764_s1 + $0x6c8] ss:$16 sps:$4 sm:$0xff]   ;;  %v4126_v53 = vld [vmem:[%s5764_s1 + $0x6e4] ss:$16 sps:$4 sm:$0xff]  }
  0xa0   :  { %1742 = vmatprep.subr.bf16.mxu0 %v4035_v54  ;;  %1906 = vmatprep.subr.bf16.mxu1 %v4038_v55  ;;  %v4129_v54 = vld [vmem:[%s5764_s1 + $0x6ec] ss:$16 sps:$4 sm:$0xff]   ;;  %v4124_v55 = vld [vmem:[%s5764_s1 + $0x6e0] ss:$16 sps:$4 sm:$0xff]  }
  0xa3   :  { %1743 = vmatpush1.bf16.msra.mxu0 %v4033_v56  ;;  %1907 = vmatpush1.bf16.msra.mxu1 %v4036_v57  ;;  %v4127_v56 = vld [vmem:[%s5764_s1 + $0x6e8] ss:$16 sps:$4 sm:$0xff]   ;;  %v4132_v57 = vld [vmem:[%s5764_s1 + $0x704] ss:$16 sps:$4 sm:$0xff]  }
  0xa4   :  { %1744 = vmatprep.subr.bf16.mxu0 %v4041_v58  ;;  %1908 = vmatprep.subr.bf16.mxu1 %v4044_v59  ;;  %v4135_v58 = vld [vmem:[%s5764_s1 + $0x70c] ss:$16 sps:$4 sm:$0xff]   ;;  %v4130_v59 = vld [vmem:[%s5764_s1 + $0x700] ss:$16 sps:$4 sm:$0xff]  }
  0xa7   :  { %1745 = vmatpush1.bf16.msra.mxu0 %v4039_v60  ;;  %1909 = vmatpush1.bf16.msra.mxu1 %v4042_v61  ;;  %v4133_v60 = vld [vmem:[%s5764_s1 + $0x708] ss:$16 sps:$4 sm:$0xff]   ;;  %v4138_v61 = vld [vmem:[%s5764_s1 + $0x724] ss:$16 sps:$4 sm:$0xff]  }
  0xa8   :  { %1746 = vmatprep.subr.bf16.mxu0 %v4047_v62  ;;  %1910 = vmatprep.subr.bf16.mxu1 %v4050_v63  ;;  %v4141_v62 = vld [vmem:[%s5764_s1 + $0x72c] ss:$16 sps:$4 sm:$0xff]   ;;  %v4136_v63 = vld [vmem:[%s5764_s1 + $0x720] ss:$16 sps:$4 sm:$0xff]  }
  0xab   :  { %1747 = vmatpush1.bf16.msra.mxu0 %v4045_v0  ;;  %1911 = vmatpush1.bf16.msra.mxu1 %v4048_v1  ;;  %v4139_v0 = vld [vmem:[%s5764_s1 + $0x728] ss:$16 sps:$4 sm:$0xff]   ;;  %v4144_v1 = vld [vmem:[%s5764_s1 + $0x744] ss:$16 sps:$4 sm:$0xff]  }
  0xac   :  { %1748 = vmatprep.subr.bf16.mxu0 %v4053_v2  ;;  %1912 = vmatprep.subr.bf16.mxu1 %v4056_v3  ;;  %v4147_v2 = vld [vmem:[%s5764_s1 + $0x74c] ss:$16 sps:$4 sm:$0xff]   ;;  %v4142_v3 = vld [vmem:[%s5764_s1 + $0x740] ss:$16 sps:$4 sm:$0xff]  }
  0xaf   :  { %1749 = vmatpush1.bf16.msra.mxu0 %v4051_v4  ;;  %1913 = vmatpush1.bf16.msra.mxu1 %v4054_v5  ;;  %v4145_v4 = vld [vmem:[%s5764_s1 + $0x748] ss:$16 sps:$4 sm:$0xff]   ;;  %v4150_v5 = vld [vmem:[%s5764_s1 + $0x764] ss:$16 sps:$4 sm:$0xff]  }
  0xb0   :  { %1750 = vmatprep.subr.bf16.mxu0 %v4059_v6  ;;  %1914 = vmatprep.subr.bf16.mxu1 %v4062_v7  ;;  %v4153_v6 = vld [vmem:[%s5764_s1 + $0x76c] ss:$16 sps:$4 sm:$0xff]   ;;  %v4148_v7 = vld [vmem:[%s5764_s1 + $0x760] ss:$16 sps:$4 sm:$0xff]  }
  0xb3   :  { %1751 = vmatpush1.bf16.msra.mxu0 %v4057_v8  ;;  %1915 = vmatpush1.bf16.msra.mxu1 %v4060_v9  ;;  %v4151_v8 = vld [vmem:[%s5764_s1 + $0x768] ss:$16 sps:$4 sm:$0xff]   ;;  %v4156_v9 = vld [vmem:[%s5764_s1 + $0x784] ss:$16 sps:$4 sm:$0xff]  }
  0xb4   :  { %1752 = vmatprep.subr.bf16.mxu0 %v4065_v10  ;;  %1916 = vmatprep.subr.bf16.mxu1 %v4068_v11  ;;  %v4159_v10 = vld [vmem:[%s5764_s1 + $0x78c] ss:$16 sps:$4 sm:$0xff]   ;;  %v4154_v11 = vld [vmem:[%s5764_s1 + $0x780] ss:$16 sps:$4 sm:$0xff]  }
  0xb7   :  { %1753 = vmatpush1.bf16.msra.mxu0 %v4063_v12  ;;  %1917 = vmatpush1.bf16.msra.mxu1 %v4066_v13  ;;  %v4157_v12 = vld [vmem:[%s5764_s1 + $0x788] ss:$16 sps:$4 sm:$0xff]   ;;  %v4162_v13 = vld [vmem:[%s5764_s1 + $0x7a4] ss:$16 sps:$4 sm:$0xff]  }
  0xb8   :  { %1754 = vmatprep.subr.bf16.mxu0 %v4071_v14  ;;  %1918 = vmatprep.subr.bf16.mxu1 %v4074_v16  ;;  %v4165_v14 = vld [vmem:[%s5764_s1 + $0x7ac] ss:$16 sps:$4 sm:$0xff]   ;;  %v4160_v16 = vld [vmem:[%s5764_s1 + $0x7a0] ss:$16 sps:$4 sm:$0xff]  }
  0xbb   :  { %1755 = vmatpush1.bf16.msra.mxu0 %v4069_v17  ;;  %1919 = vmatpush1.bf16.msra.mxu1 %v4072_v18  ;;  %v4163_v17 = vld [vmem:[%s5764_s1 + $0x7a8] ss:$16 sps:$4 sm:$0xff]   ;;  %v4168_v18 = vld [vmem:[%s5764_s1 + $0x7c4] ss:$16 sps:$4 sm:$0xff]  }
  0xbc   :  { %1756 = vmatprep.subr.bf16.mxu0 %v4077_v19  ;;  %1920 = vmatprep.subr.bf16.mxu1 %v4080_v22  ;;  %v4171_v19 = vld [vmem:[%s5764_s1 + $0x7cc] ss:$16 sps:$4 sm:$0xff]   ;;  %v4166_v22 = vld [vmem:[%s5764_s1 + $0x7c0] ss:$16 sps:$4 sm:$0xff]  }
  0xbf   :  { %1757 = vmatpush1.bf16.msra.mxu0 %v4075_v23  ;;  %1921 = vmatpush1.bf16.msra.mxu1 %v4078_v24  ;;  %v4169_v23 = vld [vmem:[%s5764_s1 + $0x7c8] ss:$16 sps:$4 sm:$0xff]   ;;  %v4174_v24 = vld [vmem:[%s5764_s1 + $0x7e4] ss:$16 sps:$4 sm:$0xff]  }
  0xc0   :  { %1767 = vmatprep.subr.bf16.mxu0 %v4084_v25  ;;  %1931 = vmatprep.subr.bf16.mxu1 %v4087_v26  ;;  %v4177_v25 = vld [vmem:[%s5764_s1 + $0x7ec] ss:$16 sps:$4 sm:$0xff]   ;;  %v4172_v26 = vld [vmem:[%s5764_s1 + $0x7e0] ss:$16 sps:$4 sm:$0xff]  }
  0xc2   :  { %1759 = vmatmul.mubr.bf16.vlgmr.msra.gmra.mrb[0].mxu0 %v4671_v21  ;;  %1923 = vmatmul.mubr.bf16.vlgmr.msra.gmra.mrb[0].mxu1 %v4671_v21 }
  0xc3   :  { %1768 = vmatpush1.bf16.msra.mxu0 %v4082_v27  ;;  %1932 = vmatpush1.bf16.msra.mxu1 %v4085_v15  ;;  %v4175_v27 = vld [vmem:[%s5764_s1 + $0x7e8] ss:$16 sps:$4 sm:$0xff]   ;;  %v4180_v15 = vld [vmem:[%s5766_s3 + $0x4] ss:$16 sps:$4 sm:$0xff]  }
  0xc4   :  { %1769 = vmatprep.subr.bf16.mxu0 %v4090_v28  ;;  %1933 = vmatprep.subr.bf16.mxu1 %v4093_v29  ;;  %v4183_v28 = vld [vmem:[%s5766_s3 + $0xc] ss:$16 sps:$4 sm:$0xff]   ;;  %v353_v29 = vcombine.high %v4671_v21, %v4671_v21 }
  0xc5   :  { %1799 = vmatprep.mubr.bf16.mxu0 %v355_v30  ;;  %1963 = vmatprep.mubr.bf16.mxu1 %v355_v30  ;;  %v4178_v30 = vld [vmem:[%s5766_s3] ss:$16 sps:$4 sm:$0xff]   ;;  %v4189_v21 = vld [vmem:[%s5766_s3 + $0x2c] ss:$16 sps:$4 sm:$0xff]  }
  0xc7   :  { %1770 = vmatpush1.bf16.msra.mxu0 %v4088_v31  ;;  %1934 = vmatpush1.bf16.msra.mxu1 %v4091_v32  ;;  %v4181_v31 = vld [vmem:[%s5766_s3 + $0x8] ss:$16 sps:$4 sm:$0xff]   ;;  %v4186_v32 = vld [vmem:[%s5766_s3 + $0x24] ss:$16 sps:$4 sm:$0xff]  }
  0xc8   :  { %1771 = vmatprep.subr.bf16.mxu0 %v4096_v20  ;;  %1935 = vmatprep.subr.bf16.mxu1 %v4099_v33  ;;  %v4184_v20 = vld [vmem:[%s5766_s3 + $0x20] ss:$16 sps:$4 sm:$0xff]   ;;  %v4187_v33 = vld [vmem:[%s5766_s3 + $0x28] ss:$16 sps:$4 sm:$0xff]  }
  0xcb   :  { %1772 = vmatpush1.bf16.msra.mxu0 %v4094_v34  ;;  %1936 = vmatpush1.bf16.msra.mxu1 %v4097_v35  ;;  %v4192_v34 = vld [vmem:[%s5766_s3 + $0x44] ss:$16 sps:$4 sm:$0xff]   ;;  %v4195_v35 = vld [vmem:[%s5766_s3 + $0x4c] ss:$16 sps:$4 sm:$0xff]  }
  0xcc   :  { %1773 = vmatprep.subr.bf16.mxu0 %v4102_v36  ;;  %1937 = vmatprep.subr.bf16.mxu1 %v4105_v37  ;;  %v4190_v36 = vld [vmem:[%s5766_s3 + $0x40] ss:$16 sps:$4 sm:$0xff]   ;;  %v4193_v37 = vld [vmem:[%s5766_s3 + $0x48] ss:$16 sps:$4 sm:$0xff]  }
  0xcf   :  { %1774 = vmatpush1.bf16.msra.mxu0 %v4100_v38  ;;  %1938 = vmatpush1.bf16.msra.mxu1 %v4103_v39  ;;  %v4198_v38 = vld [vmem:[%s5766_s3 + $0x64] ss:$16 sps:$4 sm:$0xff]   ;;  %v4201_v39 = vld [vmem:[%s5766_s3 + $0x6c] ss:$16 sps:$4 sm:$0xff]  }
  0xd0   :  { %1775 = vmatprep.subr.bf16.mxu0 %v4108_v40  ;;  %1939 = vmatprep.subr.bf16.mxu1 %v4111_v41  ;;  %v4196_v40 = vld [vmem:[%s5766_s3 + $0x60] ss:$16 sps:$4 sm:$0xff]   ;;  %v4199_v41 = vld [vmem:[%s5766_s3 + $0x68] ss:$16 sps:$4 sm:$0xff]  }
  0xd3   :  { %1776 = vmatpush1.bf16.msra.mxu0 %v4106_v43  ;;  %1940 = vmatpush1.bf16.msra.mxu1 %v4109_v44  ;;  %v4204_v43 = vld [vmem:[%s5766_s3 + $0x84] ss:$16 sps:$4 sm:$0xff]   ;;  %v4207_v44 = vld [vmem:[%s5766_s3 + $0x8c] ss:$16 sps:$4 sm:$0xff]  }
  0xd4   :  { %1777 = vmatprep.subr.bf16.mxu0 %v4114_v45  ;;  %1941 = vmatprep.subr.bf16.mxu1 %v4117_v46  ;;  %v4202_v45 = vld [vmem:[%s5766_s3 + $0x80] ss:$16 sps:$4 sm:$0xff]   ;;  %v4205_v46 = vld [vmem:[%s5766_s3 + $0x88] ss:$16 sps:$4 sm:$0xff]  }
  0xd7   :  { %1778 = vmatpush1.bf16.msra.mxu0 %v4112_v47  ;;  %1942 = vmatpush1.bf16.msra.mxu1 %v4115_v48  ;;  %v4210_v47 = vld [vmem:[%s5766_s3 + $0xa4] ss:$16 sps:$4 sm:$0xff]   ;;  %v4213_v48 = vld [vmem:[%s5766_s3 + $0xac] ss:$16 sps:$4 sm:$0xff]  }
  0xd8   :  { %1779 = vmatprep.subr.bf16.mxu0 %v4120_v49  ;;  %1943 = vmatprep.subr.bf16.mxu1 %v4123_v50  ;;  %v4208_v49 = vld [vmem:[%s5766_s3 + $0xa0] ss:$16 sps:$4 sm:$0xff]   ;;  %v4211_v50 = vld [vmem:[%s5766_s3 + $0xa8] ss:$16 sps:$4 sm:$0xff]  }
  0xdb   :  { %1780 = vmatpush1.bf16.msra.mxu0 %v4118_v51  ;;  %1944 = vmatpush1.bf16.msra.mxu1 %v4121_v52  ;;  %v4216_v51 = vld [vmem:[%s5766_s3 + $0xc4] ss:$16 sps:$4 sm:$0xff]   ;;  %v4219_v52 = vld [vmem:[%s5766_s3 + $0xcc] ss:$16 sps:$4 sm:$0xff]  }
  0xdc   :  { %1781 = vmatprep.subr.bf16.mxu0 %v4126_v53  ;;  %1945 = vmatprep.subr.bf16.mxu1 %v4129_v54  ;;  %v4214_v53 = vld [vmem:[%s5766_s3 + $0xc0] ss:$16 sps:$4 sm:$0xff]   ;;  %v4217_v54 = vld [vmem:[%s5766_s3 + $0xc8] ss:$16 sps:$4 sm:$0xff]  }
  0xdf   :  { %1782 = vmatpush1.bf16.msra.mxu0 %v4124_v55  ;;  %1946 = vmatpush1.bf16.msra.mxu1 %v4127_v56  ;;  %v4222_v55 = vld [vmem:[%s5766_s3 + $0xe4] ss:$16 sps:$4 sm:$0xff]   ;;  %v4225_v56 = vld [vmem:[%s5766_s3 + $0xec] ss:$16 sps:$4 sm:$0xff]  }
  0xe0   :  { %1783 = vmatprep.subr.bf16.mxu0 %v4132_v57  ;;  %1947 = vmatprep.subr.bf16.mxu1 %v4135_v58  ;;  %v4220_v57 = vld [vmem:[%s5766_s3 + $0xe0] ss:$16 sps:$4 sm:$0xff]   ;;  %v4223_v58 = vld [vmem:[%s5766_s3 + $0xe8] ss:$16 sps:$4 sm:$0xff]  }
  0xe3   :  { %1784 = vmatpush1.bf16.msra.mxu0 %v4130_v59  ;;  %1948 = vmatpush1.bf16.msra.mxu1 %v4133_v60  ;;  %v4228_v59 = vld [vmem:[%s5766_s3 + $0x104] ss:$16 sps:$4 sm:$0xff]   ;;  %v4231_v60 = vld [vmem:[%s5766_s3 + $0x10c] ss:$16 sps:$4 sm:$0xff]  }
  0xe4   :  { %1785 = vmatprep.subr.bf16.mxu0 %v4138_v61  ;;  %1949 = vmatprep.subr.bf16.mxu1 %v4141_v62  ;;  %v4226_v61 = vld [vmem:[%s5766_s3 + $0x100] ss:$16 sps:$4 sm:$0xff]   ;;  %v4229_v62 = vld [vmem:[%s5766_s3 + $0x108] ss:$16 sps:$4 sm:$0xff]  }
  0xe7   :  { %1786 = vmatpush1.bf16.msra.mxu0 %v4136_v63  ;;  %1950 = vmatpush1.bf16.msra.mxu1 %v4139_v0  ;;  %v4234_v63 = vld [vmem:[%s5766_s3 + $0x124] ss:$16 sps:$4 sm:$0xff]   ;;  %v4237_v0 = vld [vmem:[%s5766_s3 + $0x12c] ss:$16 sps:$4 sm:$0xff]  }
  0xe8   :  { %1787 = vmatprep.subr.bf16.mxu0 %v4144_v1  ;;  %1951 = vmatprep.subr.bf16.mxu1 %v4147_v2  ;;  %v4232_v1 = vld [vmem:[%s5766_s3 + $0x120] ss:$16 sps:$4 sm:$0xff]   ;;  %v4235_v2 = vld [vmem:[%s5766_s3 + $0x128] ss:$16 sps:$4 sm:$0xff]  }
  0xeb   :  { %1788 = vmatpush1.bf16.msra.mxu0 %v4142_v3  ;;  %1952 = vmatpush1.bf16.msra.mxu1 %v4145_v4  ;;  %v4240_v3 = vld [vmem:[%s5766_s3 + $0x144] ss:$16 sps:$4 sm:$0xff]   ;;  %v4243_v4 = vld [vmem:[%s5766_s3 + $0x14c] ss:$16 sps:$4 sm:$0xff]  }
  0xec   :  { %1789 = vmatprep.subr.bf16.mxu0 %v4150_v5  ;;  %1953 = vmatprep.subr.bf16.mxu1 %v4153_v6  ;;  %v4238_v5 = vld [vmem:[%s5766_s3 + $0x140] ss:$16 sps:$4 sm:$0xff]   ;;  %v4241_v6 = vld [vmem:[%s5766_s3 + $0x148] ss:$16 sps:$4 sm:$0xff]  }
  0xef   :  { %1790 = vmatpush1.bf16.msra.mxu0 %v4148_v7  ;;  %1954 = vmatpush1.bf16.msra.mxu1 %v4151_v8  ;;  %v4246_v7 = vld [vmem:[%s5766_s3 + $0x164] ss:$16 sps:$4 sm:$0xff]   ;;  %v4249_v8 = vld [vmem:[%s5766_s3 + $0x16c] ss:$16 sps:$4 sm:$0xff]  }
  0xf0   :  { %1791 = vmatprep.subr.bf16.mxu0 %v4156_v9  ;;  %1955 = vmatprep.subr.bf16.mxu1 %v4159_v10  ;;  %v4244_v9 = vld [vmem:[%s5766_s3 + $0x160] ss:$16 sps:$4 sm:$0xff]   ;;  %v4247_v10 = vld [vmem:[%s5766_s3 + $0x168] ss:$16 sps:$4 sm:$0xff]  }
  0xf3   :  { %1792 = vmatpush1.bf16.msra.mxu0 %v4154_v11  ;;  %1956 = vmatpush1.bf16.msra.mxu1 %v4157_v12  ;;  %v4252_v11 = vld [vmem:[%s5766_s3 + $0x184] ss:$16 sps:$4 sm:$0xff]   ;;  %v4255_v12 = vld [vmem:[%s5766_s3 + $0x18c] ss:$16 sps:$4 sm:$0xff]  }
  0xf4   :  { %1793 = vmatprep.subr.bf16.mxu0 %v4162_v13  ;;  %1957 = vmatprep.subr.bf16.mxu1 %v4165_v14  ;;  %v4250_v13 = vld [vmem:[%s5766_s3 + $0x180] ss:$16 sps:$4 sm:$0xff]   ;;  %v4253_v14 = vld [vmem:[%s5766_s3 + $0x188] ss:$16 sps:$4 sm:$0xff]  }
  0xf7   :  { %1794 = vmatpush1.bf16.msra.mxu0 %v4160_v16  ;;  %1958 = vmatpush1.bf16.msra.mxu1 %v4163_v17  ;;  %v4258_v16 = vld [vmem:[%s5766_s3 + $0x1a4] ss:$16 sps:$4 sm:$0xff]   ;;  %v4261_v17 = vld [vmem:[%s5766_s3 + $0x1ac] ss:$16 sps:$4 sm:$0xff]  }
  0xf8   :  { %1795 = vmatprep.subr.bf16.mxu0 %v4168_v18  ;;  %1959 = vmatprep.subr.bf16.mxu1 %v4171_v19  ;;  %v4256_v18 = vld [vmem:[%s5766_s3 + $0x1a0] ss:$16 sps:$4 sm:$0xff]   ;;  %v4259_v19 = vld [vmem:[%s5766_s3 + $0x1a8] ss:$16 sps:$4 sm:$0xff]  }
  0xfb   :  { %1796 = vmatpush1.bf16.msra.mxu0 %v4166_v22  ;;  %1960 = vmatpush1.bf16.msra.mxu1 %v4169_v23  ;;  %v4264_v22 = vld [vmem:[%s5766_s3 + $0x1c4] ss:$16 sps:$4 sm:$0xff]   ;;  %v4267_v23 = vld [vmem:[%s5766_s3 + $0x1cc] ss:$16 sps:$4 sm:$0xff]  }
  0xfc   :  { %1797 = vmatprep.subr.bf16.mxu0 %v4174_v24  ;;  %1961 = vmatprep.subr.bf16.mxu1 %v4177_v25  ;;  %v4262_v24 = vld [vmem:[%s5766_s3 + $0x1c0] ss:$16 sps:$4 sm:$0xff]   ;;  %v4265_v25 = vld [vmem:[%s5766_s3 + $0x1c8] ss:$16 sps:$4 sm:$0xff]  }
  0xff   :  { %1798 = vmatpush1.bf16.msra.mxu0 %v4172_v26  ;;  %1962 = vmatpush1.bf16.msra.mxu1 %v4175_v27  ;;  %v4270_v26 = vld [vmem:[%s5766_s3 + $0x1e4] ss:$16 sps:$4 sm:$0xff]   ;;  %v4273_v27 = vld [vmem:[%s5766_s3 + $0x1ec] ss:$16 sps:$4 sm:$0xff]  }
 0x100   :  { %2770 = vmatprep.subr.bf16.mxu0 %v4180_v15  ;;  %2852 = vmatprep.subr.bf16.mxu1 %v4183_v28  ;;  %v4268_v15 = vld [vmem:[%s5766_s3 + $0x1e0] ss:$16 sps:$4 sm:$0xff]   ;;  %v4271_v28 = vld [vmem:[%s5766_s3 + $0x1e8] ss:$16 sps:$4 sm:$0xff]  }
 0x102   :  { %1800 = vmatmul.mubr.bf16.vlgmr.msra.gmra.mrb[0].mxu0 %v353_v29  ;;  %1964 = vmatmul.mubr.bf16.vlgmr.msra.gmra.mrb[0].mxu1 %v353_v29  ;;  %v4276_v29 = vld [vmem:[%s5766_s3 + $0x204] ss:$16 sps:$4 sm:$0xff]  }
 0x103   :  { %2771 = vmatpush1.bf16.msra.mxu0 %v4178_v30  ;;  %2853 = vmatpush1.bf16.msra.mxu1 %v4181_v31  ;;  %v4279_v30 = vld [vmem:[%s5766_s3 + $0x20c] ss:$16 sps:$4 sm:$0xff]   ;;  %v288_v31 = vsub.s32 0, %v4560_v42 }
 0x104   :  { %2772 = vmatprep.subr.bf16.mxu0 %v4186_v32  ;;  %2854 = vmatprep.subr.bf16.mxu1 %v4189_v21  ;;  %v5445_v32 = vld [vmem:[%s5768_s2] sm:$0xf]  ;;  %v292_v21 = vsub.s32 1, %v4560_v42 }
 0x107   :  { %2773 = vmatpush1.bf16.msra.mxu0 %v4184_v20  ;;  %2855 = vmatpush1.bf16.msra.mxu1 %v4187_v33  ;;  %v300_v20 = vsub.s32 3, %v4560_v42  ;;  %v289_v33 = vrot.slane %v5445_v32, %v288_v31 }
 0x108   :  { %2774 = vmatprep.subr.bf16.mxu0 %v4192_v34  ;;  %2856 = vmatprep.subr.bf16.mxu1 %v4195_v35  ;;  %v293_v34 = vrot.slane %v5445_v32, %v292_v21 }
 0x109   :  { %v301_v35 = vrot.slane %v5445_v32, %v300_v20 }
 0x10b   :  { %2775 = vmatpush1.bf16.msra.mxu0 %v4190_v36  ;;  %2857 = vmatpush1.bf16.msra.mxu1 %v4193_v37 }
 0x10c   :  { %2776 = vmatprep.subr.bf16.mxu0 %v4198_v38  ;;  %2858 = vmatprep.subr.bf16.mxu1 %v4201_v39 }
 0x10f   :  { %2777 = vmatpush1.bf16.msra.mxu0 %v4196_v40  ;;  %2859 = vmatpush1.bf16.msra.mxu1 %v4199_v41 }
 0x110   :  { %2778 = vmatprep.subr.bf16.mxu0 %v4204_v43  ;;  %2860 = vmatprep.subr.bf16.mxu1 %v4207_v44 }
 0x113   :  { %2779 = vmatpush1.bf16.msra.mxu0 %v4202_v45  ;;  %2861 = vmatpush1.bf16.msra.mxu1 %v4205_v46 }
 0x114   :  { %2780 = vmatprep.subr.bf16.mxu0 %v4210_v47  ;;  %2862 = vmatprep.subr.bf16.mxu1 %v4213_v48 }
 0x117   :  { %2781 = vmatpush1.bf16.msra.mxu0 %v4208_v49  ;;  %2863 = vmatpush1.bf16.msra.mxu1 %v4211_v50 }
 0x118   :  { %2782 = vmatprep.subr.bf16.mxu0 %v4216_v51  ;;  %2864 = vmatprep.subr.bf16.mxu1 %v4219_v52  ;;  %v4274_v52 = vld [vmem:[%s5766_s3 + $0x200] ss:$16 sps:$4 sm:$0xff]  }
 0x11b   :  { %2783 = vmatpush1.bf16.msra.mxu0 %v4214_v53  ;;  %2865 = vmatpush1.bf16.msra.mxu1 %v4217_v54  ;;  %v4277_v53 = vld [vmem:[%s5766_s3 + $0x208] ss:$16 sps:$4 sm:$0xff]  }
 0x11c   :  { %2784 = vmatprep.subr.bf16.mxu0 %v4222_v55  ;;  %2866 = vmatprep.subr.bf16.mxu1 %v4225_v56  ;;  %v4282_v55 = vld [vmem:[%s5766_s3 + $0x224] ss:$16 sps:$4 sm:$0xff]   ;;  %v4285_v56 = vld [vmem:[%s5766_s3 + $0x22c] ss:$16 sps:$4 sm:$0xff]  }
 0x11f   :  { %2785 = vmatpush1.bf16.msra.mxu0 %v4220_v57  ;;  %2867 = vmatpush1.bf16.msra.mxu1 %v4223_v58  ;;  %v4280_v58 = vld [vmem:[%s5766_s3 + $0x220] ss:$16 sps:$4 sm:$0xff]  }
 0x120   :  { %2786 = vmatprep.subr.bf16.mxu0 %v4228_v59  ;;  %2868 = vmatprep.subr.bf16.mxu1 %v4231_v60  ;;  %v4283_v59 = vld [vmem:[%s5766_s3 + $0x228] ss:$16 sps:$4 sm:$0xff]   ;;  %v4288_v60 = vld [vmem:[%s5766_s3 + $0x244] ss:$16 sps:$4 sm:$0xff]  }
 0x123   :  { %2787 = vmatpush1.bf16.msra.mxu0 %v4226_v61  ;;  %2869 = vmatpush1.bf16.msra.mxu1 %v4229_v62  ;;  %v4291_v61 = vld [vmem:[%s5766_s3 + $0x24c] ss:$16 sps:$4 sm:$0xff]   ;;  %v4286_v62 = vld [vmem:[%s5766_s3 + $0x240] ss:$16 sps:$4 sm:$0xff]  }
 0x124   :  { %2788 = vmatprep.subr.bf16.mxu0 %v4234_v63  ;;  %2870 = vmatprep.subr.bf16.mxu1 %v4237_v0  ;;  %v4289_v63 = vld [vmem:[%s5766_s3 + $0x248] ss:$16 sps:$4 sm:$0xff]   ;;  %v4294_v0 = vld [vmem:[%s5766_s3 + $0x264] ss:$16 sps:$4 sm:$0xff]  }
 0x127   :  { %2789 = vmatpush1.bf16.msra.mxu0 %v4232_v1  ;;  %2871 = vmatpush1.bf16.msra.mxu1 %v4235_v2  ;;  %v4297_v1 = vld [vmem:[%s5766_s3 + $0x26c] ss:$16 sps:$4 sm:$0xff]   ;;  %v4292_v2 = vld [vmem:[%s5766_s3 + $0x260] ss:$16 sps:$4 sm:$0xff]  }
 0x128   :  { %2790 = vmatprep.subr.bf16.mxu0 %v4240_v3  ;;  %2872 = vmatprep.subr.bf16.mxu1 %v4243_v4  ;;  %v4295_v3 = vld [vmem:[%s5766_s3 + $0x268] ss:$16 sps:$4 sm:$0xff]   ;;  %v4300_v4 = vld [vmem:[%s5766_s3 + $0x284] ss:$16 sps:$4 sm:$0xff]  }
 0x12b   :  { %2791 = vmatpush1.bf16.msra.mxu0 %v4238_v5  ;;  %2873 = vmatpush1.bf16.msra.mxu1 %v4241_v6  ;;  %v4303_v5 = vld [vmem:[%s5766_s3 + $0x28c] ss:$16 sps:$4 sm:$0xff]   ;;  %v4298_v6 = vld [vmem:[%s5766_s3 + $0x280] ss:$16 sps:$4 sm:$0xff]  }
 0x12c   :  { %2792 = vmatprep.subr.bf16.mxu0 %v4246_v7  ;;  %2874 = vmatprep.subr.bf16.mxu1 %v4249_v8  ;;  %v4301_v7 = vld [vmem:[%s5766_s3 + $0x288] ss:$16 sps:$4 sm:$0xff]   ;;  %v4306_v8 = vld [vmem:[%s5766_s3 + $0x2a4] ss:$16 sps:$4 sm:$0xff]  }
 0x12f   :  { %2793 = vmatpush1.bf16.msra.mxu0 %v4244_v9  ;;  %2875 = vmatpush1.bf16.msra.mxu1 %v4247_v10  ;;  %v4309_v9 = vld [vmem:[%s5766_s3 + $0x2ac] ss:$16 sps:$4 sm:$0xff]   ;;  %v4304_v10 = vld [vmem:[%s5766_s3 + $0x2a0] ss:$16 sps:$4 sm:$0xff]  }
 0x130   :  { %2794 = vmatprep.subr.bf16.mxu0 %v4252_v11  ;;  %2876 = vmatprep.subr.bf16.mxu1 %v4255_v12  ;;  %v4307_v11 = vld [vmem:[%s5766_s3 + $0x2a8] ss:$16 sps:$4 sm:$0xff]   ;;  %v4312_v12 = vld [vmem:[%s5766_s3 + $0x2c4] ss:$16 sps:$4 sm:$0xff]  }
 0x133   :  { %2795 = vmatpush1.bf16.msra.mxu0 %v4250_v13  ;;  %2877 = vmatpush1.bf16.msra.mxu1 %v4253_v14  ;;  %v4315_v13 = vld [vmem:[%s5766_s3 + $0x2cc] ss:$16 sps:$4 sm:$0xff]   ;;  %v4310_v14 = vld [vmem:[%s5766_s3 + $0x2c0] ss:$16 sps:$4 sm:$0xff]  }
 0x134   :  { %2796 = vmatprep.subr.bf16.mxu0 %v4258_v16  ;;  %2878 = vmatprep.subr.bf16.mxu1 %v4261_v17  ;;  %v4313_v16 = vld [vmem:[%s5766_s3 + $0x2c8] ss:$16 sps:$4 sm:$0xff]   ;;  %v4318_v17 = vld [vmem:[%s5766_s3 + $0x2e4] ss:$16 sps:$4 sm:$0xff]  }
 0x137   :  { %2797 = vmatpush1.bf16.msra.mxu0 %v4256_v18  ;;  %2879 = vmatpush1.bf16.msra.mxu1 %v4259_v19  ;;  %v4321_v18 = vld [vmem:[%s5766_s3 + $0x2ec] ss:$16 sps:$4 sm:$0xff]   ;;  %v4316_v19 = vld [vmem:[%s5766_s3 + $0x2e0] ss:$16 sps:$4 sm:$0xff]  }
 0x138   :  { %2798 = vmatprep.subr.bf16.mxu0 %v4264_v22  ;;  %2880 = vmatprep.subr.bf16.mxu1 %v4267_v23  ;;  %v4319_v22 = vld [vmem:[%s5766_s3 + $0x2e8] ss:$16 sps:$4 sm:$0xff]   ;;  %v4324_v23 = vld [vmem:[%s5766_s3 + $0x304] ss:$16 sps:$4 sm:$0xff]  }
 0x13b   :  { %2799 = vmatpush1.bf16.msra.mxu0 %v4262_v24  ;;  %2881 = vmatpush1.bf16.msra.mxu1 %v4265_v25  ;;  %v4327_v24 = vld [vmem:[%s5766_s3 + $0x30c] ss:$16 sps:$4 sm:$0xff]   ;;  %v4322_v25 = vld [vmem:[%s5766_s3 + $0x300] ss:$16 sps:$4 sm:$0xff]  }
 0x13c   :  { %2800 = vmatprep.subr.bf16.mxu0 %v4270_v26  ;;  %2882 = vmatprep.subr.bf16.mxu1 %v4273_v27  ;;  %v4325_v26 = vld [vmem:[%s5766_s3 + $0x308] ss:$16 sps:$4 sm:$0xff]   ;;  %v4330_v27 = vld [vmem:[%s5766_s3 + $0x324] ss:$16 sps:$4 sm:$0xff]  }
 0x13f   :  { %2801 = vmatpush1.bf16.msra.mxu0 %v4268_v15  ;;  %2883 = vmatpush1.bf16.msra.mxu1 %v4271_v28  ;;  %v4333_v15 = vld [vmem:[%s5766_s3 + $0x32c] ss:$16 sps:$4 sm:$0xff]   ;;  %v4328_v28 = vld [vmem:[%s5766_s3 + $0x320] ss:$16 sps:$4 sm:$0xff]  }
 0x140   :  { %2811 = vmatprep.subr.bf16.mxu0 %v4276_v29  ;;  %2893 = vmatprep.subr.bf16.mxu1 %v4279_v30  ;;  %v4331_v29 = vld [vmem:[%s5766_s3 + $0x328] ss:$16 sps:$4 sm:$0xff]   ;;  %v4336_v30 = vld [vmem:[%s5766_s3 + $0x344] ss:$16 sps:$4 sm:$0xff]  }
 0x1d5   :  { %v1801_v36 = vpop.f32.mrb[0].mxu0  ;;  %v5458_v37 = vpop.f32.mrb[0].mxu1 }
 0x1d6   :  { %v3752_v38 = vadd.f32 %v1801_v36, %v289_v33  ;;  %v1803_v39 = vpop.f32.mrb[1].mxu0  ;;  %v1967_v40 = vpop.f32.mrb[1].mxu1  ;;  %v4339_v33 = vld [vmem:[%s5766_s3 + $0x34c] ss:$16 sps:$4 sm:$0xff]   ;;  %v4342_v36 = vld [vmem:[%s5766_s3 + $0x364] ss:$16 sps:$4 sm:$0xff]  }
 0x1d7   :  { %v3753_v41 = vadd.f32 %v1803_v39, %v293_v34  ;;  %v3755_v43 = vadd.f32 %v1967_v40, %v301_v35  ;;  %v1805_v44 = vpop.f32.mrb[2].mxu0  ;;  %v1969_v45 = vpop.f32.mrb[2].mxu1  ;;  %v4334_v34 = vld [vmem:[%s5766_s3 + $0x340] ss:$16 sps:$4 sm:$0xff]   ;;  %v4337_v35 = vld [vmem:[%s5766_s3 + $0x348] ss:$16 sps:$4 sm:$0xff]  }
 0x1d8   :  { %v1972_v46 = vmax.f32 %v3752_v38, 0.0  ;;  %v1806_v47 = vpop.f32.mrb[3].mxu0  ;;  %v1970_v48 = vpop.f32.mrb[3].mxu1  ;;  %v4345_v38 = vld [vmem:[%s5766_s3 + $0x36c] ss:$16 sps:$4 sm:$0xff]  }
 0x1d9   :  { %v1973_v49 = vmax.f32 %v3753_v41, 0.0  ;;  %v1975_v50 = vmax.f32 %v3755_v43, 0.0  ;;  %v4340_v39 = vld [vmem:[%s5766_s3 + $0x360] ss:$16 sps:$4 sm:$0xff]   ;;  %v4343_v40 = vld [vmem:[%s5766_s3 + $0x368] ss:$16 sps:$4 sm:$0xff]  }
 0x1da   :  { %v1976_v54 = vpack.c.bf16 %v1972_v46, %v1972_v46  ;;  %v4348_v41 = vld [vmem:[%s5766_s3 + $0x384] ss:$16 sps:$4 sm:$0xff]   ;;  %v4351_v43 = vld [vmem:[%s5766_s3 + $0x38c] ss:$16 sps:$4 sm:$0xff]   ;;  %v4346_v44 = vld [vmem:[%s5766_s3 + $0x380] ss:$16 sps:$4 sm:$0xff]  }
 0x1db   :  { %v1977_v51 = vpack.c.bf16 %v1973_v49, %v1973_v49  ;;  %v1979_v57 = vpack.c.bf16 %v1975_v50, %v1975_v50  ;;  %v4349_v45 = vld [vmem:[%s5766_s3 + $0x388] ss:$16 sps:$4 sm:$0xff]   ;;  %v296_v46 = vsub.s32 2, %v4560_v42  ;;  %v4354_v47 = vld [vmem:[%s5766_s3 + $0x3a4] ss:$16 sps:$4 sm:$0xff]  }
 0x1dc   :  { %v4357_v48 = vld [vmem:[%s5766_s3 + $0x3ac] ss:$16 sps:$4 sm:$0xff]   ;;  %v4352_v49 = vld [vmem:[%s5766_s3 + $0x3a0] ss:$16 sps:$4 sm:$0xff]   ;;  %v4355_v50 = vld [vmem:[%s5766_s3 + $0x3a8] ss:$16 sps:$4 sm:$0xff]  }
 0x1dd   :  { %2802 = vmatprep.mubr.bf16.mxu0 %v1977_v51  ;;  %2884 = vmatprep.mubr.bf16.mxu1 %v1977_v51  ;;  %v297_v51 = vrot.slane %v5445_v32, %v296_v46  ;;  %v4361_v32 = vld [vmem:[%s5766_s3 + $0x3c8] ss:$16 sps:$4 sm:$0xff]  }
 0x1de   :  { %2803 = vmatmul.mubr.bf16.vlgmr.msra.gmra.mrb[4].mxu0 %v1976_v54  ;;  %2885 = vmatmul.mubr.bf16.vlgmr.msra.gmra.mrb[4].mxu1 %v1976_v54  ;;  %v4358_v54 = vld [vmem:[%s5766_s3 + $0x3c0] ss:$16 sps:$4 sm:$0xff]  }
 0x1df   :  { %2812 = vmatpush1.bf16.msra.mxu0 %v4274_v52  ;;  %2894 = vmatpush1.bf16.msra.mxu1 %v4277_v53  ;;  %v4360_v52 = vld [vmem:[%s5766_s3 + $0x3c4] ss:$16 sps:$4 sm:$0xff]   ;;  %v4363_v53 = vld [vmem:[%s5766_s3 + $0x3cc] ss:$16 sps:$4 sm:$0xff]  }
 0x1e0   :  { %2843 = vmatprep.mubr.bf16.mxu0 %v1979_v57  ;;  %2925 = vmatprep.mubr.bf16.mxu1 %v1979_v57  ;;  %v4369_v57 = vld [vmem:[%s5766_s3 + $0x3ec] ss:$16 sps:$4 sm:$0xff]  }
 0x1e1   :  { %2813 = vmatprep.subr.bf16.mxu0 %v4282_v55  ;;  %2895 = vmatprep.subr.bf16.mxu1 %v4285_v56  ;;  %v3754_v55 = vadd.f32 %v5458_v37, %v297_v51  ;;  %v4366_v56 = vld [vmem:[%s5766_s3 + $0x3e4] ss:$16 sps:$4 sm:$0xff]   ;;  %v4367_v37 = vld [vmem:[%s5766_s3 + $0x3e8] ss:$16 sps:$4 sm:$0xff]  }
 0x1e3   :  { %2814 = vmatpush1.bf16.msra.mxu0 %v4280_v58  ;;  %2896 = vmatpush1.bf16.msra.mxu1 %v4283_v59  ;;  %v4364_v58 = vld [vmem:[%s5766_s3 + $0x3e0] ss:$16 sps:$4 sm:$0xff]   ;;  %v1974_v59 = vmax.f32 %v3754_v55, 0.0 }
 0x1e4   :  { %2815 = vmatprep.subr.bf16.mxu0 %v4288_v60  ;;  %2897 = vmatprep.subr.bf16.mxu1 %v4291_v61  ;;  %v4370_v60 = vld [vmem:[%s5767_s5 + $0x40] sm:$0xff]  }
 0x1e5   :  { %v4371_v61 = vld [vmem:[%s5767_s5 + $0xc0] sm:$0xff]  }
 0x1e7   :  { %2816 = vmatpush1.bf16.msra.mxu0 %v4286_v62  ;;  %2898 = vmatpush1.bf16.msra.mxu1 %v4289_v63  ;;  %v4372_v62 = vld [vmem:[%s5767_s5] sm:$0xff]  }
 0x1e8   :  { %2817 = vmatprep.subr.bf16.mxu0 %v4294_v0  ;;  %2899 = vmatprep.subr.bf16.mxu1 %v4297_v1  ;;  %v4373_v63 = vld [vmem:[%s5767_s5 + $0x80] sm:$0xff]   ;;  %v1978_v0 = vpack.c.bf16 %v1974_v59, %v1974_v59  ;;  %v4374_v1 = vld [vmem:[%s5767_s5 + $0x48] sm:$0xff]  }
 0x1eb   :  { %2818 = vmatpush1.bf16.msra.mxu0 %v4292_v2  ;;  %2900 = vmatpush1.bf16.msra.mxu1 %v4295_v3  ;;  %v4375_v2 = vld [vmem:[%s5767_s5 + $0xc8] sm:$0xff]  }
 0x1ec   :  { %2819 = vmatprep.subr.bf16.mxu0 %v4300_v4  ;;  %2901 = vmatprep.subr.bf16.mxu1 %v4303_v5  ;;  %v4376_v3 = vld [vmem:[%s5767_s5 + $0x8] sm:$0xff]   ;;  %v4378_v5 = vld [vmem:[%s5767_s5 + $0x50] sm:$0xff]  }
 0x1ed   :  { %v4377_v4 = vld [vmem:[%s5767_s5 + $0x88] sm:$0xff]  }
 0x1ef   :  { %2820 = vmatpush1.bf16.msra.mxu0 %v4298_v6  ;;  %2902 = vmatpush1.bf16.msra.mxu1 %v4301_v7  ;;  %v4379_v6 = vld [vmem:[%s5767_s5 + $0xd0] sm:$0xff]  }
 0x1f0   :  { %2821 = vmatprep.subr.bf16.mxu0 %v4306_v8  ;;  %2903 = vmatprep.subr.bf16.mxu1 %v4309_v9  ;;  %v4380_v7 = vld [vmem:[%s5767_s5 + $0x10] sm:$0xff]   ;;  %v4382_v9 = vld [vmem:[%s5767_s5 + $0x58] sm:$0xff]  }
 0x1f1   :  { %v4381_v8 = vld [vmem:[%s5767_s5 + $0x90] sm:$0xff]  }
 0x1f3   :  { %2822 = vmatpush1.bf16.msra.mxu0 %v4304_v10  ;;  %2904 = vmatpush1.bf16.msra.mxu1 %v4307_v11  ;;  %v4383_v10 = vld [vmem:[%s5767_s5 + $0xd8] sm:$0xff]  }
 0x1f4   :  { %2823 = vmatprep.subr.bf16.mxu0 %v4312_v12  ;;  %2905 = vmatprep.subr.bf16.mxu1 %v4315_v13  ;;  %v4384_v11 = vld [vmem:[%s5767_s5 + $0x18] sm:$0xff]   ;;  %v4386_v13 = vld [vmem:[%s5767_s5 + $0x60] sm:$0xff]  }
 0x1f5   :  { %v4385_v12 = vld [vmem:[%s5767_s5 + $0x98] sm:$0xff]  }
 0x1f7   :  { %2824 = vmatpush1.bf16.msra.mxu0 %v4310_v14  ;;  %2906 = vmatpush1.bf16.msra.mxu1 %v4313_v16  ;;  %v4387_v14 = vld [vmem:[%s5767_s5 + $0xe0] sm:$0xff]  }
 0x1f8   :  { %2825 = vmatprep.subr.bf16.mxu0 %v4318_v17  ;;  %2907 = vmatprep.subr.bf16.mxu1 %v4321_v18  ;;  %v4388_v16 = vld [vmem:[%s5767_s5 + $0x20] sm:$0xff]   ;;  %v4390_v18 = vld [vmem:[%s5767_s5 + $0x68] sm:$0xff]  }
 0x1f9   :  { %v4389_v17 = vld [vmem:[%s5767_s5 + $0xa0] sm:$0xff]  }
 0x1fb   :  { %2826 = vmatpush1.bf16.msra.mxu0 %v4316_v19  ;;  %2908 = vmatpush1.bf16.msra.mxu1 %v4319_v22  ;;  %v4391_v19 = vld [vmem:[%s5767_s5 + $0xe8] sm:$0xff]  }
 0x1fc   :  { %2827 = vmatprep.subr.bf16.mxu0 %v4324_v23  ;;  %2909 = vmatprep.subr.bf16.mxu1 %v4327_v24  ;;  %v4392_v22 = vld [vmem:[%s5767_s5 + $0x28] sm:$0xff]   ;;  %v4394_v24 = vld [vmem:[%s5767_s5 + $0x70] sm:$0xff]  }
 0x1fd   :  { %v4393_v23 = vld [vmem:[%s5767_s5 + $0xa8] sm:$0xff]  }
 0x1ff   :  { %2828 = vmatpush1.bf16.msra.mxu0 %v4322_v25  ;;  %2910 = vmatpush1.bf16.msra.mxu1 %v4325_v26  ;;  %v4395_v25 = vld [vmem:[%s5767_s5 + $0xf0] sm:$0xff]  }
 0x200   :  { %2829 = vmatprep.subr.bf16.mxu0 %v4330_v27  ;;  %2911 = vmatprep.subr.bf16.mxu1 %v4333_v15  ;;  %v4396_v26 = vld [vmem:[%s5767_s5 + $0x30] sm:$0xff]   ;;  %v4398_v15 = vld [vmem:[%s5767_s5 + $0x78] sm:$0xff]  }
 0x201   :  { %v4397_v27 = vld [vmem:[%s5767_s5 + $0xb0] sm:$0xff]  }
 0x203   :  { %2830 = vmatpush1.bf16.msra.mxu0 %v4328_v28  ;;  %2912 = vmatpush1.bf16.msra.mxu1 %v4331_v29  ;;  %v4399_v28 = vld [vmem:[%s5767_s5 + $0xf8] sm:$0xff]  }
 0x204   :  { %2831 = vmatprep.subr.bf16.mxu0 %v4336_v30  ;;  %2913 = vmatprep.subr.bf16.mxu1 %v4339_v33  ;;  %v4400_v29 = vld [vmem:[%s5767_s5 + $0x38] sm:$0xff]   ;;  %v2108_v33 = vld [vmem:[%s5769_s4] sm:$0xf] }
 0x205   :  { %v4401_v30 = vld [vmem:[%s5767_s5 + $0xb8] sm:$0xff]  }
 0x207   :  { %2832 = vmatpush1.bf16.msra.mxu0 %v4334_v34  ;;  %2914 = vmatpush1.bf16.msra.mxu1 %v4337_v35  ;;  %v2113_v34 = vrot.slane %v2108_v33, %v288_v31  ;;  %v2121_v35 = vrot.slane %v2108_v33, %v296_v46 }
 0x208   :  { %2833 = vmatprep.subr.bf16.mxu0 %v4342_v36  ;;  %2915 = vmatprep.subr.bf16.mxu1 %v4345_v38  ;;  %v2117_v36 = vrot.slane %v2108_v33, %v292_v21  ;;  %v2125_v38 = vrot.slane %v2108_v33, %v300_v20 }
 0x20b   :  { %2834 = vmatpush1.bf16.msra.mxu0 %v4340_v39  ;;  %2916 = vmatpush1.bf16.msra.mxu1 %v4343_v40 }
 0x20c   :  { %2835 = vmatprep.subr.bf16.mxu0 %v4348_v41  ;;  %2917 = vmatprep.subr.bf16.mxu1 %v4351_v43 }
 0x20f   :  { %2836 = vmatpush1.bf16.msra.mxu0 %v4346_v44  ;;  %2918 = vmatpush1.bf16.msra.mxu1 %v4349_v45 }
 0x210   :  { %2837 = vmatprep.subr.bf16.mxu0 %v4354_v47  ;;  %2919 = vmatprep.subr.bf16.mxu1 %v4357_v48 }
 0x213   :  { %2838 = vmatpush1.bf16.msra.mxu0 %v4352_v49  ;;  %2920 = vmatpush1.bf16.msra.mxu1 %v4355_v50 }
 0x214   :  { %2839 = vmatprep.subr.bf16.mxu0 %v4360_v52  ;;  %2921 = vmatprep.subr.bf16.mxu1 %v4363_v53 }
 0x217   :  { %2840 = vmatpush1.bf16.msra.mxu0 %v4358_v54  ;;  %2922 = vmatpush1.bf16.msra.mxu1 %v4361_v32 }
 0x218   :  { %2841 = vmatprep.subr.bf16.mxu0 %v4366_v56  ;;  %2923 = vmatprep.subr.bf16.mxu1 %v4369_v57  ;;  %v3675_v57 = vld [vmem:[%s5770_s6] ss:$0 sm:$0xff] }
 0x21b   :  { %2842 = vmatpush1.bf16.msra.mxu0 %v4364_v58  ;;  %2924 = vmatpush1.bf16.msra.mxu1 %v4367_v37 }
 0x21c   :  { %3708 = vmatprep.subr.bf16.mxu0 %v4370_v60  ;;  %3730 = vmatprep.subr.bf16.mxu1 %v4371_v61 }
 0x21e   :  { %2844 = vmatmul.mubr.bf16.vlgmr.msra.gmra.mrb[4].mxu0 %v1978_v0  ;;  %2926 = vmatmul.mubr.bf16.vlgmr.msra.gmra.mrb[4].mxu1 %v1978_v0 }
 0x21f   :  { %3709 = vmatpush3.bf16.msra.mxu0 %v4372_v62  ;;  %3731 = vmatpush3.bf16.msra.mxu1 %v4373_v63 }
 0x220   :  { %3710 = vmatprep.subr.bf16.mxu0 %v4374_v1  ;;  %3732 = vmatprep.subr.bf16.mxu1 %v4375_v2 }
 0x223   :  { %3711 = vmatpush3.bf16.msra.mxu0 %v4376_v3  ;;  %3733 = vmatpush3.bf16.msra.mxu1 %v4377_v4 }
 0x224   :  { %3712 = vmatprep.subr.bf16.mxu0 %v4378_v5  ;;  %3734 = vmatprep.subr.bf16.mxu1 %v4379_v6 }
 0x227   :  { %3713 = vmatpush3.bf16.msra.mxu0 %v4380_v7  ;;  %3735 = vmatpush3.bf16.msra.mxu1 %v4381_v8 }
 0x228   :  { %3714 = vmatprep.subr.bf16.mxu0 %v4382_v9  ;;  %3736 = vmatprep.subr.bf16.mxu1 %v4383_v10 }
 0x22b   :  { %3715 = vmatpush3.bf16.msra.mxu0 %v4384_v11  ;;  %3737 = vmatpush3.bf16.msra.mxu1 %v4385_v12 }
 0x22c   :  { %3716 = vmatprep.subr.bf16.mxu0 %v4386_v13  ;;  %3738 = vmatprep.subr.bf16.mxu1 %v4387_v14 }
 0x22f   :  { %3717 = vmatpush3.bf16.msra.mxu0 %v4388_v16  ;;  %3739 = vmatpush3.bf16.msra.mxu1 %v4389_v17 }
 0x230   :  { %3718 = vmatprep.subr.bf16.mxu0 %v4390_v18  ;;  %3740 = vmatprep.subr.bf16.mxu1 %v4391_v19 }
 0x233   :  { %3719 = vmatpush3.bf16.msra.mxu0 %v4392_v22  ;;  %3741 = vmatpush3.bf16.msra.mxu1 %v4393_v23 }
 0x234   :  { %3720 = vmatprep.subr.bf16.mxu0 %v4394_v24  ;;  %3742 = vmatprep.subr.bf16.mxu1 %v4395_v25 }
 0x237   :  { %3721 = vmatpush3.bf16.msra.mxu0 %v4396_v26  ;;  %3743 = vmatpush3.bf16.msra.mxu1 %v4397_v27 }
 0x238   :  { %3722 = vmatprep.subr.bf16.mxu0 %v4398_v15  ;;  %3744 = vmatprep.subr.bf16.mxu1 %v4399_v28 }
 0x23b   :  { %3723 = vmatpush3.bf16.msra.mxu0 %v4400_v29  ;;  %3745 = vmatpush3.bf16.msra.mxu1 %v4401_v30 }
 0x2f1   :  { %v2845_v39 = vpop.f32.mrb[4].mxu0  ;;  %v2927_v40 = vpop.f32.mrb[4].mxu1 }
 0x2f2   :  { %v3756_v41 = vadd.f32 %v2845_v39, %v2113_v34  ;;  %v3758_v43 = vadd.f32 %v2927_v40, %v2121_v35  ;;  %v2847_v44 = vpop.f32.mrb[5].mxu0  ;;  %v2929_v45 = vpop.f32.mrb[5].mxu1 }
 0x2f3   :  { %v3757_v47 = vadd.f32 %v2847_v44, %v2117_v36  ;;  %v3759_v48 = vadd.f32 %v2929_v45, %v2125_v38  ;;  %v2849_v49 = vpop.f32.mrb[6].mxu0  ;;  %v2931_v50 = vpop.f32.mrb[6].mxu1 }
 0x2f4   :  { %v2934_v31 = vmax.f32 %v3756_v41, 0.0  ;;  %v2936_v51 = vmax.f32 %v3758_v43, 0.0  ;;  %v2850_v52 = vpop.f32.mrb[7].mxu0  ;;  %v2932_v46 = vpop.f32.mrb[7].mxu1 }
 0x2f5   :  { %v2935_v53 = vmax.f32 %v3757_v47, 0.0  ;;  %v2937_v54 = vmax.f32 %v3759_v48, 0.0 }
 0x2f6   :  { %v2938_v42 = vpack.c.bf16 %v2934_v31, %v2934_v31  ;;  %v2940_v20 = vpack.c.bf16 %v2936_v51, %v2936_v51 }
 0x2f7   :  { %v2939_v21 = vpack.c.bf16 %v2935_v53, %v2935_v53  ;;  %v2941_v32 = vpack.c.bf16 %v2937_v54, %v2937_v54 }
 0x2f9   :  { %3237 = vmatprep.mubr.bf16.mxu0 %v2939_v21  ;;  %3277 = vmatprep.mubr.bf16.mxu1 %v2941_v32 }
 0x2fa   :  { %3238 = vmatmul.mubr.bf16.vlgmr.msra.gmra.mrb[8].mxu0 %v2938_v42  ;;  %3278 = vmatmul.mubr.bf16.vlgmr.msra.gmra.mrb[8].mxu1 %v2940_v20 }
 0x3cd   :  { %v3724_v55 = vpop.f32.mrb[8].mxu0  ;;  %v3746_v56 = vpop.f32.mrb[8].mxu1 }
 0x3ce   :  { %v3725_v58 = vpop.f32.mrb[9].mxu0  ;;  %v3747_v37 = vpop.f32.mrb[9].mxu1 }
 0x3cf   :  { %v3726_v59 = vadd.f32 %v3725_v58, %v3724_v55  ;;  %v3748_v60 = vadd.f32 %v3747_v37, %v3746_v56  ;;  %v3727_v61 = vpop.f32.mrb[10].mxu0  ;;  %v3749_v62 = vpop.f32.mrb[10].mxu1 }
 0x3d0   :  { %v3728_v63 = vpop.f32.mrb[11].mxu0  ;;  %v3750_v0 = vpop.f32.mrb[11].mxu1 }
 0x3d1   :  { %v3240_v1 = vadd.f32 %v3726_v59, %v3675_v57 }
 0x3d3   :  { %v3280_v2 = vadd.f32 %v3748_v60, %v3240_v1 }
 0x3d5   :  { %3286 = vst.msk [vmem:[%s5771_s7] sm:$0x3] %vm3285_vm0, %v3280_v2 }

</bundles_post_ra>
